<compile_context>
chip_gen: v7x
topology: tpu7x:2x2x1
jax: 0.10.0
libtpu: 0.0.40
codegen_flags: <defaults>
</compile_context>

<pallas_src>
import functools

import jax
import jax.numpy as jnp
from jax import lax
from jax.experimental import pallas as pl
from jax.experimental.pallas import tpu as pltpu

LANE = 128


def _round_up(x, m):
    return (x + m - 1) // m * m


def _shift_w(a, direction):
    """Shifted copy along the W (sub-lane) axis with zero fill.

    direction=+1: result[:, w, :] = a[:, w-1, :]   (dx=0, left-neighbour tap)
    direction=-1: result[:, w, :] = a[:, w+1, :]   (dx=2, right-neighbour tap)

    Value-level, full-block ops only (no masked sub-lane stores); the injected
    zero column is exactly the conv's W zero padding.
    """
    zero = jnp.zeros_like(a[:, :1, :])
    if direction == 1:
        return jnp.concatenate([zero, a[:, :-1, :]], axis=1)
    return jnp.concatenate([a[:, 1:, :], zero], axis=1)


def basic_block_kernel(x_ref, w1_ref, w2_ref, b_ref, out_ref, *, w_valid):
    """One (batch n, H-tile t) grid step of BasicBlock (stride=1, no downsample).

    x_ref  : (H+4, WP, CP) f32  — input slab for batch n; H zero-padded by 2
                                  top/bottom, W zero-padded to WP (mult of 8),
                                  channels zero-padded to CP (mult of 128).
    w1_ref : (3, 3*CP, CQ) bf16 — conv1 weights (bn1 scale folded), one
                                  (3*CP, CQ) matrix per dy; K = dx*CP + ci.
    w2_ref : (3, 3*CQ, CQ) bf16 — conv2 weights (bn2 scale folded).
    b_ref  : (2, CQ)       f32  — folded bn1 / bn2 biases.
    out_ref: (TH, WP, CQ)  f32  — output rows [t*TH, t*TH + TH).
    """
    TH, WP, CQ = out_ref.shape
    CP = x_ref.shape[-1]
    H = x_ref.shape[0] - 4
    t = pl.program_id(1)
    row0 = t * TH

    # ---- conv1 (+ folded bn1 scale): TH+2 extended rows (1-row halo) --------
    # Extended row p corresponds to conv1-output image row row0 - 1 + p.
    x = x_ref[pl.ds(row0, TH + 4), :, :]                 # (TH+4, WP, CP) f32
    xl = _shift_w(x, +1)                                 # x[.., w-1, ..]
    xr = _shift_w(x, -1)                                 # x[.., w+1, ..]
    xcat = jnp.concatenate([xl, x, xr], axis=-1).astype(jnp.bfloat16)

    acc1 = jnp.zeros(((TH + 2) * WP, CQ), jnp.float32)
    for dy in range(3):
        patch = xcat[dy:dy + TH + 2].reshape((TH + 2) * WP, 3 * CP)
        acc1 = acc1 + jnp.dot(patch, w1_ref[dy],
                              preferred_element_type=jnp.float32)

    # bn1 bias + relu (scale already folded into w1).
    out1 = jnp.maximum(acc1 + b_ref[0:1, :], 0.0).reshape(TH + 2, WP, CQ)

    # Zero the halo rows that fall in conv2's H zero-padding (image top /
    # bottom) and — if W was padded — the padding columns, so conv2's taps
    # read exact zeros there.
    row = lax.broadcasted_iota(jnp.int32, (TH + 2, 1, 1), 0) + (row0 - 1)
    valid = (row >= 0) & (row <= H - 1)
    if WP > w_valid:
        col = lax.broadcasted_iota(jnp.int32, (1, WP, 1), 1)
        valid = valid & (col < w_valid)
    out1 = jnp.where(valid, out1, 0.0)

    # ---- conv2 (+ folded bn2 scale) -----------------------------------------
    o1l = _shift_w(out1, +1)
    o1r = _shift_w(out1, -1)
    ocat = jnp.concatenate([o1l, out1, o1r], axis=-1).astype(jnp.bfloat16)

    acc2 = jnp.zeros((TH * WP, CQ), jnp.float32)
    for dy in range(3):
        patch = ocat[dy:dy + TH].reshape(TH * WP, 3 * CQ)
        acc2 = acc2 + jnp.dot(patch, w2_ref[dy],
                              preferred_element_type=jnp.float32)

    # ---- bn2 bias + residual add + relu -------------------------------------
    # identity = original x rows [row0, row0+TH)  (slab rows 2 .. TH+1), f32.
    identity = x[2:TH + 2].reshape(TH * WP, CP)
    out2 = acc2 + b_ref[1:2, :] + identity
    out_ref[...] = jnp.maximum(out2, 0.0).reshape(TH, WP, CQ).astype(
        out_ref.dtype)


def basic_block_forward(x_nchw, w1, w2, g1, b1, m1, v1, g2, b2, m2, v2,
                        eps=1e-5):
    """BasicBlock forward (stride=1, downsample=None). Input/output are NCHW."""
    N, Cin, H, W = x_nchw.shape
    Cout = w1.shape[0]
    assert Cin == Cout, "downsample=None requires in_channel == out_channel"

    CP = _round_up(Cin, LANE)          # lane-padded channel count
    CQ = CP
    WP = _round_up(W, 8)               # keep reshapes layout no-ops

    # H tile: largest divisor of H keeping the matmul M dim (~TH*WP) moderate
    # but >= ~256 when possible (fills the 256-wide MXU on v6e/v7x).
    TH = 1
    for cand in range(1, H + 1):
        if H % cand == 0 and cand * WP <= 1024:
            TH = cand
    T = H // TH

    # ---- wrapper-side layout prep (pure XLA, outside the kernel) -----------
    x_nhwc = jnp.transpose(x_nchw, (0, 2, 3, 1)).astype(jnp.float32)
    x_h = jnp.pad(x_nhwc, ((0, 0), (2, 2), (0, WP - W), (0, CP - Cin)))
    # -> (N, H+4, WP, CP): H padded by 2 (conv1 + conv2 halos), W / C padded.

    # Fold BatchNorm (inference / running stats): y -> y*s + (b - m*s).
    def bn_fold(g, b, m, v):
        s = (g / jnp.sqrt(v + eps)).astype(jnp.float32)
        return s, (b - m * s).astype(jnp.float32)

    s1, bb1 = bn_fold(g1, b1, m1, v1)
    s2, bb2 = bn_fold(g2, b2, m2, v2)

    # Conv weights (Cout, Cin, 3, 3) -> (3, 3*C, CQ) bf16 with the BN scale
    # folded into the output-channel columns; K ordered as [dx*C + ci].
    def prep_w(w, s, cin, cpad):
        wt = jnp.transpose(w.astype(jnp.float32), (2, 3, 1, 0))   # (dy,dx,ci,co)
        wt = wt * s[None, None, None, :]
        wt = jnp.pad(wt, ((0, 0), (0, 0), (0, cpad - cin), (0, CQ - Cout)))
        return wt.reshape(3, 3 * cpad, CQ).astype(jnp.bfloat16)

    w1k = prep_w(w1, s1, Cin, CP)
    w2k = prep_w(w2, s2, Cout, CQ)

    bias = jnp.stack([jnp.pad(bb1, (0, CQ - Cout)),
                      jnp.pad(bb2, (0, CQ - Cout))], axis=0)       # (2, CQ) f32

    flops = 2 * N * T * 3 * ((TH + 2) * WP * 3 * CP * CQ
                             + TH * WP * 3 * CQ * CQ)
    bytes_accessed = (4 * x_h.size + 2 * (w1k.size + w2k.size)
                      + 4 * bias.size + 4 * N * H * WP * CQ)

    kernel = functools.partial(basic_block_kernel, w_valid=W)

    out = pl.pallas_call(
        kernel,
        out_shape=jax.ShapeDtypeStruct((N, H, WP, CQ), jnp.float32),
        grid=(N, T),
        in_specs=[
            # Full padded-H slab per batch element; block index constant in t
            # -> fetched once per n and resident across the H-tile axis.
            pl.BlockSpec((None, H + 4, WP, CP), lambda n, t: (n, 0, 0, 0)),
            pl.BlockSpec((3, 3 * CP, CQ), lambda n, t: (0, 0, 0)),
            pl.BlockSpec((3, 3 * CQ, CQ), lambda n, t: (0, 0, 0)),
            pl.BlockSpec((2, CQ), lambda n, t: (0, 0)),
        ],
        out_specs=pl.BlockSpec((None, TH, WP, CQ), lambda n, t: (n, t, 0, 0)),
        compiler_params=pltpu.CompilerParams(
            dimension_semantics=("parallel", "arbitrary"),
            vmem_limit_bytes=32 * 1024 * 1024),
        cost_estimate=pl.CostEstimate(flops=int(flops), transcendentals=0,
                                      bytes_accessed=int(bytes_accessed)),
    )(x_h, w1k, w2k, bias)

    out = out[:, :, :W, :Cout]                     # strip W / channel padding
    return jnp.transpose(out, (0, 3, 1, 2))        # back to NCHW


def basic_block_reference(x, w1, w2, g1, b1, m1, v1, g2, b2, m2, v2, eps=1e-5):
    """Pure-JAX NCHW reference mirroring the PyTorch module (eval-mode BN)."""
    def conv(x, w):
        return lax.conv_general_dilated(
            x, w, window_strides=(1, 1), padding=((1, 1), (1, 1)),
            dimension_numbers=("NCHW", "OIHW", "NCHW"))

    def bn(x, g, b, m, v):
        sh = (1, -1, 1, 1)
        return (x - m.reshape(sh)) / jnp.sqrt(v.reshape(sh) + eps) \
            * g.reshape(sh) + b.reshape(sh)

    identity = x
    out = jnp.maximum(bn(conv(x, w1), g1, b1, m1, v1), 0.0)
    out = bn(conv(out, w2), g2, b2, m2, v2)
    return jnp.maximum(out + identity, 0.0)


if __name__ == "__main__":
    # Small shapes: batch=2, in_channel=out_channel=8, spatial=16x16, stride=1.
    N, C, H, W = 2, 8, 16, 16
    key = jax.random.PRNGKey(0)
    kx, kw1, kw2, kg1, kb1, km1, kv1, kg2, kb2, km2, kv2 = jax.random.split(
        key, 11)

    x = jax.random.normal(kx, (N, C, H, W), jnp.float32)
    w1 = jax.random.normal(kw1, (C, C, 3, 3), jnp.float32) * 0.1
    w2 = jax.random.normal(kw2, (C, C, 3, 3), jnp.float32) * 0.1
    g1 = 1.0 + 0.1 * jax.random.normal(kg1, (C,), jnp.float32)
    b1 = 0.1 * jax.random.normal(kb1, (C,), jnp.float32)
    m1 = 0.1 * jax.random.normal(km1, (C,), jnp.float32)
    v1 = 1.0 + 0.1 * jax.random.uniform(kv1, (C,), jnp.float32)
    g2 = 1.0 + 0.1 * jax.random.normal(kg2, (C,), jnp.float32)
    b2 = 0.1 * jax.random.normal(kb2, (C,), jnp.float32)
    m2 = 0.1 * jax.random.normal(km2, (C,), jnp.float32)
    v2 = 1.0 + 0.1 * jax.random.uniform(kv2, (C,), jnp.float32)

    out = basic_block_forward(x, w1, w2, g1, b1, m1, v1, g2, b2, m2, v2)
    out = jax.block_until_ready(out)

    ref = basic_block_reference(x, w1, w2, g1, b1, m1, v1, g2, b2, m2, v2)
    ref = jax.block_until_ready(ref)

    assert out.shape == (N, C, H, W)
    # bf16 MXU operands (f32 accumulation) => loosened tolerance vs f32 ref.
    assert jnp.allclose(out, ref, atol=5e-2, rtol=5e-2), \
        f"max abs err {jnp.max(jnp.abs(out - ref))}"
    print("KERNEL_OK")
</pallas_src>

<mosaic_0001>
module attributes {stable_mosaic.version = 11 : i64} {
  func.func @basic_block_kernel(%arg0: i32, %arg1: i32, %arg2: memref<1x20x16x128xf32, #tpu.memory_space<vmem>>, %arg3: memref<3x384x128xbf16, #tpu.memory_space<vmem>>, %arg4: memref<3x384x128xbf16, #tpu.memory_space<vmem>>, %arg5: memref<2x128xf32, #tpu.memory_space<vmem>>, %arg6: memref<1x16x16x128xf32, #tpu.memory_space<vmem>>) attributes {dimension_semantics = [#tpu.dimension_semantics<parallel>, #tpu.dimension_semantics<arbitrary>], iteration_bounds = array<i64: 2, 1>, scalar_prefetch = 0 : i64, scratch_operands = 0 : i64, tpu.core_type = #tpu.core_type<tc>, window_params = [{transform_indices = @transform_0, window_bounds = array<i64: 1, 20, 16, 128>}, {pipeline_mode = #tpu.pipeline_mode<synchronous>, transform_indices = @transform_1, window_bounds = array<i64: 3, 384, 128>}, {pipeline_mode = #tpu.pipeline_mode<synchronous>, transform_indices = @transform_2, window_bounds = array<i64: 3, 384, 128>}, {pipeline_mode = #tpu.pipeline_mode<synchronous>, transform_indices = @transform_3, window_bounds = array<i64: 2, 128>}, {transform_indices = @transform_4, window_bounds = array<i64: 1, 16, 16, 128>}]} {
    %c16_i32 = arith.constant 16 : i32
    %0 = arith.muli %arg1, %c16_i32 : i32
    %c0 = arith.constant 0 : index
    %1 = arith.index_cast %0 : i32 to index
    %c0_0 = arith.constant 0 : index
    %c0_1 = arith.constant 0 : index
    %2 = vector.load %arg2[%c0, %1, %c0_0, %c0_1] : memref<1x20x16x128xf32, #tpu.memory_space<vmem>>, vector<1x20x16x128xf32>
    %3 = vector.shape_cast %2 : vector<1x20x16x128xf32> to vector<20x16x128xf32>
    %cst = arith.constant 0.000000e+00 : f32
    %4 = vector.broadcast %cst : f32 to vector<20x1x128xf32>
    %5 = vector.extract_strided_slice %3 {offsets = [0, 0, 0], sizes = [20, 15, 128], strides = [1, 1, 1]} : vector<20x16x128xf32> to vector<20x15x128xf32>
    %6 = tpu.concatenate %4, %5 in 1 : vector<20x1x128xf32>, vector<20x15x128xf32> -> vector<20x16x128xf32>
    %cst_2 = arith.constant 0.000000e+00 : f32
    %7 = vector.broadcast %cst_2 : f32 to vector<20x1x128xf32>
    %8 = vector.extract_strided_slice %3 {offsets = [0, 1, 0], sizes = [20, 15, 128], strides = [1, 1, 1]} : vector<20x16x128xf32> to vector<20x15x128xf32>
    %9 = tpu.concatenate %8, %7 in 1 : vector<20x15x128xf32>, vector<20x1x128xf32> -> vector<20x16x128xf32>
    %10 = tpu.concatenate %6, %3, %9 in 2 : vector<20x16x128xf32>, vector<20x16x128xf32>, vector<20x16x128xf32> -> vector<20x16x384xf32>
    %11 = arith.truncf %10 : vector<20x16x384xf32> to vector<20x16x384xbf16>
    %cst_3 = arith.constant 0.000000e+00 : f32
    %12 = vector.broadcast %cst_3 : f32 to vector<288x128xf32>
    %13 = vector.extract_strided_slice %11 {offsets = [0, 0, 0], sizes = [18, 16, 384], strides = [1, 1, 1]} : vector<20x16x384xbf16> to vector<18x16x384xbf16>
    %14 = vector.shape_cast %13 : vector<18x16x384xbf16> to vector<288x384xbf16>
    %c0_4 = arith.constant 0 : index
    %c0_5 = arith.constant 0 : index
    %c0_6 = arith.constant 0 : index
    %15 = vector.load %arg3[%c0_4, %c0_5, %c0_6] : memref<3x384x128xbf16, #tpu.memory_space<vmem>>, vector<1x384x128xbf16>
    %16 = vector.shape_cast %15 : vector<1x384x128xbf16> to vector<384x128xbf16>
    %cst_7 = arith.constant dense<0.000000e+00> : vector<288x128xf32>
    %17 = tpu.matmul %14, %16, %cst_7 {dimension_numbers = #tpu.dot_dimension_numbers<[1], [0], [0], [1], [0, 0, 1, 1], [], []>} : vector<288x384xbf16>, vector<384x128xbf16>, vector<288x128xf32> -> vector<288x128xf32>
    %18 = arith.addf %12, %17 : vector<288x128xf32>
    %19 = vector.extract_strided_slice %11 {offsets = [1, 0, 0], sizes = [18, 16, 384], strides = [1, 1, 1]} : vector<20x16x384xbf16> to vector<18x16x384xbf16>
    %20 = vector.shape_cast %19 : vector<18x16x384xbf16> to vector<288x384xbf16>
    %c1 = arith.constant 1 : index
    %c0_8 = arith.constant 0 : index
    %c0_9 = arith.constant 0 : index
    %21 = vector.load %arg3[%c1, %c0_8, %c0_9] : memref<3x384x128xbf16, #tpu.memory_space<vmem>>, vector<1x384x128xbf16>
    %22 = vector.shape_cast %21 : vector<1x384x128xbf16> to vector<384x128xbf16>
    %cst_10 = arith.constant dense<0.000000e+00> : vector<288x128xf32>
    %23 = tpu.matmul %20, %22, %cst_10 {dimension_numbers = #tpu.dot_dimension_numbers<[1], [0], [0], [1], [0, 0, 1, 1], [], []>} : vector<288x384xbf16>, vector<384x128xbf16>, vector<288x128xf32> -> vector<288x128xf32>
    %24 = arith.addf %18, %23 : vector<288x128xf32>
    %25 = vector.extract_strided_slice %11 {offsets = [2, 0, 0], sizes = [18, 16, 384], strides = [1, 1, 1]} : vector<20x16x384xbf16> to vector<18x16x384xbf16>
    %26 = vector.shape_cast %25 : vector<18x16x384xbf16> to vector<288x384xbf16>
    %c2 = arith.constant 2 : index
    %c0_11 = arith.constant 0 : index
    %c0_12 = arith.constant 0 : index
    %27 = vector.load %arg3[%c2, %c0_11, %c0_12] : memref<3x384x128xbf16, #tpu.memory_space<vmem>>, vector<1x384x128xbf16>
    %28 = vector.shape_cast %27 : vector<1x384x128xbf16> to vector<384x128xbf16>
    %cst_13 = arith.constant dense<0.000000e+00> : vector<288x128xf32>
    %29 = tpu.matmul %26, %28, %cst_13 {dimension_numbers = #tpu.dot_dimension_numbers<[1], [0], [0], [1], [0, 0, 1, 1], [], []>} : vector<288x384xbf16>, vector<384x128xbf16>, vector<288x128xf32> -> vector<288x128xf32>
    %30 = arith.addf %24, %29 : vector<288x128xf32>
    %c0_14 = arith.constant 0 : index
    %c0_15 = arith.constant 0 : index
    %31 = vector.load %arg5[%c0_14, %c0_15] : memref<2x128xf32, #tpu.memory_space<vmem>>, vector<1x128xf32>
    %32 = vector.broadcast %31 : vector<1x128xf32> to vector<288x128xf32>
    %33 = arith.addf %30, %32 : vector<288x128xf32>
    %cst_16 = arith.constant 0.000000e+00 : f32
    %34 = vector.broadcast %cst_16 : f32 to vector<288x128xf32>
    %35 = arith.maximumf %33, %34 : vector<288x128xf32>
    %36 = vector.shape_cast %35 : vector<288x128xf32> to vector<18x16x128xf32>
    %37 = tpu.iota {dimensions = array<i32: 0>} : vector<18x1x1xi32>
    %c1_i32 = arith.constant 1 : i32
    %38 = arith.subi %0, %c1_i32 : i32
    %39 = vector.broadcast %38 : i32 to vector<18x1x1xi32>
    %40 = arith.addi %37, %39 : vector<18x1x1xi32>
    %c0_i32 = arith.constant 0 : i32
    %41 = vector.broadcast %c0_i32 : i32 to vector<18x1x1xi32>
    %42 = arith.cmpi sge, %40, %41 : vector<18x1x1xi32>
    %c15_i32 = arith.constant 15 : i32
    %43 = vector.broadcast %c15_i32 : i32 to vector<18x1x1xi32>
    %44 = arith.cmpi sle, %40, %43 : vector<18x1x1xi32>
    %45 = arith.andi %42, %44 : vector<18x1x1xi1>
    %cst_17 = arith.constant 0.000000e+00 : f32
    %46 = vector.shape_cast %45 : vector<18x1x1xi1> to vector<18x1x1xi1>
    %47 = vector.broadcast %46 : vector<18x1x1xi1> to vector<18x16x128xi1>
    %48 = vector.broadcast %cst_17 : f32 to vector<18x16x128xf32>
    %49 = arith.select %47, %36, %48 : vector<18x16x128xi1>, vector<18x16x128xf32>
    %cst_18 = arith.constant 0.000000e+00 : f32
    %50 = vector.broadcast %cst_18 : f32 to vector<18x1x128xf32>
    %51 = vector.extract_strided_slice %49 {offsets = [0, 0, 0], sizes = [18, 15, 128], strides = [1, 1, 1]} : vector<18x16x128xf32> to vector<18x15x128xf32>
    %52 = tpu.concatenate %50, %51 in 1 : vector<18x1x128xf32>, vector<18x15x128xf32> -> vector<18x16x128xf32>
    %cst_19 = arith.constant 0.000000e+00 : f32
    %53 = vector.broadcast %cst_19 : f32 to vector<18x1x128xf32>
    %54 = vector.extract_strided_slice %49 {offsets = [0, 1, 0], sizes = [18, 15, 128], strides = [1, 1, 1]} : vector<18x16x128xf32> to vector<18x15x128xf32>
    %55 = tpu.concatenate %54, %53 in 1 : vector<18x15x128xf32>, vector<18x1x128xf32> -> vector<18x16x128xf32>
    %56 = tpu.concatenate %52, %49, %55 in 2 : vector<18x16x128xf32>, vector<18x16x128xf32>, vector<18x16x128xf32> -> vector<18x16x384xf32>
    %57 = arith.truncf %56 : vector<18x16x384xf32> to vector<18x16x384xbf16>
    %cst_20 = arith.constant 0.000000e+00 : f32
    %58 = vector.broadcast %cst_20 : f32 to vector<256x128xf32>
    %59 = vector.extract_strided_slice %57 {offsets = [0, 0, 0], sizes = [16, 16, 384], strides = [1, 1, 1]} : vector<18x16x384xbf16> to vector<16x16x384xbf16>
    %60 = vector.shape_cast %59 : vector<16x16x384xbf16> to vector<256x384xbf16>
    %c0_21 = arith.constant 0 : index
    %c0_22 = arith.constant 0 : index
    %c0_23 = arith.constant 0 : index
    %61 = vector.load %arg4[%c0_21, %c0_22, %c0_23] : memref<3x384x128xbf16, #tpu.memory_space<vmem>>, vector<1x384x128xbf16>
    %62 = vector.shape_cast %61 : vector<1x384x128xbf16> to vector<384x128xbf16>
    %cst_24 = arith.constant dense<0.000000e+00> : vector<256x128xf32>
    %63 = tpu.matmul %60, %62, %cst_24 {dimension_numbers = #tpu.dot_dimension_numbers<[1], [0], [0], [1], [0, 0, 1, 1], [], []>} : vector<256x384xbf16>, vector<384x128xbf16>, vector<256x128xf32> -> vector<256x128xf32>
    %64 = arith.addf %58, %63 : vector<256x128xf32>
    %65 = vector.extract_strided_slice %57 {offsets = [1, 0, 0], sizes = [16, 16, 384], strides = [1, 1, 1]} : vector<18x16x384xbf16> to vector<16x16x384xbf16>
    %66 = vector.shape_cast %65 : vector<16x16x384xbf16> to vector<256x384xbf16>
    %c1_25 = arith.constant 1 : index
    %c0_26 = arith.constant 0 : index
    %c0_27 = arith.constant 0 : index
    %67 = vector.load %arg4[%c1_25, %c0_26, %c0_27] : memref<3x384x128xbf16, #tpu.memory_space<vmem>>, vector<1x384x128xbf16>
    %68 = vector.shape_cast %67 : vector<1x384x128xbf16> to vector<384x128xbf16>
    %cst_28 = arith.constant dense<0.000000e+00> : vector<256x128xf32>
    %69 = tpu.matmul %66, %68, %cst_28 {dimension_numbers = #tpu.dot_dimension_numbers<[1], [0], [0], [1], [0, 0, 1, 1], [], []>} : vector<256x384xbf16>, vector<384x128xbf16>, vector<256x128xf32> -> vector<256x128xf32>
    %70 = arith.addf %64, %69 : vector<256x128xf32>
    %71 = vector.extract_strided_slice %57 {offsets = [2, 0, 0], sizes = [16, 16, 384], strides = [1, 1, 1]} : vector<18x16x384xbf16> to vector<16x16x384xbf16>
    %72 = vector.shape_cast %71 : vector<16x16x384xbf16> to vector<256x384xbf16>
    %c2_29 = arith.constant 2 : index
    %c0_30 = arith.constant 0 : index
    %c0_31 = arith.constant 0 : index
    %73 = vector.load %arg4[%c2_29, %c0_30, %c0_31] : memref<3x384x128xbf16, #tpu.memory_space<vmem>>, vector<1x384x128xbf16>
    %74 = vector.shape_cast %73 : vector<1x384x128xbf16> to vector<384x128xbf16>
    %cst_32 = arith.constant dense<0.000000e+00> : vector<256x128xf32>
    %75 = tpu.matmul %72, %74, %cst_32 {dimension_numbers = #tpu.dot_dimension_numbers<[1], [0], [0], [1], [0, 0, 1, 1], [], []>} : vector<256x384xbf16>, vector<384x128xbf16>, vector<256x128xf32> -> vector<256x128xf32>
    %76 = arith.addf %70, %75 : vector<256x128xf32>
    %77 = vector.extract_strided_slice %3 {offsets = [2, 0, 0], sizes = [16, 16, 128], strides = [1, 1, 1]} : vector<20x16x128xf32> to vector<16x16x128xf32>
    %78 = vector.shape_cast %77 : vector<16x16x128xf32> to vector<256x128xf32>
    %c1_33 = arith.constant 1 : index
    %c0_34 = arith.constant 0 : index
    %79 = vector.load %arg5[%c1_33, %c0_34] : memref<2x128xf32, #tpu.memory_space<vmem>>, vector<1x128xf32>
    %80 = vector.broadcast %79 : vector<1x128xf32> to vector<256x128xf32>
    %81 = arith.addf %76, %80 : vector<256x128xf32>
    %82 = arith.addf %81, %78 : vector<256x128xf32>
    %cst_35 = arith.constant 0.000000e+00 : f32
    %83 = vector.broadcast %cst_35 : f32 to vector<256x128xf32>
    %84 = arith.maximumf %82, %83 : vector<256x128xf32>
    %85 = vector.shape_cast %84 : vector<256x128xf32> to vector<16x16x128xf32>
    %c0_36 = arith.constant 0 : index
    %c0_37 = arith.constant 0 : index
    %c0_38 = arith.constant 0 : index
    %c0_39 = arith.constant 0 : index
    %86 = vector.load %arg6[%c0_36, %c0_37, %c0_38, %c0_39] : memref<1x16x16x128xf32, #tpu.memory_space<vmem>>, vector<1x16x16x128xf32>
    %87 = vector.shape_cast %86 : vector<1x16x16x128xf32> to vector<16x16x128xf32>
    %88 = vector.shape_cast %85 : vector<16x16x128xf32> to vector<1x16x16x128xf32>
    tpu.vector_store %arg6[%c0_36, %c0_37, %c0_38, %c0_39], %88 {strides = array<i32>} : memref<1x16x16x128xf32, #tpu.memory_space<vmem>>, vector<1x16x16x128xf32>,
    return
  }
  func.func @transform_0(%arg0: i32, %arg1: i32) -> (i32, i32, i32, i32) {
    %c0_i32 = arith.constant 0 : i32
    %c0_i32_0 = arith.constant 0 : i32
    %c0_i32_1 = arith.constant 0 : i32
    %c0_i32_2 = arith.constant 0 : i32
    return %arg0, %c0_i32, %c0_i32_0, %c0_i32_1 : i32, i32, i32, i32
  }
  func.func @transform_1(%arg0: i32, %arg1: i32) -> (i32, i32, i32) {
    %c0_i32 = arith.constant 0 : i32
    %c0_i32_0 = arith.constant 0 : i32
    %c0_i32_1 = arith.constant 0 : i32
    %c0_i32_2 = arith.constant 0 : i32
    return %c0_i32, %c0_i32_0, %c0_i32_1 : i32, i32, i32
  }
  func.func @transform_2(%arg0: i32, %arg1: i32) -> (i32, i32, i32) {
    %c0_i32 = arith.constant 0 : i32
    %c0_i32_0 = arith.constant 0 : i32
    %c0_i32_1 = arith.constant 0 : i32
    %c0_i32_2 = arith.constant 0 : i32
    return %c0_i32, %c0_i32_0, %c0_i32_1 : i32, i32, i32
  }
  func.func @transform_3(%arg0: i32, %arg1: i32) -> (i32, i32) {
    %c0_i32 = arith.constant 0 : i32
    %c0_i32_0 = arith.constant 0 : i32
    %c0_i32_1 = arith.constant 0 : i32
    return %c0_i32, %c0_i32_0 : i32, i32
  }
  func.func @transform_4(%arg0: i32, %arg1: i32) -> (i32, i32, i32, i32) {
    %c0_i32 = arith.constant 0 : i32
    %c0_i32_0 = arith.constant 0 : i32
    %c0_i32_1 = arith.constant 0 : i32
    return %arg0, %arg1, %c0_i32, %c0_i32_0 : i32, i32, i32, i32
  }
}

</mosaic_0001>

<bundles_post_ra>
// kernel: tpu_custom_call.1
= control target key start
LH: loop header
LB: loop body
LE: loop exit
PB: predicated region body
PF: predicated region fallthrough
CT: control target
= control target key end

     0   :  { %9 = vsyncpa [#allocation3], 0  ;;  %s9588_s0 = inlined_call_operand.hbm [shape: f32[2,20,16,128], index: 0, kind: input, shape index: {}]   ;;  %s9589_s1 = inlined_call_operand.hbm [shape: bf16[3,384,128], index: 1, kind: input, shape index: {}]   ;;  %s9590_s2 = inlined_call_operand.hbm [shape: bf16[3,384,128], index: 2, kind: input, shape index: {}]   ;;  %s9591_s3 = inlined_call_operand.vmem [shape: f32[2,128], index: 3, kind: input, shape index: {}]   ;;  %s9592_s4 = inlined_call_operand.hbm [shape: f32[2,16,16,128], index: 4, kind: output, shape index: {}]  }
   0x1   :  { %11 = vsyncpa [#allocation3 + $0x1], 0 }
   0x2   :  { %12 = vsyncpa [#allocation6], 0 }
   0x3   :  { %13 = vsyncpa [#allocation4], 0 }
   0x4   :  { %15 = vsyncpa [#allocation4 + $0x1], 0  ;;  %s7021_s15 = smov 0   ;;  %s7023_s16 = smov 0  }
   0x5   :  { %s7025_s17 = smov 0   ;;  %s7027_s18 = smov 0  }
   0x6   :  { %s7029_s19 = smov 0   ;;  %s7031_s20 = smov 0  }
   0x7 LB: > { %s4681_s21 = sadd.s32 4294967295, %s6980_s20   ;;  %s4682_s22 = sadd.s32 4294967294, %s6980_s20   ;;  %s6980_s20 = sphi %s7031_s20, %s21_s20   ;;  %s6976_s19 = sphi %s7029_s19, %s9742_s19   ;;  %s6972_s18 = sphi %s7027_s18, %s9741_s18   ;;  %s6968_s17 = sphi %s7025_s17, %s9740_s17   ;;  %s6964_s16 = sphi %s7023_s16, %s9739_s16   ;;  %s6960_s15 = sphi %s7021_s15, %s9738_s15  }
   0x8   : > { %p53_p0 = scmp.ne.s32.totalorder %s6964_s16, %s6960_s15  ;;  %p7055_p1 = scmp.eq.s32.totalorder %s4681_s21, 0 }
   0x9   : > { %p7059_p2 = scmp.eq.s32.totalorder %s4681_s21, 1  ;;  %p148_p3 = scmp.eq.s32.totalorder %s4682_s22, 1 }
   0xa   : > { %s9634_s23 = scalar_select %p7055_p1, 1, 0 }
   0xb   : > { %p7065_p4 = por %p7055_p1, %p53_p0  ;;  %p4683_p5 = scmp.ge.s32.totalorder %s6980_s20, 1 }
   0xc   : > { %p7070_p6 = por %p148_p3, %p53_p0  ;;  %p155_p7 = scmp.lt.s32.totalorder %s6980_s20, 3 }
   0xd   : > { %s9636_s25 = scalar_select %p7065_p4, 1, 0 }
   0xe   : > { %s9637_s26 = scalar_select %p7070_p6, 1, 0 }
   0xf   : > { %p7075_p8 = pnand %p4683_p5, %p155_p7  ;;  %s6982_s28 = smov [#allocation5]  }
  0x10   : > { %s167_s29 = sshll.u32 %s6982_s28, 4  ;;  %s6983_s5 = smov [#allocation7]   ;;  %s7079_s29 = int_to_ptr.vmem [resolvable:$true] %s167_s29 }
  0x11   : > { %p6551_p9 = pneg %p7075_p8  ;;  %s180_s6 = sshll.u32 %s6983_s5, 4  ;;  %s7090_s6 = int_to_ptr.vmem [resolvable:$true] %s180_s6 }
  0x12   : > { %s6808_s9 = scalar_lea.hbm %s9589_s1, 9216 }
  0x13   : > { %p7086_p11 = pnand %p6551_p9, %p7055_p1  ;;  %p6809_p12 = scmp.ne.s32.totalorder %s9589_s1, %s6808_s9 }
  0x14   : > { %p6815_p5 = scmp.lt.u32.totalorder %s6808_s9, %s9589_s1 }
  0x15   : > { %p6810_p13 = pneg %p7086_p11 }
  0x17   : > { %p6811_p0 = pnand %p6810_p13, %p6809_p12 }
  0x19   : > { %p6812_p3 = pneg %p6811_p0 }
  0x1b   : > { %p6817_p7 = pnand %p6815_p5, %p6812_p3 }
  0x1d   : > { %6820 = shalt.err (!%p6817_p7)
}
  0x1e   : > { %s6821_s14 = scalar_lea.vmem %s7079_s29, 9216  ;;  %p6829_p1 = scmp.lt.s32.totalorder %s7079_s29, %s7079_s29 }
  0x1f   : > { %p6822_p9 = scmp.ne.s32.totalorder %s7079_s29, %s6821_s14  ;;  %p6830_p12 = scmp.lt.s32.totalorder %s6821_s14, %s6821_s14 }
  0x21   : > { %p6824_p10 = pnand %p6822_p9, %p6810_p13  ;;  %p6831_p0 = por %p6830_p12, %p6829_p1 }
  0x23   : > { %p6825_p6 = pneg %p6824_p10 }
  0x25   : > { %p6832_p4 = pnand %p6831_p0, %p6825_p6 }
  0x27   : > { %6835 = shalt.err (!%p6832_p4)
}
  0x28   : > { %s6984_s21 = smov 64   ;;  %s6985_s22 = smov 4  }
  0x29   : > { %6554 = dma.hbm_to_vmem [thread:$0]  (!%p7086_p11), %s9589_s1, 9216, %s7079_s29, [#allocation6], %s6984_s21, %s6984_s21, %s6985_s22  }
  0x2a   : > { %s6836_s9 = scalar_lea.hbm %s9590_s2, 9216 }
  0x2b   : > { %p6837_p1 = scmp.ne.s32.totalorder %s9590_s2, %s6836_s9  ;;  %p6843_p10 = scmp.lt.u32.totalorder %s6836_s9, %s9590_s2 }
  0x2d   : > { %p6839_p4 = pnand %p6837_p1, %p6810_p13 }
  0x2f   : > { %p6840_p6 = pneg %p6839_p4 }
  0x31   : > { %p6845_p3 = pnand %p6843_p10, %p6840_p6 }
  0x33   : > { %6848 = shalt.err (!%p6845_p3)
}
  0x34   : > { %s6849_s29 = scalar_lea.vmem %s7090_s6, 9216  ;;  %p6857_p12 = scmp.lt.s32.totalorder %s7090_s6, %s7090_s6 }
  0x35   : > { %p6850_p5 = scmp.ne.s32.totalorder %s7090_s6, %s6849_s29  ;;  %p6858_p0 = scmp.lt.s32.totalorder %s6849_s29, %s6849_s29 }
  0x37   : > { %p6852_p7 = pnand %p6850_p5, %p6810_p13  ;;  %p6859_p1 = por %p6858_p0, %p6857_p12 }
  0x39   : > { %p6853_p9 = pneg %p6852_p7 }
  0x3b   : > { %p6860_p4 = pnand %p6859_p1, %p6853_p9 }
  0x3d   : > { %6863 = shalt.err (!%p6860_p4)
}
  0x3e   : > { %6557 = dma.hbm_to_vmem [thread:$0]  (!%p7086_p11), %s9590_s2, 9216, %s7090_s6, [#allocation6], %s6984_s21, %s6984_s21, %s6985_s22  }
  0x3f   : > { %s33_s5 = sadd.s32 1, %s6976_s19  ;;  %s40_s7 = sadd.s32 1, %s6968_s17 }
  0x40   : > { %p35_p13 = scmp.ge.s32.totalorder %s33_s5, 2  ;;  %p47_p6 = scmp.ne.s32.totalorder %s6968_s17, %s6964_s16 }
  0x41   : > { %p48_p10 = scmp.eq.s32.totalorder %s6980_s20, 0  ;;  %p6568_p3 = scmp.lt.s32.totalorder %s6980_s20, 2 }
  0x42   : > { %s9744_s5 = smov (%p35_p13, %s33_s5), 0  ;;  %p7154_p7 = por %p7059_p2, %p47_p6 }
  0x43   : > { %p49_p5 = por %p48_p10, %p47_p6  ;;  %s37_s8 = ssub.s32 %s6976_s19, %s9744_s5 }
  0x44   : > { %s9640_s30 = scalar_select %p7154_p7, 1, 0 }
  0x45   : > { %s197_s9 = sand.u32 1, %s6968_s17   ;;  %p38_p9 = scmp.eq.s32.totalorder %s37_s8, 0 }
  0x46   : > { %s6536_s6 = smul.u32 320, %s197_s9  ;;  %p7161_p11 = pnand %p6568_p3, %p49_p5 }
  0x47   : > { %s7166_s22 = scalar_select %p38_p9, %s6968_s17, %s40_s7  }
  0x48   : > { %s6537_s10 = smul.u32 5120, %s6976_s19  ;;  %s201_s11 = scalar_lea.vmem [#allocation2], %s6536_s6 }
  0x49   : > { %s208_s12 = sshll.u32 %s201_s11, 4  ;;  %s7176_s14 = scalar_lea.sflag [#allocation3], %s197_s9  ;;  %s7174_s12 = int_to_ptr.vmem [resolvable:$true] %s208_s12 }
  0x4a   : > { %s7172_s29 = scalar_lea.hbm %s9588_s0, %s6537_s10  ;;  %p6866_p12 = pneg %p7161_p11 }
  0x4b   : > { %s6864_s28 = scalar_lea.hbm %s7172_s29, 5120  ;;  %s6869_s6 = scalar_lea.hbm %s9588_s0, 10240 }
  0x4c   : > { %p6865_p2 = scmp.ne.s32.totalorder %s7172_s29, %s6864_s28  ;;  %p6870_p4 = scmp.lt.u32.totalorder %s7172_s29, %s9588_s0 }
  0x4d   : > { %p6871_p13 = scmp.lt.u32.totalorder %s6869_s6, %s6864_s28  ;;  %p6873_p10 = scmp.lt.u32.totalorder %s6864_s28, %s7172_s29 }
  0x4e   : > { %p6867_p0 = pnand %p6866_p12, %p6865_p2 }
  0x4f   : > { %p6872_p6 = por %p6871_p13, %p6870_p4 }
  0x50   : > { %p6868_p1 = pneg %p6867_p0 }
  0x51   : > { %p6874_p3 = por %p6873_p10, %p6872_p6 }
  0x53   : > { %p6875_p5 = pnand %p6874_p3, %p6868_p1 }
  0x55   : > { %6878 = shalt.err (!%p6875_p5)
}
  0x56   : > { %s6879_s9 = scalar_lea.vmem %s7174_s12, 5120  ;;  %s6986_s24 = smov [#allocation2]  }
  0x57   : > { %p6880_p9 = scmp.ne.s32.totalorder %s7174_s12, %s6879_s9  ;;  %s6884_s13 = sshll.u32 %s6986_s24, 4  ;;  %s6885_s13 = int_to_ptr.vmem [resolvable:$false] %s6884_s13 }
  0x58   : > { %s6886_s7 = scalar_lea.vmem %s6885_s13, 10240  ;;  %p6887_p7 = scmp.lt.s32.totalorder %s7174_s12, %s6885_s13 }
  0x59   : > { %p6882_p2 = pnand %p6880_p9, %p6866_p12  ;;  %p6888_p4 = scmp.lt.s32.totalorder %s6886_s7, %s6879_s9 }
  0x5b   : > { %p6883_p0 = pneg %p6882_p2  ;;  %p6889_p13 = por %p6888_p4, %p6887_p7 }
  0x5d   : > { %p6890_p6 = pnand %p6889_p13, %p6883_p0 }
  0x5f   : > { %6893 = shalt.err (!%p6890_p6)
}
  0x60   : > { %s6987_s28 = smov 128   ;;  %s6988_s8 = smov 8  }
  0x61   : > { %6561 = dma.hbm_to_vmem [thread:$0]  (!%p7161_p11), %s7172_s29, 5120, %s7174_s12, %s7176_s14, %s6987_s28, %s6987_s28, %s6988_s8  }
  0x62   : > { %220 = sbr.rel (%p7075_p8) target bundleno = 1229 (0x4cd), region = 36 }
  0x69   : > { %s7207_s6 = sand.u32 1, %s6964_s16   ;;  %p9642_p7 = scmp.ne.s32.totalorder %s9636_s25, 0 }
  0x6a   : > { %s6538_s10 = smul.u32 320, %s7207_s6  ;;  %s223_s11 = scalar_lea.sflag [#allocation3], %s7207_s6 }
  0x6c   : > { %s7211_s9 = scalar_lea.vmem [#allocation2], %s6538_s10 }
  0x6d   : > { %6947 = dma.done.wait (%p9642_p7), %s223_s11, 5120  }
  0x6e   : > { %6949 = vsyncadd (%p9642_p7), %s223_s11, 4294962176  ;;  %p9643_p11 = scmp.ne.s32.totalorder %s9634_s23, 0 }
  0x70   : > { %6951 = dma.done.wait (%p9643_p11), [#allocation6], 18432  }
  0x71   : > { %6953 = vsyncadd (%p9643_p11), [#allocation6], 4294948864  ;;  %v9613_v0 = vmov 0   ;;  %v6632_v1 = vld [vmem:[#allocation5 + $0xc0] sm:$0xff]   ;;  %v6633_v2 = vld [vmem:[#allocation5 + $0xc8] sm:$0xff]   ;;  %vm465_vm0 = vcmask 1046528  }
  0x72   : > { %887 = vmatprep.subr.bf16.mxu0 %v9613_v0  ;;  %v6635_v3 = vld [vmem:[#allocation5 + $0x140] sm:$0xff]   ;;  %v6637_v4 = vld [vmem:[#allocation5 + $0x148] sm:$0xff]   ;;  %v6634_v5 = vld [vmem:[#allocation5 + $0xd0] sm:$0xff]   ;;  %vm6990_vm1 = vmmov 1   ;;  %vm344_vm3 = vcmask 1040384   ;;  %s4691_s12 = sshll.u32 %s7207_s6, 8 }
  0x73   : > { %888 = vmatpush1.bf16.msra.mxu0 %v6632_v1  ;;  %6044 = vmatprep.subr.bf16.mxu1 %v6635_v3  ;;  %v6639_v6 = vld [vmem:[#allocation5 + $0x150] sm:$0xff]   ;;  %v6636_v7 = vld [vmem:[#allocation5 + $0xd8] sm:$0xff]   ;;  %v6638_v9 = vld [vmem:[#allocation5 + $0xe0] sm:$0xff]   ;;  %s9414_s29 = scalar_lea.vmem [#allocation8], %s4691_s12  ;;  %s5557_s14 = sshll.u32 %s6972_s18, 12 }
  0x74   : > { %889 = vmatprep.subr.bf16.mxu0 %v9613_v0  ;;  %6045 = vmatpush3.bf16.msra.mxu1 %v6635_v3  ;;  %v6641_v8 = vld [vmem:[#allocation5 + $0x158] sm:$0xff]   ;;  %v6643_v10 = vld [vmem:[#allocation5 + $0x160] sm:$0xff]   ;;  %v6640_v11 = vld [vmem:[#allocation5 + $0xe8] sm:$0xff]   ;;  %s4576_s24 = sshll.u32 %s9414_s29, 4  ;;  %s9534_s28 = scalar_lea.hbm %s9592_s4, %s5557_s14  ;;  %s9536_s24 = int_to_ptr.vmem [resolvable:$true] %s4576_s24 }
  0x75   : > { %6046 = vmatprep.subr.bf16.mxu1 %v6637_v4  ;;  %v6645_v12 = vld [vmem:[#allocation5 + $0x168] sm:$0xff]   ;;  %v7228_v13 = vld [vmem:[%s7211_s9 + $0x10] sm:$0xff]  ;;  %v7231_v14 = vld [vmem:[%s7211_s9 + $0x18] sm:$0xff]  ;;  %s4560_s18 = scalar_lea.sflag [#allocation4], %s7207_s6  ;;  %s6894_s8 = scalar_lea.vmem %s9536_s24, 4096 }
  0x76   : > { %v469_v15 = vrot.slane %v7228_v13, 1  ;;  %v470_v16 = vrot.slane %v7231_v14, 1  ;;  %vm7237_vm2 = vmpackc.low %vm465_vm0, %vm6990_vm1  ;;  %v7243_v18 = vpack.c.bf16 %v7231_v14, %v7228_v13  ;;  %v6642_v19 = vld [vmem:[#allocation5 + $0xf0] sm:$0xff]   ;;  %v7250_v23 = vld [vmem:[%s7211_s9 + $0x20] sm:$0xff]  ;;  %p6895_p8 = scmp.ne.s32.totalorder %s9536_s24, %s6894_s8  ;;  %p9735_p12 = scmp.ne.s32.totalorder %s9640_s30, 0 }
  0x77   : > { %890 = vmatpush1.bf16.msra.mxu0 %v6633_v2  ;;  %v6647_v21 = vld [vmem:[#allocation5 + $0x170] sm:$0xff]   ;;  %v7253_v24 = vld [vmem:[%s7211_s9 + $0x28] sm:$0xff]  ;;  %v6644_v25 = vld [vmem:[#allocation5 + $0xf8] sm:$0xff]   ;;  %v472_v29 = vrot.slane %v7250_v23, 1  ;;  %s6993_s10 = smov [#allocation8]  }
  0x78   : > { %891 = vmatprep.subr.bf16.mxu0 %v9613_v0  ;;  %6047 = vmatpush3.bf16.msra.mxu1 %v6637_v4  ;;  %v471_v20 = vsel %vm465_vm0, %v469_v15, %v470_v16  ;;  %v7256_v26 = vld [vmem:[%s7211_s9 + $0x30] sm:$0xff]  ;;  %v7259_v27 = vld [vmem:[%s7211_s9 + $0x38] sm:$0xff]  ;;  %v473_v30 = vrot.slane %v7253_v24, 1  ;;  %v6646_v33 = vld [vmem:[#allocation5 + $0x100] sm:$0xff]   ;;  %p6896_p1 = pnand %p6895_p8, %p9735_p12  ;;  %s6898_s11 = sshll.u32 %s6993_s10, 4  ;;  %s6899_s11 = int_to_ptr.vmem [resolvable:$false] %s6898_s11 }
  0x79   : > { %6048 = vmatprep.subr.bf16.mxu1 %v6639_v6  ;;  %v7247_v22 = vpack.c.bf16 %v470_v16, %v471_v20  ;;  %919 = vmatprep.mubr.bf16.mxu0 %v7243_v18  ;;  %v6649_v28 = vld [vmem:[#allocation5 + $0x178] sm:$0xff]   ;;  %v475_v31 = vrot.slane %v7256_v26, 1  ;;  %v476_v32 = vrot.slane %v7259_v27, 1  ;;  %v7271_v34 = vld [vmem:[%s7211_s9 + $0x40] sm:$0xff]  ;;  %v7274_v35 = vld [vmem:[%s7211_s9 + $0x48] sm:$0xff]  ;;  %p6901_p3 = scmp.lt.s32.totalorder %s9536_s24, %s6899_s11 }
  0x7a   : > { %v474_v36 = vsel %vm465_vm0, %v472_v29, %v473_v30  ;;  %v7278_v37 = vld [vmem:[%s7211_s9 + $0x50] sm:$0xff]  ;;  %v7281_v38 = vld [vmem:[%s7211_s9 + $0x58] sm:$0xff]  ;;  %v6648_v40 = vld [vmem:[#allocation5 + $0x108] sm:$0xff]   ;;  %v478_v42 = vrot.slane %v7271_v34, 1  ;;  %v479_v44 = vrot.slane %v7274_v35, 1  ;;  %p6897_p10 = pneg %p6896_p1 }
  0x7b   : > { %892 = vmatpush1.bf16.msra.mxu0 %v6634_v5  ;;  %9646 = vst [vmem:[#allocation12_spill] sm:$0xff] %v7247_v22  ;;  %6060 = vmatprep.mubr.msk.bf16.mxu1 %vm7237_vm2, %v7247_v22  ;;  %v477_v39 = vsel %vm465_vm0, %v475_v31, %v476_v32  ;;  %v7285_v41 = vpack.c.bf16 %v473_v30, %v474_v36  ;;  %v7291_v45 = vld [vmem:[#allocation5] sm:$0xff]   ;;  %v481_v46 = vrot.slane %v7278_v37, 1  ;;  %v482_v47 = vrot.slane %v7281_v38, 1  ;;  %v6650_v48 = vld [vmem:[#allocation5 + $0x110] sm:$0xff]   ;;  %v7308_v51 = vld [vmem:[%s7211_s9 + $0x68] sm:$0xff] }
  0x7c   : > { %893 = vmatprep.subr.bf16.mxu0 %v9613_v0  ;;  %6049 = vmatpush3.bf16.msra.mxu1 %v6639_v6  ;;  %v7288_v43 = vpack.c.bf16 %v476_v32, %v477_v39  ;;  %v480_v49 = vsel %vm465_vm0, %v478_v42, %v479_v44  ;;  %v7305_v50 = vld [vmem:[%s7211_s9 + $0x60] sm:$0xff]  ;;  %v7312_v52 = vld [vmem:[#allocation5 + $0x8] sm:$0xff]   ;;  %v7317_v54 = vld [vmem:[%s7211_s9 + $0x70] sm:$0xff]  ;;  %v485_v59 = vrot.slane %v7308_v51, 1  ;;  %v352_v32 = vrot.slane %v7253_v24, 7 }
  0x7d   : > { %6050 = vmatprep.subr.bf16.mxu1 %v6641_v8  ;;  %9647 = vst [vmem:[#allocation13_spill] sm:$0xff] %v7285_v41  ;;  %v483_v53 = vsel %vm465_vm0, %v481_v46, %v482_v47  ;;  %v7320_v55 = vld [vmem:[%s7211_s9 + $0x78] sm:$0xff]  ;;  %v7322_v57 = vpack.c.bf16 %v479_v44, %v480_v49  ;;  %v484_v58 = vrot.slane %v7305_v50, 1  ;;  %v7330_v61 = vld [vmem:[#allocation5 + $0x10] sm:$0xff]   ;;  %v487_v62 = vrot.slane %v7317_v54, 1  ;;  %v6652_v1 = vld [vmem:[#allocation5 + $0x120] sm:$0xff]  }
  0x7e   : > { %9648 = vst [vmem:[#allocation14_spill] sm:$0xff] %v7288_v43  ;;  %v6651_v56 = vld [vmem:[#allocation5 + $0x118] sm:$0xff]   ;;  %v7326_v60 = vpack.c.bf16 %v482_v47, %v483_v53  ;;  %v488_v63 = vrot.slane %v7320_v55, 1  ;;  %v7348_v5 = vld [vmem:[%s7211_s9 + $0x80] sm:$0xff]  ;;  %v7351_v6 = vld [vmem:[%s7211_s9 + $0x88] sm:$0xff] }
  0x7f   : > { %894 = vmatpush1.bf16.msra.mxu0 %v6636_v7  ;;  %9649 = vst [vmem:[#allocation15_spill] sm:$0xff] %v7322_v57  ;;  %v486_v2 = vsel %vm465_vm0, %v484_v58, %v485_v59  ;;  %v7344_v3 = vld [vmem:[#allocation5 + $0x18] sm:$0xff]   ;;  %v7355_v7 = vld [vmem:[%s7211_s9 + $0x90] sm:$0xff]  ;;  %v491_v15 = vrot.slane %v7351_v6, 1  ;;  %v7368_v16 = vld [vmem:[#allocation5 + $0x20] sm:$0xff]  }
  0x80   : > { %895 = vmatprep.subr.bf16.mxu0 %v9613_v0  ;;  %6051 = vmatpush3.bf16.msra.mxu1 %v6641_v8  ;;  %9650 = vst [vmem:[#allocation16_spill] sm:$0xff] %v7326_v60  ;;  %v489_v4 = vsel %vm465_vm0, %v487_v62, %v488_v63  ;;  %v7358_v8 = vld [vmem:[%s7211_s9 + $0x98] sm:$0xff]  ;;  %vm7375_vm4 = vmneg %vm344_vm3  ;;  %v7383_v30 = vld [vmem:[#allocation5 + $0x28] sm:$0xff]  }
  0x81   : > { %6052 = vmatprep.subr.bf16.mxu1 %v6643_v10  ;;  %v494_v20 = vrot.slane %v7358_v8, 1  ;;  %v7387_v31 = vld [vmem:[%s7211_s9 + $0xa0] sm:$0xff]  ;;  %v7403_v42 = vld [vmem:[%s7211_s9 + $0xb0] sm:$0xff]  ;;  %v7406_v44 = vld [vmem:[%s7211_s9 + $0xb8] sm:$0xff] }
  0x82   : > { %v7410_v46 = vld [vmem:[%s7211_s9 + $0xc0] sm:$0xff]  ;;  %v496_v53 = vrot.slane %v7387_v31, 1  ;;  %v7418_v58 = vld [vmem:[%s7211_s9 + $0xc8] sm:$0xff]  ;;  %vm7430_vm5 = vmpackc.low %vm6990_vm1, %vm7375_vm4 }
  0x83   : > { %896 = vmatpush1.bf16.msra.mxu0 %v6638_v9  ;;  %v7360_v9 = vpack.c.bf16 %v485_v59, %v486_v2 }
  0x84   : > { %897 = vmatprep.subr.bf16.mxu0 %v9613_v0  ;;  %6053 = vmatpush3.bf16.msra.mxu1 %v6643_v10  ;;  %v6654_v10 = vld [vmem:[#allocation5 + $0x128] sm:$0xff]  }
  0x85   : > { %6054 = vmatprep.subr.bf16.mxu1 %v6645_v12  ;;  %9651 = vst [vmem:[#allocation17_spill] sm:$0xff] %v7360_v9 }
  0x87   : > { %898 = vmatpush1.bf16.msra.mxu0 %v6640_v11  ;;  %v7362_v11 = vpack.c.bf16 %v488_v63, %v489_v4  ;;  %v7423_v63 = vld [vmem:[#allocation5 + $0x30] sm:$0xff]   ;;  %v500_v4 = vrot.slane %v7406_v44, 1 }
  0x88   : > { %899 = vmatprep.subr.bf16.mxu0 %v9613_v0  ;;  %6055 = vmatpush3.bf16.msra.mxu1 %v6645_v12  ;;  %v490_v12 = vrot.slane %v7348_v5, 1 }
  0x89   : > { %6056 = vmatprep.subr.bf16.mxu1 %v6647_v21  ;;  %9652 = vst [vmem:[#allocation18_spill] sm:$0xff] %v7362_v11 }
  0x8b   : > { %900 = vmatpush1.bf16.msra.mxu0 %v6642_v19  ;;  %v493_v19 = vrot.slane %v7355_v7, 1 }
  0x8c   : > { %901 = vmatprep.subr.bf16.mxu0 %v9613_v0  ;;  %6057 = vmatpush3.bf16.msra.mxu1 %v6647_v21  ;;  %v349_v21 = vrot.slane %v7231_v14, 7  ;;  %v351_v14 = vrot.slane %v7250_v23, 7 }
  0x8d   : > { %6058 = vmatprep.subr.bf16.mxu1 %v6649_v28  ;;  %v495_v36 = vsel %vm465_vm0, %v493_v19, %v494_v20  ;;  %v7443_v19 = vld [vmem:[%s7211_s9 + $0xd8] sm:$0xff] }
  0x8e   : > { %v7421_v62 = vpack.c.bf16 %v494_v20, %v495_v36 }
  0x8f   : > { %902 = vmatpush1.bf16.msra.mxu0 %v6644_v25  ;;  %v6656_v25 = vld [vmem:[#allocation5 + $0x130] sm:$0xff]  }
  0x90   : > { %903 = vmatprep.subr.bf16.mxu0 %v9613_v0  ;;  %6059 = vmatpush3.bf16.msra.mxu1 %v6649_v28  ;;  %v348_v28 = vrot.slane %v7228_v13, 7  ;;  %v492_v13 = vsel %vm465_vm0, %v490_v12, %v491_v15  ;;  %9656 = vst [vmem:[#allocation20_spill] sm:$0xff] %v7421_v62  ;;  %v503_v12 = vrot.slane %v7418_v58, 1 }
  0x91   : > { %6344 = vmatprep.subr.bf16.mxu1 %v9613_v0  ;;  %v7413_v49 = vpack.c.bf16 %v491_v15, %v492_v13  ;;  %v7440_v15 = vld [vmem:[%s7211_s9 + $0xd0] sm:$0xff]  ;;  %v7461_v13 = vld [vmem:[%s7211_s9 + $0x120] sm:$0xff] }
  0x92   : > { %v350_v59 = vsel %vm344_vm3, %v348_v28, %v349_v21  ;;  %v7450_v21 = vld [vmem:[#allocation5 + $0x38] sm:$0xff]  }
  0x93   : > { %904 = vmatpush1.bf16.msra.mxu0 %v6646_v33  ;;  %6061 = vmatmul.mubr.msk.bf16.vlgmr.msra.gmra.mrb[0].mxu1 %vm7237_vm2, %v7285_v41  ;;  %v7395_v33 = vld [vmem:[%s7211_s9 + $0xa8] sm:$0xff]  ;;  %9655 = vst [vmem:[#allocation19_spill] sm:$0xff] %v7413_v49  ;;  %v7445_v20 = vpack.c.bf16 %v350_v59, %v348_v28  ;;  %v506_v59 = vrot.slane %v7443_v19, 1  ;;  %v7606_v41 = vld [vmem:[#allocation5 + $0x60] sm:$0xff]  }
  0x94   : > { %905 = vmatprep.subr.bf16.mxu0 %v9613_v0  ;;  %6064 = vmatprep.mubr.msk.bf16.mxu1 %vm7237_vm2, %v7288_v43  ;;  %v7464_v28 = vld [vmem:[%s7211_s9 + $0x128] sm:$0xff] }
  0x95   : > { %6360 = vmatpush1.bf16.msra.mxu1 %v7291_v45  ;;  %v7481_v47 = vpack.c.bf16 %v7464_v28, %v7461_v13  ;;  %v400_v39 = vrot.slane %v7464_v28, 7 }
  0x96   : > { %6345 = vmatprep.subr.bf16.mxu1 %v9613_v0 }
  0x97   : > { %906 = vmatpush1.bf16.msra.mxu0 %v6648_v40 }
  0x98   : > { %907 = vmatprep.subr.bf16.mxu0 %v9613_v0 }
  0x99   : > { %6361 = vmatpush1.bf16.msra.mxu1 %v7312_v52 }
  0x9a   : > { %6346 = vmatprep.subr.bf16.mxu1 %v9613_v0 }
  0x9b   : > { %908 = vmatpush1.bf16.msra.mxu0 %v6650_v48  ;;  %6065 = vmatmul.mubr.msk.bf16.gmra.mrb[4].mxu1 %vm7237_vm2, %v7322_v57  ;;  %v6658_v48 = vld [vmem:[#allocation5 + $0x138] sm:$0xff]  }
  0x9c   : > { %909 = vmatprep.subr.bf16.mxu0 %v9613_v0  ;;  %6068 = vmatprep.mubr.msk.bf16.mxu1 %vm7237_vm2, %v7326_v60  ;;  %v7574_v60 = vld [vmem:[%s7211_s9 + $0x110] sm:$0xff]  ;;  %v7577_v57 = vld [vmem:[%s7211_s9 + $0x118] sm:$0xff] }
  0x9d   : > { %6362 = vmatpush1.bf16.msra.mxu1 %v7330_v61  ;;  %v517_v22 = vrot.slane %v7574_v60, 1 }
  0x9e   : > { %6347 = vmatprep.subr.bf16.mxu1 %v9613_v0 }
  0x9f   : > { %910 = vmatpush1.bf16.msra.mxu0 %v6651_v56  ;;  %v497_v56 = vrot.slane %v7395_v33, 1 }
  0xa0   : > { %911 = vmatprep.subr.bf16.mxu0 %v9613_v0 }
  0xa1   : > { %6363 = vmatpush1.bf16.msra.mxu1 %v7344_v3  ;;  %v498_v29 = vsel %vm465_vm0, %v496_v53, %v497_v56  ;;  %v505_v53 = vrot.slane %v7440_v15, 1 }
  0xa2   : > { %6348 = vmatprep.subr.bf16.mxu1 %v9613_v0 }
  0xa3   : > { %912 = vmatpush1.bf16.msra.mxu0 %v6652_v1  ;;  %6069 = vmatmul.mubr.msk.bf16.gmra.mrb[8].mxu1 %vm7237_vm2, %v7360_v9  ;;  %v499_v1 = vrot.slane %v7403_v42, 1  ;;  %v7571_v9 = vld [vmem:[%s7211_s9 + $0x108] sm:$0xff] }
  0xa4   : > { %913 = vmatprep.subr.bf16.mxu0 %v9613_v0  ;;  %6072 = vmatprep.mubr.msk.bf16.mxu1 %vm7237_vm2, %v7362_v11  ;;  %v7568_v11 = vld [vmem:[#allocation5 + $0x58] sm:$0xff]   ;;  %v515_v43 = vrot.slane %v7571_v9, 1 }
  0xa5   : > { %6364 = vmatpush1.bf16.msra.mxu1 %v7368_v16  ;;  %v501_v36 = vsel %vm465_vm0, %v499_v1, %v500_v4 }
  0xa6   : > { %6349 = vmatprep.subr.bf16.mxu1 %v9613_v0  ;;  %v7488_v1 = vpack.c.bf16 %v500_v4, %v501_v36  ;;  %v7506_v4 = vld [vmem:[%s7211_s9 + $0xe0] sm:$0xff]  ;;  %v7509_v36 = vld [vmem:[%s7211_s9 + $0xe8] sm:$0xff] }
  0xa7   : > { %914 = vmatpush1.bf16.msra.mxu0 %v6654_v10  ;;  %v502_v10 = vrot.slane %v7410_v46, 1 }
  0xa8   : > { %915 = vmatprep.subr.bf16.mxu0 %v9613_v0  ;;  %9660 = vst [vmem:[#allocation22_spill] sm:$0xff] %v7488_v1 }
  0xa9   : > { %6365 = vmatpush1.bf16.msra.mxu1 %v7383_v30 }
  0xaa   : > { %6350 = vmatprep.subr.bf16.mxu1 %v9613_v0 }
  0xab   : > { %916 = vmatpush1.bf16.msra.mxu0 %v6656_v25  ;;  %6073 = vmatmul.mubr.msk.bf16.gmra.mrb[12].mxu1 %vm7237_vm2, %v7413_v49  ;;  %v7454_v25 = vpack.c.bf16 %v7253_v24, %v7250_v23  ;;  %v7473_v24 = vpack.c.bf16 %v497_v56, %v498_v29  ;;  %v353_v56 = vsel %vm344_vm3, %v351_v14, %v352_v32  ;;  %v399_v29 = vrot.slane %v7461_v13, 7  ;;  %v7503_v32 = vld [vmem:[#allocation5 + $0x48] sm:$0xff]  }
  0xac   : > { %917 = vmatprep.subr.bf16.mxu0 %v9613_v0  ;;  %6076 = vmatprep.mubr.msk.bf16.mxu1 %vm7237_vm2, %v7421_v62  ;;  %v7498_v40 = vpack.c.bf16 %v353_v56, %v351_v14  ;;  %v504_v23 = vsel %vm465_vm0, %v502_v10, %v503_v12  ;;  %v7523_v14 = vld [vmem:[%s7211_s9 + $0xf0] sm:$0xff]  ;;  %v7526_v56 = vld [vmem:[%s7211_s9 + $0xf8] sm:$0xff]  ;;  %v9662_v10 = vrot.slane %v7256_v26, 7 }
  0xad   : > { %6366 = vmatpush1.bf16.msra.mxu1 %v7423_v63  ;;  %9659 = vst [vmem:[#allocation21_spill] sm:$0xff] %v7473_v24 }
  0xae   : > { %6351 = vmatprep.subr.bf16.mxu1 %v9613_v0 }
  0xaf   : > { %918 = vmatpush1.bf16.msra.mxu0 %v6658_v48  ;;  %v7475_v48 = vld [vmem:[#allocation5 + $0x40] sm:$0xff]  }
  0xb0   : > { %1385 = vmatprep.subr.bf16.mxu0 %v9613_v0 }
  0xb1   : > { %6367 = vmatpush1.bf16.msra.mxu1 %v7450_v21 }
  0xb2   : > { %4719 = vmatmul.mubr.msk.bf16.vlgmr.msra.gmra.mrb[0].mxu0 %vm7430_vm5, %v7445_v20  ;;  %6352 = vmatprep.subr.bf16.mxu1 %v9613_v0 }
  0xb3   : > { %1386 = vmatpush1.bf16.msra.mxu0 %v7291_v45  ;;  %927 = vmatprep.mubr.bf16.mxu0 %v7454_v25  ;;  %v401_v45 = vsel %vm344_vm3, %v399_v29, %v400_v39  ;;  %v7516_v39 = vpack.c.bf16 %v7259_v27, %v7256_v26 }
  0xb4   : > { %1387 = vmatprep.subr.bf16.mxu0 %v9613_v0  ;;  %6077 = vmatmul.mubr.msk.bf16.gmra.mrb[16].mxu1 %vm7237_vm2, %v7473_v24  ;;  %v7511_v62 = vpack.c.bf16 %v401_v45, %v399_v29  ;;  %v9661_v29 = vrot.slane %v7259_v27, 7  ;;  %v358_v24 = vrot.slane %v7274_v35, 7  ;;  %v508_v27 = vrot.slane %v7506_v4, 1 }
  0xb5   : > { %6080 = vmatprep.mubr.msk.bf16.mxu1 %vm7237_vm2, %v7488_v1  ;;  %6368 = vmatpush1.bf16.msra.mxu1 %v7475_v48  ;;  %v7540_v1 = vpack.c.bf16 %v503_v12, %v504_v23  ;;  %v361_v12 = vrot.slane %v7281_v38, 7  ;;  %v511_v23 = vrot.slane %v7523_v14, 1 }
  0xb6   : > { %6353 = vmatprep.subr.bf16.mxu1 %v9613_v0  ;;  %v356_v45 = vsel %vm344_vm3, %v9662_v10, %v9661_v29  ;;  %v509_v29 = vrot.slane %v7509_v36, 1  ;;  %v7550_v10 = vld [vmem:[#allocation5 + $0x50] sm:$0xff]  }
  0xb7   : > { %1388 = vmatpush1.bf16.msra.mxu0 %v7312_v52  ;;  %v507_v52 = vsel %vm465_vm0, %v505_v53, %v506_v59  ;;  %9663 = vst [vmem:[#allocation23_spill] sm:$0xff] %v7540_v1 }
  0xb8   : > { %1389 = vmatprep.subr.bf16.mxu0 %v9613_v0  ;;  %v7546_v53 = vpack.c.bf16 %v506_v59, %v507_v52  ;;  %v7559_v59 = vld [vmem:[%s7211_s9 + $0x100] sm:$0xff]  ;;  %v9665_v52 = vrot.slane %v7256_v26, 7  ;;  %v510_v26 = vsel %vm465_vm0, %v508_v27, %v509_v29  ;;  %v363_v27 = vrot.slane %v7305_v50, 7 }
  0xb9   : > { %6369 = vmatpush1.bf16.msra.mxu1 %v7503_v32 }
  0xba   : > { %4723 = vmatmul.mubr.msk.bf16.gmra.mrb[4].mxu0 %vm7430_vm5, %v7498_v40  ;;  %9664 = vst [vmem:[#allocation24_spill] sm:$0xff] %v7546_v53  ;;  %6354 = vmatprep.subr.bf16.mxu1 %v9613_v0  ;;  %v7563_v49 = vpack.c.bf16 %v356_v45, %v9665_v52  ;;  %v9666_v52 = vmov 0  }
  0xbb   : > { %935 = vmatprep.mubr.bf16.mxu0 %v7516_v39  ;;  %1390 = vmatpush1.bf16.msra.mxu0 %v7330_v61  ;;  %v512_v61 = vrot.slane %v7526_v56, 1 }
  0xbc   : > { %1391 = vmatprep.subr.bf16.mxu0 %v9613_v0  ;;  %6081 = vmatmul.mubr.msk.bf16.gmra.mrb[20].mxu1 %vm7237_vm2, %v7540_v1  ;;  %v7581_v0 = vpack.c.bf16 %v7274_v35, %v7271_v34  ;;  %v9667_v35 = vrot.slane %v7271_v34, 7  ;;  %v7598_v1 = vpack.c.bf16 %v509_v29, %v510_v26  ;;  %v7621_v26 = vld [vmem:[#allocation5 + $0x68] sm:$0xff]  }
  0xbd   : > { %6084 = vmatprep.mubr.msk.bf16.mxu1 %vm7237_vm2, %v7546_v53  ;;  %6370 = vmatpush1.bf16.msra.mxu1 %v7550_v10  ;;  %v513_v45 = vsel %vm465_vm0, %v511_v23, %v512_v61 }
  0xbe   : > { %6355 = vmatprep.subr.bf16.mxu1 %v9666_v52  ;;  %v359_v53 = vsel %vm344_vm3, %v9667_v35, %v358_v24  ;;  %v7603_v23 = vpack.c.bf16 %v512_v61, %v513_v45  ;;  %v518_v24 = vrot.slane %v7577_v57, 1  ;;  %v9669_v29 = vmov %v9667_v35 }
  0xbf   : > { %1392 = vmatpush1.bf16.msra.mxu0 %v7344_v3  ;;  %v514_v3 = vrot.slane %v7559_v59, 1  ;;  %v7616_v61 = vpack.c.bf16 %v359_v53, %v9669_v29  ;;  %v364_v53 = vrot.slane %v7308_v51, 7  ;;  %v520_v35 = vrot.slane %v7461_v13, 1 }
  0xc0   : > { %1393 = vmatprep.subr.bf16.mxu0 %v9666_v52  ;;  %9668 = vst [vmem:[#allocation25_spill] sm:$0xff] %v7603_v23  ;;  %v519_v34 = vsel %vm465_vm0, %v517_v22, %v518_v24  ;;  %v9670_v22 = vrot.slane %v7278_v37, 7 }
  0xc1   : > { %6371 = vmatpush1.bf16.msra.mxu1 %v7568_v11  ;;  %v516_v45 = vsel %vm465_vm0, %v514_v3, %v515_v43  ;;  %v7644_v3 = vld [vmem:[#allocation5 + $0x70] sm:$0xff]  }
  0xc2   : > { %4727 = vmatmul.mubr.msk.bf16.gmra.mrb[8].mxu0 %vm7430_vm5, %v7563_v49  ;;  %6356 = vmatprep.subr.bf16.mxu1 %v9666_v52  ;;  %v362_v29 = vsel %vm344_vm3, %v9670_v22, %v361_v12  ;;  %v7667_v12 = vpack.c.bf16 %v7308_v51, %v7305_v50  ;;  %v366_v50 = vrot.slane %v7317_v54, 7  ;;  %v367_v51 = vrot.slane %v7320_v55, 7 }
  0xc3   : > { %943 = vmatprep.mubr.bf16.mxu0 %v7581_v0  ;;  %1394 = vmatpush1.bf16.msra.mxu0 %v7368_v16  ;;  %v7625_v16 = vpack.c.bf16 %v7281_v38, %v7278_v37  ;;  %v7639_v38 = vpack.c.bf16 %v515_v43, %v516_v45  ;;  %v9671_v43 = vmov %v9670_v22  ;;  %v7697_v45 = vpack.c.bf16 %v7320_v55, %v7317_v54 }
  0xc4   : > { %1395 = vmatprep.subr.bf16.mxu0 %v9666_v52  ;;  %6085 = vmatmul.mubr.msk.bf16.gmra.mrb[24].mxu1 %vm7237_vm2, %v7598_v1  ;;  %v7658_v13 = vpack.c.bf16 %v362_v29, %v9671_v43  ;;  %v368_v54 = vsel %vm344_vm3, %v366_v50, %v367_v51  ;;  %v7741_v22 = vpack.c.bf16 %v7358_v8, %v7355_v7  ;;  %v376_v29 = vrot.slane %v7395_v33, 7  ;;  %v6676_v43 = vld [vmem:[#allocation5 + $0x1a0] sm:$0xff]   ;;  %v6678_v51 = vld [vmem:[#allocation5 + $0x1b0] sm:$0xff]  }
  0xc5   : > { %6088 = vmatprep.mubr.msk.bf16.mxu1 %vm7237_vm2, %v7603_v23  ;;  %6372 = vmatpush1.bf16.msra.mxu1 %v7606_v41  ;;  %v7650_v23 = vpack.c.bf16 %v518_v24, %v519_v34  ;;  %v6672_v34 = vld [vmem:[#allocation5 + $0x180] sm:$0xff]   ;;  %v7711_v55 = vpack.c.bf16 %v368_v54, %v366_v50  ;;  %v7766_v50 = vpack.c.bf16 %v7395_v33, %v7387_v31  ;;  %v379_v33 = vrot.slane %v7406_v44, 7 }
  0xc6   : > { %6357 = vmatprep.subr.bf16.mxu1 %v9666_v52  ;;  %v381_v54 = vrot.slane %v7410_v46, 7 }
  0xc7   : > { %1396 = vmatpush1.bf16.msra.mxu0 %v7383_v30  ;;  %v521_v30 = vrot.slane %v7464_v28, 1  ;;  %v7663_v28 = vld [vmem:[#allocation5 + $0x78] sm:$0xff]  }
  0xc8   : > { %1397 = vmatprep.subr.bf16.mxu0 %v9666_v52 }
  0xc9   : > { %6373 = vmatpush1.bf16.msra.mxu1 %v7621_v26 }
  0xca   : > { %4731 = vmatmul.mubr.msk.bf16.gmra.mrb[12].mxu0 %vm7430_vm5, %v7616_v61  ;;  %6358 = vmatprep.subr.bf16.mxu1 %v9666_v52 }
  0xcb   : > { %951 = vmatprep.mubr.bf16.mxu0 %v7625_v16  ;;  %1398 = vmatpush1.bf16.msra.mxu0 %v7423_v63  ;;  %v522_v63 = vsel %vm465_vm0, %v520_v35, %v521_v30  ;;  %v373_v35 = vrot.slane %v7358_v8, 7 }
  0xcc   : > { %1399 = vmatprep.subr.bf16.mxu0 %v9666_v52  ;;  %6089 = vmatmul.mubr.msk.bf16.gmra.mrb[28].mxu1 %vm7237_vm2, %v7639_v38  ;;  %v7680_v37 = vpack.c.bf16 %v521_v30, %v522_v63  ;;  %v6674_v30 = vld [vmem:[#allocation5 + $0x190] sm:$0xff]   ;;  %v6677_v63 = vld [vmem:[#allocation5 + $0x1a8] sm:$0xff]  }
  0xcd   : > { %6092 = vmatprep.mubr.msk.bf16.mxu1 %vm7237_vm2, %v7650_v23  ;;  %6374 = vmatpush1.bf16.msra.mxu1 %v7644_v3 }
  0xce   : > { %6359 = vmatprep.subr.bf16.mxu1 %v9666_v52 }
  0xcf   : > { %1400 = vmatpush1.bf16.msra.mxu0 %v7450_v21  ;;  %v365_v21 = vsel %vm344_vm3, %v363_v27, %v364_v53  ;;  %v7718_v53 = vpack.c.bf16 %v7351_v6, %v7348_v5 }
  0xd0   : > { %1401 = vmatprep.subr.bf16.mxu0 %v9666_v52  ;;  %v7690_v24 = vpack.c.bf16 %v365_v21, %v363_v27  ;;  %v370_v27 = vrot.slane %v7351_v6, 7  ;;  %v7787_v21 = vpack.c.bf16 %v7406_v44, %v7403_v42  ;;  %v7804_v44 = vpack.c.bf16 %v7418_v58, %v7410_v46 }
  0xd1   : > { %6375 = vmatpush1.bf16.msra.mxu1 %v7663_v28 }
  0xd2   : > { %4735 = vmatmul.mubr.msk.bf16.gmra.mrb[16].mxu0 %vm7430_vm5, %v7658_v13  ;;  %1932 = vmatprep.subr.bf16.mxu1 %v9666_v52 }
  0xd3   : > { %959 = vmatprep.mubr.bf16.mxu0 %v7667_v12  ;;  %1402 = vmatpush1.bf16.msra.mxu0 %v7475_v48  ;;  %v369_v48 = vrot.slane %v7348_v5, 7 }
  0xd4   : > { %1403 = vmatprep.subr.bf16.mxu0 %v9666_v52  ;;  %6093 = vmatmul.mubr.msk.bf16.gmra.mrb[32].mxu1 %vm7237_vm2, %v7680_v37 }
  0xd5   : > { %1465 = vmatprep.mubr.bf16.mxu1 %v7667_v12  ;;  %v371_v5 = vsel %vm344_vm3, %v369_v48, %v370_v27 }
  0xd6   : > { %v7734_v6 = vpack.c.bf16 %v371_v5, %v369_v48  ;;  %v6680_v48 = vld [vmem:[#allocation5 + $0x1b8] sm:$0xff]   ;;  %v384_v5 = vrot.slane %v7440_v15, 7 }
  0xd7   : > { %1404 = vmatpush1.bf16.msra.mxu0 %v7503_v32  ;;  %v6673_v32 = vld [vmem:[#allocation5 + $0x188] sm:$0xff]  }
  0xd8   : > { %1405 = vmatprep.subr.bf16.mxu0 %v9666_v52 }
  0xda   : > { %4739 = vmatmul.mubr.msk.bf16.gmra.mrb[20].mxu0 %vm7430_vm5, %v7690_v24 }
  0xdb   : > { %967 = vmatprep.mubr.bf16.mxu0 %v7697_v45  ;;  %1406 = vmatpush1.bf16.msra.mxu0 %v7550_v10  ;;  %v372_v10 = vrot.slane %v7355_v7, 7  ;;  %v7752_v7 = vld [vmem:[#allocation5 + $0x80] sm:$0xff]  }
  0xdc   : > { %1407 = vmatprep.subr.bf16.mxu0 %v9666_v52  ;;  %4893 = vmatmul.mubr.msk.bf16.vlgmr.msra.gmra.mrb[36].mxu1 %vm7430_vm5, %v7690_v24 }
  0xdd   : > { %1473 = vmatprep.mubr.bf16.mxu1 %v7697_v45  ;;  %1933 = vmatpush1.bf16.msra.mxu1 %v6672_v34  ;;  %v374_v8 = vsel %vm344_vm3, %v372_v10, %v373_v35  ;;  %v6682_v34 = vld [vmem:[#allocation5 + $0x1c0] sm:$0xff]  }
  0xde   : > { %1934 = vmatprep.subr.bf16.mxu1 %v9666_v52 }
  0xdf   : > { %1408 = vmatpush1.bf16.msra.mxu0 %v7568_v11  ;;  %v6675_v11 = vld [vmem:[#allocation5 + $0x198] sm:$0xff]  }
  0xe0   : > { %1409 = vmatprep.subr.bf16.mxu0 %v9666_v52 }
  0xe1   : > { %1935 = vmatpush1.bf16.msra.mxu1 %v6673_v32  ;;  %v382_v32 = vrot.slane %v7418_v58, 7  ;;  %v7823_v58 = vpack.c.bf16 %v7443_v19, %v7440_v15 }
  0xe2   : > { %4743 = vmatmul.mubr.msk.bf16.gmra.mrb[24].mxu0 %vm7430_vm5, %v7711_v55  ;;  %1936 = vmatprep.subr.bf16.mxu1 %v9666_v52 }
  0xe3   : > { %975 = vmatprep.mubr.bf16.mxu0 %v7718_v53  ;;  %1410 = vmatpush1.bf16.msra.mxu0 %v7606_v41  ;;  %v375_v41 = vrot.slane %v7387_v31, 7  ;;  %v383_v35 = vsel %vm344_vm3, %v381_v54, %v382_v32 }
  0xe4   : > { %1411 = vmatprep.subr.bf16.mxu0 %v9666_v52  ;;  %4897 = vmatmul.mubr.msk.bf16.gmra.mrb[40].mxu1 %vm7430_vm5, %v7711_v55  ;;  %v7816_v46 = vpack.c.bf16 %v383_v35, %v381_v54  ;;  %v397_v35 = vrot.slane %v7577_v57, 7 }
  0xe5   : > { %1481 = vmatprep.mubr.bf16.mxu1 %v7718_v53  ;;  %1937 = vmatpush1.bf16.msra.mxu1 %v6674_v30  ;;  %v377_v31 = vsel %vm344_vm3, %v375_v41, %v376_v29  ;;  %v6686_v30 = vld [vmem:[#allocation5 + $0x1d0] sm:$0xff]  }
  0xe6   : > { %1938 = vmatprep.subr.bf16.mxu1 %v9666_v52 }
  0xe7   : > { %1412 = vmatpush1.bf16.msra.mxu0 %v7621_v26  ;;  %v7759_v26 = vpack.c.bf16 %v374_v8, %v372_v10  ;;  %v6684_v10 = vld [vmem:[#allocation5 + $0x1c8] sm:$0xff]   ;;  %v387_v8 = vrot.slane %v7506_v4, 7 }
  0xe8   : > { %1413 = vmatprep.subr.bf16.mxu0 %v9666_v52 }
  0xe9   : > { %1939 = vmatpush1.bf16.msra.mxu1 %v6675_v11  ;;  %v385_v11 = vrot.slane %v7443_v19, 7  ;;  %v7842_v19 = vpack.c.bf16 %v7509_v36, %v7506_v4 }
  0xea   : > { %4747 = vmatmul.mubr.msk.bf16.gmra.mrb[28].mxu0 %vm7430_vm5, %v7734_v6  ;;  %1940 = vmatprep.subr.bf16.mxu1 %v9666_v52 }
  0xeb   : > { %983 = vmatprep.mubr.bf16.mxu0 %v7741_v22  ;;  %1414 = vmatpush1.bf16.msra.mxu0 %v7644_v3  ;;  %v378_v3 = vrot.slane %v7403_v42, 7  ;;  %v386_v29 = vsel %vm344_vm3, %v384_v5, %v385_v11 }
  0xec   : > { %1415 = vmatprep.subr.bf16.mxu0 %v9666_v52  ;;  %4901 = vmatmul.mubr.msk.bf16.gmra.mrb[44].mxu1 %vm7430_vm5, %v7734_v6  ;;  %v7835_v15 = vpack.c.bf16 %v386_v29, %v384_v5 }
  0xed   : > { %1489 = vmatprep.mubr.bf16.mxu1 %v7741_v22  ;;  %1941 = vmatpush1.bf16.msra.mxu1 %v6676_v43  ;;  %v380_v27 = vsel %vm344_vm3, %v378_v3, %v379_v33  ;;  %v6690_v43 = vld [vmem:[#allocation5 + $0x1e0] sm:$0xff]   ;;  %v6694_v33 = vld [vmem:[#allocation5 + $0x1f0] sm:$0xff]  }
  0xee   : > { %1942 = vmatprep.subr.bf16.mxu1 %v9666_v52  ;;  %v7797_v42 = vpack.c.bf16 %v380_v27, %v378_v3  ;;  %v6692_v3 = vld [vmem:[#allocation5 + $0x1e8] sm:$0xff]   ;;  %v6696_v27 = vld [vmem:[#allocation5 + $0x1f8] sm:$0xff]  }
  0xef   : > { %1416 = vmatpush1.bf16.msra.mxu0 %v7663_v28  ;;  %v7780_v28 = vpack.c.bf16 %v377_v31, %v375_v41  ;;  %v6688_v41 = vld [vmem:[#allocation5 + $0x1d8] sm:$0xff]  }
  0xf0   : > { %6096 = vmatprep.subr.bf16.mxu0 %v7752_v7 }
  0xf1   : > { %1943 = vmatpush1.bf16.msra.mxu1 %v6677_v63  ;;  %v388_v63 = vrot.slane %v7509_v36, 7  ;;  %v7861_v36 = vpack.c.bf16 %v7526_v56, %v7523_v14 }
  0xf2   : > { %4751 = vmatmul.mubr.msk.bf16.gmra.mrb[32].mxu0 %vm7430_vm5, %v7759_v26  ;;  %1944 = vmatprep.subr.bf16.mxu1 %v9666_v52 }
  0xf3   : > { %991 = vmatprep.mubr.bf16.mxu0 %v7766_v50  ;;  %v389_v31 = vsel %vm344_vm3, %v387_v8, %v388_v63  ;;  %v6681_v63 = vld [vmem:[#allocation5 + $0x88] sm:$0xff]  }
  0xf4   : > { %4905 = vmatmul.mubr.msk.bf16.gmra.mrb[48].mxu1 %vm7430_vm5, %v7759_v26  ;;  %v7854_v4 = vpack.c.bf16 %v389_v31, %v387_v8  ;;  %v6685_v31 = vld [vmem:[#allocation5 + $0x98] sm:$0xff]  }
  0xf5   : > { %1497 = vmatprep.mubr.bf16.mxu1 %v7766_v50  ;;  %1945 = vmatpush1.bf16.msra.mxu1 %v6678_v51  ;;  %v390_v51 = vrot.slane %v7523_v14, 7  ;;  %v7879_v14 = vpack.c.bf16 %v7571_v9, %v7559_v59 }
  0xf6   : > { %1946 = vmatprep.subr.bf16.mxu1 %v9666_v52 }
  0xf9   : > { %1947 = vmatpush1.bf16.msra.mxu1 %v6680_v48  ;;  %v391_v48 = vrot.slane %v7526_v56, 7  ;;  %v393_v56 = vrot.slane %v7559_v59, 7  ;;  %v396_v59 = vrot.slane %v7574_v60, 7 }
  0xfa   : > { %4755 = vmatmul.mubr.msk.bf16.gmra.mrb[36].mxu0 %vm7430_vm5, %v7780_v28  ;;  %1948 = vmatprep.subr.bf16.mxu1 %v9666_v52 }
  0xfb   : > { %999 = vmatprep.mubr.bf16.mxu0 %v7787_v21 }
  0xfc   : > { %4909 = vmatmul.mubr.msk.bf16.gmra.mrb[52].mxu1 %vm7430_vm5, %v7780_v28 }
  0xfd   : > { %1505 = vmatprep.mubr.bf16.mxu1 %v7787_v21  ;;  %1949 = vmatpush1.bf16.msra.mxu1 %v6682_v34  ;;  %v392_v34 = vsel %vm344_vm3, %v390_v51, %v391_v48 }
  0xfe   : > { %1950 = vmatprep.subr.bf16.mxu1 %v9666_v52  ;;  %v7872_v54 = vpack.c.bf16 %v392_v34, %v390_v51  ;;  %v9673_v51 = vld [vmem:[#allocation13_spill] sm:$0xff] }
 0x101   : > { %1951 = vmatpush1.bf16.msra.mxu1 %v6684_v10 }
 0x102   : > { %4759 = vmatmul.mubr.msk.bf16.gmra.mrb[40].mxu0 %vm7430_vm5, %v7797_v42  ;;  %1952 = vmatprep.subr.bf16.mxu1 %v9666_v52 }
 0x103   : > { %1007 = vmatprep.mubr.bf16.mxu0 %v7804_v44 }
 0x104   : > { %4913 = vmatmul.mubr.msk.bf16.gmra.mrb[56].mxu1 %vm7430_vm5, %v7797_v42 }
 0x105   : > { %1513 = vmatprep.mubr.bf16.mxu1 %v7804_v44  ;;  %1953 = vmatpush1.bf16.msra.mxu1 %v6686_v30  ;;  %v398_v30 = vsel %vm344_vm3, %v396_v59, %v397_v35  ;;  %v6701_v35 = vld [vmem:[#allocation5 + $0x228] sm:$0xff]  }
 0x106   : > { %1954 = vmatprep.subr.bf16.mxu1 %v9666_v52  ;;  %v7906_v5 = vpack.c.bf16 %v398_v30, %v396_v59 }
 0x109   : > { %1955 = vmatpush1.bf16.msra.mxu1 %v6688_v41 }
 0x10a   : > { %4763 = vmatmul.mubr.msk.bf16.gmra.mrb[44].mxu0 %vm7430_vm5, %v7816_v46  ;;  %1956 = vmatprep.subr.bf16.mxu1 %v9666_v52 }
 0x10b   : > { %1015 = vmatprep.mubr.bf16.mxu0 %v7823_v58 }
 0x10c   : > { %4917 = vmatmul.mubr.msk.bf16.gmra.mrb[60].mxu1 %vm7430_vm5, %v7816_v46 }
 0x10d   : > { %1521 = vmatprep.mubr.bf16.mxu1 %v7823_v58  ;;  %1957 = vmatpush1.bf16.msra.mxu1 %v6690_v43 }
 0x10e   : > { %1958 = vmatprep.subr.bf16.mxu1 %v9666_v52 }
 0x111   : > { %1959 = vmatpush1.bf16.msra.mxu1 %v6692_v3  ;;  %v6683_v3 = vld [vmem:[#allocation5 + $0x90] sm:$0xff]  }
 0x112   : > { %4767 = vmatmul.mubr.msk.bf16.gmra.mrb[48].mxu0 %vm7430_vm5, %v7835_v15  ;;  %1960 = vmatprep.subr.bf16.mxu1 %v9666_v52 }
 0x113   : > { %1023 = vmatprep.mubr.bf16.mxu0 %v7842_v19 }
 0x114   : > { %4921 = vmatmul.mubr.msk.bf16.gmra.mrb[64].mxu1 %vm7430_vm5, %v7835_v15 }
 0x115   : > { %1529 = vmatprep.mubr.bf16.mxu1 %v7842_v19  ;;  %1961 = vmatpush1.bf16.msra.mxu1 %v6694_v33  ;;  %v9672_v33 = vld [vmem:[#allocation12_spill] sm:$0xff] }
 0x116   : > { %1962 = vmatprep.subr.bf16.mxu1 %v9666_v52  ;;  %v394_v52 = vrot.slane %v7571_v9, 7  ;;  %v7896_v9 = vpack.c.bf16 %v7577_v57, %v7574_v60  ;;  %v264_v57 = vld [vmem:[%s7211_s9] sm:$0xff]  ;;  %v265_v60 = vld [vmem:[%s7211_s9 + $0x8] sm:$0xff] }
 0x117   : > { %v345_v11 = vrot.slane %v264_v57, 7  ;;  %v346_v41 = vrot.slane %v265_v60, 7  ;;  %v587_v29 = vpack.c.bf16 %v265_v60, %v264_v57 }
 0x118   : > { %v395_v32 = vsel %vm344_vm3, %v393_v56, %v394_v52 }
 0x119   : > { %1963 = vmatpush1.bf16.msra.mxu1 %v6696_v27  ;;  %v7889_v10 = vpack.c.bf16 %v395_v32, %v393_v56  ;;  %v347_v43 = vsel %vm344_vm3, %v345_v11, %v346_v41  ;;  %v9674_v56 = vld [vmem:[#allocation14_spill] sm:$0xff]  ;;  %v9675_v32 = vld [vmem:[#allocation15_spill] sm:$0xff] }
 0x11a   : > { %4771 = vmatmul.mubr.msk.bf16.gmra.mrb[52].mxu0 %vm7430_vm5, %v7854_v4  ;;  %v4868_v8 = vpack.c.bf16 %v347_v43, %v345_v11  ;;  %v9677_v11 = vld [vmem:[#allocation17_spill] sm:$0xff] }
 0x11b   : > { %1031 = vmatprep.mubr.bf16.mxu0 %v7861_v36 }
 0x11c   : > { %4925 = vmatmul.mubr.msk.bf16.gmra.mrb[68].mxu1 %vm7430_vm5, %v7854_v4 }
 0x11d   : > { %1537 = vmatprep.mubr.bf16.mxu1 %v7861_v36 }
 0x122   : > { %4775 = vmatmul.mubr.msk.bf16.gmra.mrb[56].mxu0 %vm7430_vm5, %v7872_v54 }
 0x123   : > { %1039 = vmatprep.mubr.bf16.mxu0 %v7879_v14 }
 0x124   : > { %4929 = vmatmul.mubr.msk.bf16.gmra.mrb[72].mxu1 %vm7430_vm5, %v7872_v54 }
 0x125   : > { %1545 = vmatprep.mubr.bf16.mxu1 %v7879_v14 }
 0x12a   : > { %4779 = vmatmul.mubr.msk.bf16.gmra.mrb[60].mxu0 %vm7430_vm5, %v7889_v10 }
 0x12b   : > { %1047 = vmatprep.mubr.bf16.mxu0 %v7896_v9 }
 0x12c   : > { %4933 = vmatmul.mubr.msk.bf16.gmra.mrb[76].mxu1 %vm7430_vm5, %v7889_v10 }
 0x12d   : > { %1553 = vmatprep.mubr.bf16.mxu1 %v7896_v9 }
 0x132   : > { %4783 = vmatmul.mubr.msk.bf16.gmra.mrb[64].mxu0 %vm7430_vm5, %v7906_v5 }
 0x133   : > { %1055 = vmatprep.mubr.bf16.mxu0 %v7481_v47 }
 0x134   : > { %4937 = vmatmul.mubr.msk.bf16.gmra.mrb[80].mxu1 %vm7430_vm5, %v7906_v5 }
 0x135   : > { %1964 = vmatprep.mubr.bf16.mxu1 %v7454_v25 }
 0x13a   : > { %4787 = vmatmul.mubr.msk.bf16.gmra.mrb[68].mxu0 %vm7430_vm5, %v7511_v62 }
 0x13b   : > { %1417 = vmatprep.mubr.bf16.mxu0 %v587_v29 }
 0x13c   : > { %5019 = vmatmul.mubr.msk.bf16.vlgmr.msra.gmra.mrb[84].mxu1 %vm7430_vm5, %v7498_v40 }
 0x13d   : > { %1972 = vmatprep.mubr.bf16.mxu1 %v7516_v39 }
 0x142   : > { %4869 = vmatmul.mubr.msk.bf16.vlgmr.msra.gmra.mrb[72].mxu0 %vm7430_vm5, %v4868_v8 }
 0x143   : > { %6097 = vmatpush3.bf16.msra.mxu0 %v7752_v7  ;;  %1425 = vmatprep.mubr.bf16.mxu0 %v7243_v18  ;;  %v6687_v18 = vld [vmem:[#allocation5 + $0xa0] sm:$0xff]   ;;  %v6689_v7 = vld [vmem:[#allocation5 + $0xa8] sm:$0xff]  }
 0x144   : > { %6098 = vmatprep.subr.bf16.mxu0 %v6681_v63  ;;  %5023 = vmatmul.mubr.msk.bf16.gmra.mrb[88].mxu1 %vm7430_vm5, %v7563_v49 }
 0x145   : > { %1980 = vmatprep.mubr.bf16.mxu1 %v7581_v0 }
 0x147   : > { %6099 = vmatpush3.bf16.msra.mxu0 %v6681_v63 }
 0x148   : > { %6100 = vmatprep.subr.bf16.mxu0 %v6683_v3 }
 0x14a   : > { %4873 = vmatmul.mubr.msk.bf16.gmra.mrb[76].mxu0 %vm7430_vm5, %v7445_v20  ;;  %v6691_v20 = vld [vmem:[#allocation5 + $0xb0] sm:$0xff]  }
 0x14b   : > { %6101 = vmatpush3.bf16.msra.mxu0 %v6683_v3  ;;  %1433 = vmatprep.mubr.bf16.mxu0 %v7454_v25  ;;  %v6693_v25 = vld [vmem:[#allocation5 + $0xb8] sm:$0xff]  }
 0x14c   : > { %6102 = vmatprep.subr.bf16.mxu0 %v6685_v31  ;;  %5027 = vmatmul.mubr.msk.bf16.gmra.mrb[92].mxu1 %vm7430_vm5, %v7616_v61  ;;  %v6703_v3 = vld [vmem:[#allocation5 + $0x238] sm:$0xff]  }
 0x14d   : > { %1988 = vmatprep.mubr.bf16.mxu1 %v7625_v16 }
 0x14f   : > { %6103 = vmatpush3.bf16.msra.mxu0 %v6685_v31 }
 0x150   : > { %6104 = vmatprep.subr.bf16.mxu0 %v6687_v18 }
 0x152   : > { %4877 = vmatmul.mubr.msk.bf16.gmra.mrb[80].mxu0 %vm7430_vm5, %v7498_v40  ;;  %v6695_v40 = vld [vmem:[#allocation5 + $0x200] sm:$0xff]  }
 0x153   : > { %1441 = vmatprep.mubr.bf16.mxu0 %v7516_v39  ;;  %6105 = vmatpush3.bf16.msra.mxu0 %v6687_v18  ;;  %v466_v39 = vrot.slane %v264_v57, 1  ;;  %v9676_v57 = vld [vmem:[#allocation16_spill] sm:$0xff]  ;;  %v9678_v18 = vld [vmem:[#allocation18_spill] sm:$0xff] }
 0x154   : > { %6106 = vmatprep.subr.bf16.mxu0 %v6689_v7  ;;  %5031 = vmatmul.mubr.msk.bf16.gmra.mrb[96].mxu1 %vm7430_vm5, %v7658_v13 }
 0x155   : > { %1996 = vmatprep.mubr.bf16.mxu1 %v7667_v12  ;;  %v467_v12 = vrot.slane %v265_v60, 1 }
 0x157   : > { %6107 = vmatpush3.bf16.msra.mxu0 %v6689_v7 }
 0x158   : > { %6108 = vmatprep.subr.bf16.mxu0 %v6691_v20 }
 0x15a   : > { %4881 = vmatmul.mubr.msk.bf16.gmra.mrb[84].mxu0 %vm7430_vm5, %v7563_v49 }
 0x15b   : > { %1449 = vmatprep.mubr.bf16.mxu0 %v7581_v0  ;;  %6109 = vmatpush3.bf16.msra.mxu0 %v6691_v20  ;;  %v468_v0 = vsel %vm465_vm0, %v466_v39, %v467_v12  ;;  %v9679_v20 = vld [vmem:[#allocation19_spill] sm:$0xff] }
 0x15c   : > { %6110 = vmatprep.subr.bf16.mxu0 %v6693_v25  ;;  %5035 = vmatmul.mubr.msk.bf16.gmra.mrb[100].mxu1 %vm7430_vm5, %v7690_v24  ;;  %v4939_v49 = vpack.c.bf16 %v467_v12, %v468_v0 }
 0x15d   : > { %2004 = vmatprep.mubr.bf16.mxu1 %v7697_v45 }
 0x15f   : > { %6111 = vmatpush3.bf16.msra.mxu0 %v6693_v25 }
 0x160   : > { %6148 = vmatprep.subr.bf16.mxu0 %v6695_v40 }
 0x162   : > { %4885 = vmatmul.mubr.msk.bf16.gmra.mrb[88].mxu0 %vm7430_vm5, %v7616_v61 }
 0x163   : > { %1457 = vmatprep.mubr.bf16.mxu0 %v7625_v16 }
 0x164   : > { %5039 = vmatmul.mubr.msk.bf16.gmra.mrb[104].mxu1 %vm7430_vm5, %v7711_v55  ;;  %v6697_v55 = vld [vmem:[#allocation5 + $0x208] sm:$0xff]  }
 0x165   : > { %2012 = vmatprep.mubr.bf16.mxu1 %v7718_v53 }
 0x166   : > { %v7971_v24 = vpop.f32.mrb[0].mxu1 }
 0x167   : > { %v1098_v45 = vpop.f32.mrb[1].mxu1 }
 0x168   : > { %v7978_v61 = vpop.f32.mrb[2].mxu1 }
 0x169   : > { %v1101_v16 = vpop.f32.mrb[3].mxu1 }
 0x16a   : > { %4889 = vmatmul.mubr.msk.bf16.gmra.mrb[92].mxu0 %vm7430_vm5, %v7658_v13  ;;  %v9680_v16 = vld [vmem:[#allocation20_spill] sm:$0xff] }
 0x16b   : > { %6112 = vmatprep.mubr.msk.bf16.mxu0 %vm7237_vm2, %v4939_v49 }
 0x16c   : > { %5043 = vmatmul.mubr.msk.bf16.gmra.mrb[108].mxu1 %vm7430_vm5, %v7734_v6  ;;  %v6698_v6 = vld [vmem:[#allocation5 + $0x210] sm:$0xff]  }
 0x16d   : > { %2020 = vmatprep.mubr.bf16.mxu1 %v7741_v22  ;;  %v6699_v22 = vld [vmem:[#allocation5 + $0x218] sm:$0xff]  }
 0x16e   : > { %v7984_v53 = vpop.f32.mrb[4].mxu1 }
 0x16f   : > { %v7989_v13 = vpop.f32.mrb[5].mxu1 }
 0x170   : > { %v7994_v48 = vpop.f32.mrb[6].mxu1 }
 0x171   : > { %v7996_v27 = vpop.f32.mrb[7].mxu1 }
 0x172   : > { %6113 = vmatmul.mubr.msk.bf16.vlgmr.msra.gmra.mrb[96].mxu0 %vm7237_vm2, %v9672_v33 }
 0x173   : > { %6149 = vmatpush3.bf16.msra.mxu0 %v6695_v40  ;;  %6116 = vmatprep.mubr.msk.bf16.mxu0 %vm7237_vm2, %v9673_v51 }
 0x174   : > { %6150 = vmatprep.subr.bf16.mxu0 %v6697_v55  ;;  %5047 = vmatmul.mubr.msk.bf16.gmra.mrb[112].mxu1 %vm7430_vm5, %v7759_v26  ;;  %v6700_v26 = vld [vmem:[#allocation5 + $0x220] sm:$0xff]  }
 0x175   : > { %2028 = vmatprep.mubr.bf16.mxu1 %v7766_v50 }
 0x176   : > { %v8002_v34 = vpop.f32.mrb[8].mxu1 }
 0x177   : > { %6151 = vmatpush3.bf16.msra.mxu0 %v6697_v55  ;;  %v8007_v52 = vpop.f32.mrb[9].mxu1  ;;  %v9681_v55 = vld [vmem:[#allocation21_spill] sm:$0xff] }
 0x178   : > { %6152 = vmatprep.subr.bf16.mxu0 %v6698_v6  ;;  %v8012_v59 = vpop.f32.mrb[10].mxu1 }
 0x179   : > { %v8014_v50 = vpop.f32.mrb[11].mxu1 }
 0x17a   : > { %6117 = vmatmul.mubr.msk.bf16.gmra.mrb[100].mxu0 %vm7237_vm2, %v9674_v56 }
 0x17b   : > { %6120 = vmatprep.mubr.msk.bf16.mxu0 %vm7237_vm2, %v9675_v32  ;;  %6153 = vmatpush3.bf16.msra.mxu0 %v6698_v6 }
 0x17c   : > { %6154 = vmatprep.subr.bf16.mxu0 %v6699_v22  ;;  %5051 = vmatmul.mubr.msk.bf16.gmra.mrb[116].mxu1 %vm7430_vm5, %v7780_v28 }
 0x17d   : > { %2036 = vmatprep.mubr.bf16.mxu1 %v7787_v21  ;;  %v6702_v21 = vld [vmem:[#allocation5 + $0x230] sm:$0xff]  }
 0x17e   : > { %v8020_v30 = vpop.f32.mrb[12].mxu1 }
 0x17f   : > { %6155 = vmatpush3.bf16.msra.mxu0 %v6699_v22  ;;  %v8025_v60 = vpop.f32.mrb[13].mxu1  ;;  %v6704_v22 = vld [vmem:[#allocation7 + $0x140] sm:$0xff]  }
 0x180   : > { %6156 = vmatprep.subr.bf16.mxu0 %v6700_v26  ;;  %v8030_v41 = vpop.f32.mrb[14].mxu1  ;;  %6200 = vmatprep.subr.bf16.mxu1 %v6704_v22 }
 0x181   : > { %v8032_v28 = vpop.f32.mrb[15].mxu1  ;;  %6201 = vmatpush3.bf16.msra.mxu1 %v6704_v22 }
 0x182   : > { %6121 = vmatmul.mubr.msk.bf16.gmra.mrb[104].mxu0 %vm7237_vm2, %v9676_v57 }
 0x183   : > { %6124 = vmatprep.mubr.msk.bf16.mxu0 %vm7237_vm2, %v9677_v11  ;;  %6157 = vmatpush3.bf16.msra.mxu0 %v6700_v26 }
 0x184   : > { %6158 = vmatprep.subr.bf16.mxu0 %v6701_v35  ;;  %5055 = vmatmul.mubr.msk.bf16.gmra.mrb[120].mxu1 %vm7430_vm5, %v7797_v42 }
 0x185   : > { %v921_v29 = vpop.f32.mrb[0].mxu0  ;;  %2044 = vmatprep.mubr.bf16.mxu1 %v7804_v44 }
 0x186   : > { %v923_v43 = vpop.f32.mrb[1].mxu0 }
 0x187   : > { %v924_v8 = vpop.f32.mrb[2].mxu0  ;;  %6159 = vmatpush3.bf16.msra.mxu0 %v6701_v35  ;;  %v8038_v31 = vpop.f32.mrb[16].mxu1  ;;  %v9682_v43 = vld [vmem:[#allocation22_spill] sm:$0xff] }
 0x188   : > { %v926_v63 = vpop.f32.mrb[3].mxu0  ;;  %6160 = vmatprep.subr.bf16.mxu0 %v6702_v21  ;;  %v8043_v7 = vpop.f32.mrb[17].mxu1  ;;  %v9683_v8 = vld [vmem:[#allocation23_spill] sm:$0xff] }
 0x189   : > { %v8048_v42 = vpop.f32.mrb[18].mxu1 }
 0x18a   : > { %6125 = vmatmul.mubr.msk.bf16.gmra.mrb[108].mxu0 %vm7237_vm2, %v9678_v18  ;;  %v8050_v25 = vpop.f32.mrb[19].mxu1 }
 0x18b   : > { %6128 = vmatprep.mubr.msk.bf16.mxu0 %vm7237_vm2, %v9679_v20  ;;  %6161 = vmatpush3.bf16.msra.mxu0 %v6702_v21 }
 0x18c   : > { %6162 = vmatprep.subr.bf16.mxu0 %v6703_v3  ;;  %5059 = vmatmul.mubr.msk.bf16.gmra.mrb[124].mxu1 %vm7430_vm5, %v7816_v46 }
 0x18d   : > { %v929_v44 = vpop.f32.mrb[4].mxu0  ;;  %2052 = vmatprep.mubr.bf16.mxu1 %v7823_v58 }
 0x18e   : > { %v8053_v40 = vadd.f32 %v7971_v24, %v929_v44  ;;  %v931_v39 = vpop.f32.mrb[5].mxu0 }
 0x18f   : > { %v932_v12 = vpop.f32.mrb[6].mxu0  ;;  %6163 = vmatpush3.bf16.msra.mxu0 %v6703_v3  ;;  %v8062_v45 = vpop.f32.mrb[20].mxu1 }
 0x190   : > { %v8060_v0 = vadd.f32 %v7978_v61, %v932_v12  ;;  %v934_v49 = vpop.f32.mrb[7].mxu0  ;;  %v8067_v24 = vpop.f32.mrb[21].mxu1 }
 0x191   : > { %v8072_v46 = vpop.f32.mrb[22].mxu1 }
 0x192   : > { %6129 = vmatmul.mubr.msk.bf16.gmra.mrb[112].mxu0 %vm7237_vm2, %v9680_v16  ;;  %v8074_v33 = vpop.f32.mrb[23].mxu1 }
 0x193   : > { %6132 = vmatprep.mubr.msk.bf16.mxu0 %vm7237_vm2, %v9681_v55 }
 0x194   : > { %5063 = vmatmul.mubr.msk.bf16.gmra.mrb[128].mxu1 %vm7430_vm5, %v7835_v15 }
 0x195   : > { %v937_v58 = vpop.f32.mrb[8].mxu0  ;;  %2060 = vmatprep.mubr.bf16.mxu1 %v7842_v19 }
 0x196   : > { %v8077_v61 = vadd.f32 %v7989_v13, %v937_v58  ;;  %v939_v6 = vpop.f32.mrb[9].mxu0  ;;  %v9684_v58 = vld [vmem:[#allocation24_spill] sm:$0xff] }
 0x197   : > { %v940_v26 = vpop.f32.mrb[10].mxu0  ;;  %v8086_v29 = vpop.f32.mrb[24].mxu1 }
 0x198   : > { %v8084_v35 = vadd.f32 %v7996_v27, %v940_v26  ;;  %v942_v21 = vpop.f32.mrb[11].mxu0  ;;  %v8091_v13 = vpop.f32.mrb[25].mxu1 }
 0x199   : > { %v8096_v15 = vpop.f32.mrb[26].mxu1 }
 0x19a   : > { %6133 = vmatmul.mubr.msk.bf16.gmra.mrb[116].mxu0 %vm7237_vm2, %v9682_v43  ;;  %v8098_v19 = vpop.f32.mrb[27].mxu1 }
 0x19b   : > { %6136 = vmatprep.mubr.msk.bf16.mxu0 %vm7237_vm2, %v9683_v8 }
 0x19c   : > { %5067 = vmatmul.mubr.msk.bf16.gmra.mrb[132].mxu1 %vm7430_vm5, %v7854_v4 }
 0x19d   : > { %v945_v27 = vpop.f32.mrb[12].mxu0  ;;  %2068 = vmatprep.mubr.bf16.mxu1 %v7861_v36 }
 0x19e   : > { %v947_v63 = vpop.f32.mrb[13].mxu0  ;;  %v8104_v3 = vadd.f32 %v7984_v53, %v945_v27  ;;  %v6705_v27 = vld [vmem:[#allocation7 + $0x148] sm:$0xff]  }
 0x19f   : > { %v948_v44 = vpop.f32.mrb[14].mxu0  ;;  %v8110_v49 = vpop.f32.mrb[28].mxu1  ;;  %6202 = vmatprep.subr.bf16.mxu1 %v6705_v27 }
 0x1a0   : > { %v950_v39 = vpop.f32.mrb[15].mxu0  ;;  %v8108_v12 = vadd.f32 %v7994_v48, %v948_v44  ;;  %v8115_v6 = vpop.f32.mrb[29].mxu1  ;;  %6203 = vmatpush3.bf16.msra.mxu1 %v6705_v27 }
 0x1a1   : > { %v8120_v4 = vpop.f32.mrb[30].mxu1  ;;  %v9685_v39 = vld [vmem:[#allocation25_spill] sm:$0xff] }
 0x1a2   : > { %6137 = vmatmul.mubr.msk.bf16.gmra.mrb[120].mxu0 %vm7237_vm2, %v9684_v58  ;;  %v8122_v53 = vpop.f32.mrb[31].mxu1 }
 0x1a3   : > { %6140 = vmatprep.mubr.msk.bf16.mxu0 %vm7237_vm2, %v7598_v1 }
 0x1a4   : > { %5071 = vmatmul.mubr.msk.bf16.gmra.mrb[136].mxu1 %vm7430_vm5, %v7872_v54 }
 0x1a5   : > { %v953_v36 = vpop.f32.mrb[16].mxu0  ;;  %2076 = vmatprep.mubr.bf16.mxu1 %v7879_v14 }
 0x1a6   : > { %v955_v22 = vpop.f32.mrb[17].mxu0  ;;  %v8128_v48 = vadd.f32 %v8007_v52, %v953_v36 }
 0x1a7   : > { %v956_v26 = vpop.f32.mrb[18].mxu0  ;;  %v6094_v44 = vpop.f32.mrb[32].mxu1 }
 0x1a8   : > { %v958_v21 = vpop.f32.mrb[19].mxu0  ;;  %v8132_v63 = vadd.f32 %v8014_v50, %v956_v26  ;;  %v8137_v22 = vpop.f32.mrb[33].mxu1 }
 0x1a9   : > { %v6095_v54 = vpop.f32.mrb[34].mxu1 }
 0x1aa   : > { %6141 = vmatmul.mubr.msk.bf16.gmra.mrb[124].mxu0 %vm7237_vm2, %v9685_v39  ;;  %v8142_v14 = vpop.f32.mrb[35].mxu1 }
 0x1ab   : > { %6144 = vmatprep.mubr.msk.bf16.mxu0 %vm7237_vm2, %v7639_v38 }
 0x1ac   : > { %5075 = vmatmul.mubr.msk.bf16.gmra.mrb[140].mxu1 %vm7430_vm5, %v7889_v10 }
 0x1ad   : > { %v961_v52 = vpop.f32.mrb[20].mxu0  ;;  %2084 = vmatprep.mubr.bf16.mxu1 %v7896_v9 }
 0x1ae   : > { %v963_v36 = vpop.f32.mrb[21].mxu0  ;;  %v8148_v50 = vadd.f32 %v8002_v34, %v961_v52 }
 0x1af   : > { %v964_v26 = vpop.f32.mrb[22].mxu0  ;;  %v1467_v54 = vpop.f32.mrb[36].mxu1 }
 0x1b0   : > { %9686 = vst [vmem:[#allocation12_spill] sm:$0xff] %v8148_v50  ;;  %v966_v21 = vpop.f32.mrb[23].mxu0  ;;  %v8152_v44 = vadd.f32 %v8012_v59, %v964_v26  ;;  %v1469_v27 = vpop.f32.mrb[37].mxu1 }
 0x1b1   : > { %v1470_v36 = vpop.f32.mrb[38].mxu1 }
 0x1b2   : > { %9687 = vst [vmem:[#allocation13_spill] sm:$0xff] %v8152_v44  ;;  %6145 = vmatmul.mubr.msk.bf16.gmra.mrb[128].mxu0 %vm7237_vm2, %v7650_v23  ;;  %v1472_v10 = vpop.f32.mrb[39].mxu1  ;;  %v6706_v44 = vld [vmem:[#allocation7 + $0x150] sm:$0xff]  }
 0x1b3   : > { %6164 = vmatprep.mubr.msk.bf16.mxu0 %vm7237_vm2, %v9673_v51  ;;  %6204 = vmatprep.subr.bf16.mxu1 %v6706_v44 }
 0x1b4   : > { %5079 = vmatmul.mubr.msk.bf16.gmra.mrb[144].mxu1 %vm7430_vm5, %v7906_v5 }
 0x1b5   : > { %v969_v34 = vpop.f32.mrb[24].mxu0  ;;  %2092 = vmatprep.mubr.bf16.mxu1 %v7481_v47  ;;  %6205 = vmatpush3.bf16.msra.mxu1 %v6706_v44 }
 0x1b6   : > { %v971_v52 = vpop.f32.mrb[25].mxu0  ;;  %v1147_v9 = vadd.f32 %v8025_v60, %v969_v34 }
 0x1b7   : > { %v972_v59 = vpop.f32.mrb[26].mxu0  ;;  %v1475_v50 = vpop.f32.mrb[40].mxu1 }
 0x1b8   : > { %v8165_v26 = vadd.f32 %v1467_v54, %v1147_v9  ;;  %v974_v21 = vpop.f32.mrb[27].mxu0  ;;  %v1150_v27 = vadd.f32 %v8032_v28, %v972_v59  ;;  %v1477_v60 = vpop.f32.mrb[41].mxu1 }
 0x1b9   : > { %v1478_v10 = vpop.f32.mrb[42].mxu1 }
 0x1ba   : > { %v8168_v51 = vadd.f32 %v1470_v36, %v1150_v27  ;;  %6165 = vmatmul.mubr.msk.bf16.vlgmr.msra.gmra.mrb[132].mxu0 %vm7237_vm2, %v9674_v56  ;;  %v1480_v47 = vpop.f32.mrb[43].mxu1 }
 0x1bb   : > { %6168 = vmatprep.mubr.msk.bf16.mxu0 %vm7237_vm2, %v9675_v32  ;;  %v6707_v47 = vld [vmem:[#allocation7 + $0x158] sm:$0xff]  }
 0x1bc   : > { %5083 = vmatmul.mubr.msk.bf16.gmra.mrb[148].mxu1 %vm7430_vm5, %v7511_v62  ;;  %6206 = vmatprep.subr.bf16.mxu1 %v6707_v47 }
 0x1bd   : > { %v977_v5 = vpop.f32.mrb[28].mxu0  ;;  %6207 = vmatpush3.bf16.msra.mxu1 %v6707_v47 }
 0x1be   : > { %v979_v54 = vpop.f32.mrb[29].mxu0  ;;  %v1155_v28 = vadd.f32 %v8020_v30, %v977_v5 }
 0x1bf   : > { %v980_v36 = vpop.f32.mrb[30].mxu0  ;;  %v1483_v9 = vpop.f32.mrb[44].mxu1 }
 0x1c0   : > { %v8180_v34 = vadd.f32 %v1475_v50, %v1155_v28  ;;  %v982_v56 = vpop.f32.mrb[31].mxu0  ;;  %v1158_v52 = vadd.f32 %v8030_v41, %v980_v36  ;;  %v1485_v32 = vpop.f32.mrb[45].mxu1 }
 0x1c1   : > { %v1486_v44 = vpop.f32.mrb[46].mxu1 }
 0x1c2   : > { %v8183_v59 = vadd.f32 %v1478_v10, %v1158_v52  ;;  %6169 = vmatmul.mubr.msk.bf16.gmra.mrb[136].mxu0 %vm7237_vm2, %v9676_v57  ;;  %v1488_v62 = vpop.f32.mrb[47].mxu1 }
 0x1c3   : > { %6172 = vmatprep.mubr.msk.bf16.mxu0 %vm7237_vm2, %v9677_v11 }
 0x1c5   : > { %v985_v30 = vpop.f32.mrb[32].mxu0 }
 0x1c6   : > { %v987_v50 = vpop.f32.mrb[33].mxu0  ;;  %v1163_v21 = vadd.f32 %v8043_v7, %v985_v30 }
 0x1c7   : > { %v988_v27 = vpop.f32.mrb[34].mxu0  ;;  %v1491_v5 = vpop.f32.mrb[48].mxu1 }
 0x1c8   : > { %v8192_v41 = vadd.f32 %v1483_v9, %v1163_v21  ;;  %v990_v60 = vpop.f32.mrb[35].mxu0  ;;  %v1166_v10 = vadd.f32 %v8050_v25, %v988_v27  ;;  %v1493_v11 = vpop.f32.mrb[49].mxu1 }
 0x1c9   : > { %v1494_v54 = vpop.f32.mrb[50].mxu1 }
 0x1ca   : > { %v8195_v57 = vadd.f32 %v1486_v44, %v1166_v10  ;;  %6173 = vmatmul.mubr.msk.bf16.gmra.mrb[140].mxu0 %vm7237_vm2, %v9678_v18  ;;  %v1496_v7 = vpop.f32.mrb[51].mxu1 }
 0x1cb   : > { %6176 = vmatprep.mubr.msk.bf16.mxu0 %vm7237_vm2, %v9679_v20 }
 0x1cd   : > { %v993_v28 = vpop.f32.mrb[36].mxu0 }
 0x1ce   : > { %v995_v36 = vpop.f32.mrb[37].mxu0  ;;  %v1171_v25 = vadd.f32 %v8038_v31, %v993_v28  ;;  %v6708_v28 = vld [vmem:[#allocation7 + $0x160] sm:$0xff]  }
 0x1cf   : > { %v996_v56 = vpop.f32.mrb[38].mxu0  ;;  %v1499_v18 = vpop.f32.mrb[52].mxu1  ;;  %6208 = vmatprep.subr.bf16.mxu1 %v6708_v28 }
 0x1d0   : > { %v8204_v52 = vadd.f32 %v1491_v5, %v1171_v25  ;;  %v998_v9 = vpop.f32.mrb[39].mxu0  ;;  %v1174_v32 = vadd.f32 %v8048_v42, %v996_v56  ;;  %v1501_v20 = vpop.f32.mrb[53].mxu1  ;;  %6209 = vmatpush3.bf16.msra.mxu1 %v6708_v28 }
 0x1d1   : > { %v1502_v62 = vpop.f32.mrb[54].mxu1 }
 0x1d2   : > { %v8207_v44 = vadd.f32 %v1494_v54, %v1174_v32  ;;  %6177 = vmatmul.mubr.msk.bf16.gmra.mrb[144].mxu0 %vm7237_vm2, %v9680_v16  ;;  %v1504_v31 = vpop.f32.mrb[55].mxu1 }
 0x1d3   : > { %6180 = vmatprep.mubr.msk.bf16.mxu0 %vm7237_vm2, %v9681_v55 }
 0x1d5   : > { %v1001_v30 = vpop.f32.mrb[40].mxu0 }
 0x1d6   : > { %v1179_v50 = vadd.f32 %v8067_v24, %v1001_v30  ;;  %v1003_v21 = vpop.f32.mrb[41].mxu0 }
 0x1d7   : > { %v1004_v27 = vpop.f32.mrb[42].mxu0  ;;  %v1507_v47 = vpop.f32.mrb[56].mxu1 }
 0x1d8   : > { %v1182_v42 = vadd.f32 %v8074_v33, %v1004_v27  ;;  %v8217_v60 = vadd.f32 %v1499_v18, %v1179_v50  ;;  %v1006_v10 = vpop.f32.mrb[43].mxu0  ;;  %v1509_v16 = vpop.f32.mrb[57].mxu1 }
 0x1d9   : > { %v1510_v55 = vpop.f32.mrb[58].mxu1 }
 0x1da   : > { %v8219_v5 = vadd.f32 %v1502_v62, %v1182_v42  ;;  %6181 = vmatmul.mubr.msk.bf16.gmra.mrb[148].mxu0 %vm7237_vm2, %v9682_v43  ;;  %v1512_v24 = vpop.f32.mrb[59].mxu1  ;;  %v8252_v42 = vld [vmem:[%s7211_s9 + $0x130] sm:$0xff] }
 0x1db   : > { %6184 = vmatprep.mubr.msk.bf16.mxu0 %vm7237_vm2, %v9683_v8  ;;  %v523_v24 = vrot.slane %v8252_v42, 1 }
 0x1dd   : > { %v1009_v11 = vpop.f32.mrb[44].mxu0 }
 0x1de   : > { %v1187_v33 = vadd.f32 %v8062_v45, %v1009_v11  ;;  %v1011_v54 = vpop.f32.mrb[45].mxu0 }
 0x1df   : > { %v1012_v7 = vpop.f32.mrb[46].mxu0  ;;  %v1515_v9 = vpop.f32.mrb[60].mxu1 }
 0x1e0   : > { %v1190_v36 = vadd.f32 %v8072_v46, %v1012_v7  ;;  %v8229_v25 = vadd.f32 %v1507_v47, %v1187_v33  ;;  %v1014_v56 = vpop.f32.mrb[47].mxu0  ;;  %v1517_v8 = vpop.f32.mrb[61].mxu1  ;;  %v6709_v7 = vld [vmem:[#allocation7 + $0x168] sm:$0xff]  }
 0x1e1   : > { %v1518_v32 = vpop.f32.mrb[62].mxu1  ;;  %6210 = vmatprep.subr.bf16.mxu1 %v6709_v7 }
 0x1e2   : > { %v8231_v43 = vadd.f32 %v1510_v55, %v1190_v36  ;;  %6185 = vmatmul.mubr.msk.bf16.gmra.mrb[152].mxu0 %vm7237_vm2, %v9684_v58  ;;  %v1520_v45 = vpop.f32.mrb[63].mxu1  ;;  %6211 = vmatpush3.bf16.msra.mxu1 %v6709_v7 }
 0x1e3   : > { %6188 = vmatprep.mubr.msk.bf16.mxu0 %vm7237_vm2, %v7598_v1 }
 0x1e5   : > { %v1017_v46 = vpop.f32.mrb[48].mxu0 }
 0x1e6   : > { %v1195_v18 = vadd.f32 %v8091_v13, %v1017_v46  ;;  %v1019_v20 = vpop.f32.mrb[49].mxu0 }
 0x1e7   : > { %v1020_v62 = vpop.f32.mrb[50].mxu0  ;;  %v1523_v50 = vpop.f32.mrb[64].mxu1 }
 0x1e8   : > { %v1198_v31 = vadd.f32 %v8098_v19, %v1020_v62  ;;  %v8241_v30 = vadd.f32 %v1515_v9, %v1195_v18  ;;  %v1022_v58 = vpop.f32.mrb[51].mxu0  ;;  %v1525_v1 = vpop.f32.mrb[65].mxu1  ;;  %v8255_v19 = vld [vmem:[%s7211_s9 + $0x138] sm:$0xff] }
 0x1e9   : > { %v1526_v27 = vpop.f32.mrb[66].mxu1 }
 0x1ea   : > { %v8243_v21 = vadd.f32 %v1518_v32, %v1198_v31  ;;  %6189 = vmatmul.mubr.msk.bf16.gmra.mrb[156].mxu0 %vm7237_vm2, %v9685_v39  ;;  %v1528_v13 = vpop.f32.mrb[67].mxu1  ;;  %v524_v39 = vrot.slane %v8255_v19, 1 }
 0x1eb   : > { %6192 = vmatprep.mubr.msk.bf16.mxu0 %vm7237_vm2, %v7639_v38 }
 0x1ec   : > { %v525_v56 = vsel %vm465_vm0, %v523_v24, %v524_v39 }
 0x1ed   : > { %v1025_v10 = vpop.f32.mrb[52].mxu0  ;;  %v5140_v45 = vpack.c.bf16 %v524_v39, %v525_v56  ;;  %v6713_v39 = vld [vmem:[#allocation7 + $0xc8] sm:$0xff]   ;;  %v6716_v56 = vld [vmem:[#allocation7 + $0xd0] sm:$0xff]  }
 0x1ee   : > { %v1203_v47 = vadd.f32 %v8086_v29, %v1025_v10  ;;  %v1027_v16 = vpop.f32.mrb[53].mxu0 }
 0x1ef   : > { %v1028_v55 = vpop.f32.mrb[54].mxu0  ;;  %v1531_v38 = vpop.f32.mrb[68].mxu1 }
 0x1f0   : > { %v1206_v11 = vadd.f32 %v8096_v15, %v1028_v55  ;;  %v8261_v33 = vadd.f32 %v1523_v50, %v1203_v47  ;;  %v1030_v54 = vpop.f32.mrb[55].mxu0  ;;  %v1533_v29 = vpop.f32.mrb[69].mxu1  ;;  %v6710_v50 = vld [vmem:[#allocation7 + $0x100] sm:$0xff]   ;;  %v6712_v47 = vld [vmem:[#allocation7 + $0x108] sm:$0xff]  }
 0x1f1   : > { %v1534_v36 = vpop.f32.mrb[70].mxu1  ;;  %5636 = vmatprep.subr.bf16.mxu0 %v6710_v50  ;;  %v6714_v54 = vld [vmem:[#allocation7 + $0x170] sm:$0xff]  }
 0x1f2   : > { %v8263_v28 = vadd.f32 %v1526_v27, %v1206_v11  ;;  %6193 = vmatmul.mubr.msk.bf16.gmra.mrb[160].mxu0 %vm7237_vm2, %v7650_v23  ;;  %v1536_v15 = vpop.f32.mrb[71].mxu1  ;;  %v6711_v27 = vld [vmem:[#allocation7 + $0xc0] sm:$0xff]   ;;  %6212 = vmatprep.subr.bf16.mxu1 %v6714_v54 }
 0x1f3   : > { %6196 = vmatprep.mubr.msk.bf16.mxu0 %vm7237_vm2, %v7680_v37  ;;  %5637 = vmatpush3.bf16.msra.mxu0 %v6711_v27 }
 0x1f4   : > { %5638 = vmatprep.subr.bf16.mxu0 %v6712_v47  ;;  %6213 = vmatpush3.bf16.msra.mxu1 %v6714_v54  ;;  %v6722_v47 = vld [vmem:[#allocation7 + $0xe8] sm:$0xff]  }
 0x1f5   : > { %v1033_v9 = vpop.f32.mrb[56].mxu0 }
 0x1f6   : > { %v1211_v8 = vadd.f32 %v8115_v6, %v1033_v9  ;;  %v1035_v32 = vpop.f32.mrb[57].mxu0 }
 0x1f7   : > { %v1036_v46 = vpop.f32.mrb[58].mxu0  ;;  %v1539_v62 = vpop.f32.mrb[72].mxu1  ;;  %5639 = vmatpush3.bf16.msra.mxu0 %v6713_v39  ;;  %v6717_v32 = vld [vmem:[#allocation7 + $0x118] sm:$0xff]  }
 0x1f8   : > { %v1214_v18 = vadd.f32 %v8122_v53, %v1036_v46  ;;  %v8274_v23 = vadd.f32 %v1531_v38, %v1211_v8  ;;  %v1038_v20 = vpop.f32.mrb[59].mxu0  ;;  %v1541_v37 = vpop.f32.mrb[73].mxu1 }
 0x1f9   : > { %v1542_v58 = vpop.f32.mrb[74].mxu1  ;;  %v6718_v20 = vld [vmem:[#allocation7 + $0xd8] sm:$0xff]  }
 0x1fa   : > { %v8276_v31 = vadd.f32 %v1534_v36, %v1214_v18  ;;  %6197 = vmatmul.mubr.msk.bf16.gmra.mrb[164].mxu0 %vm7237_vm2, %v5140_v45  ;;  %v1544_v1 = vpop.f32.mrb[75].mxu1 }
 0x1fb   : > { %v6719_v1 = vld [vmem:[#allocation7 + $0x120] sm:$0xff]  }
 0x1fd   : > { %v1041_v6 = vpop.f32.mrb[60].mxu0 }
 0x1fe   : > { %v1219_v13 = vadd.f32 %v8110_v49, %v1041_v6  ;;  %v1043_v10 = vpop.f32.mrb[61].mxu0  ;;  %v6715_v49 = vld [vmem:[#allocation7 + $0x110] sm:$0xff]  }
 0x1ff   : > { %v1044_v53 = vpop.f32.mrb[62].mxu0  ;;  %v1547_v11 = vpop.f32.mrb[76].mxu1  ;;  %5640 = vmatprep.subr.bf16.mxu0 %v6715_v49 }
 0x200   : > { %v1222_v16 = vadd.f32 %v8120_v4, %v1044_v53  ;;  %v8282_v55 = vadd.f32 %v1539_v62, %v1219_v13  ;;  %v1046_v24 = vpop.f32.mrb[63].mxu0  ;;  %v1549_v7 = vpop.f32.mrb[77].mxu1  ;;  %5641 = vmatpush3.bf16.msra.mxu0 %v6716_v56  ;;  %v403_v56 = vrot.slane %v8255_v19, 7 }
 0x201   : > { %v1550_v29 = vpop.f32.mrb[78].mxu1  ;;  %5642 = vmatprep.subr.bf16.mxu0 %v6717_v32  ;;  %v6725_v7 = vld [vmem:[#allocation7 + $0xf0] sm:$0xff]   ;;  %v644_v32 = vpack.c.bf16 %v8255_v19, %v8252_v42 }
 0x202   : > { %v8284_v38 = vadd.f32 %v1542_v58, %v1222_v16  ;;  %v1552_v36 = vpop.f32.mrb[79].mxu1 }
 0x203   : > { %v402_v36 = vrot.slane %v8252_v42, 7  ;;  %2100 = vmatprep.mubr.bf16.mxu1 %v644_v32 }
 0x204   : > { %5643 = vmatpush3.bf16.msra.mxu0 %v6718_v20 }
 0x205   : > { %v1049_v15 = vpop.f32.mrb[64].mxu0  ;;  %5644 = vmatprep.subr.bf16.mxu0 %v6719_v1 }
 0x206   : > { %v1227_v4 = vadd.f32 %v8137_v22, %v1049_v15  ;;  %v1051_v9 = vpop.f32.mrb[65].mxu0  ;;  %v6720_v22 = vld [vmem:[#allocation7 + $0xe0] sm:$0xff]  }
 0x207   : > { %v1052_v8 = vpop.f32.mrb[66].mxu0  ;;  %v1555_v62 = vpop.f32.mrb[80].mxu1 }
 0x208   : > { %v1230_v45 = vadd.f32 %v8142_v14, %v1052_v8  ;;  %v8288_v46 = vadd.f32 %v1547_v11, %v1227_v4  ;;  %v1054_v18 = vpop.f32.mrb[67].mxu0  ;;  %v1557_v58 = vpop.f32.mrb[81].mxu1  ;;  %5645 = vmatpush3.bf16.msra.mxu0 %v6720_v22  ;;  %v6721_v14 = vld [vmem:[#allocation7 + $0x128] sm:$0xff]   ;;  %v6724_v11 = vld [vmem:[#allocation7 + $0x130] sm:$0xff]   ;;  %v6726_v4 = vld [vmem:[#allocation7 + $0x138] sm:$0xff]  }
 0x209   : > { %v1558_v50 = vpop.f32.mrb[82].mxu1  ;;  %5646 = vmatprep.subr.bf16.mxu0 %v6721_v14  ;;  %v6727_v8 = vld [vmem:[#allocation7 + $0xf8] sm:$0xff]  }
 0x20a   : > { %v8290_v37 = vadd.f32 %v1550_v29, %v1230_v45  ;;  %v1560_v27 = vpop.f32.mrb[83].mxu1  ;;  %v404_v45 = vsel %vm344_vm3, %v402_v36, %v403_v56  ;;  %v6723_v50 = vld [vmem:[#allocation7 + $0x178] sm:$0xff]  }
 0x20b   : > { %v5086_v20 = vpack.c.bf16 %v404_v45, %v402_v36  ;;  %6214 = vmatprep.subr.bf16.mxu1 %v6723_v50 }
 0x20c   : > { %5647 = vmatpush3.bf16.msra.mxu0 %v6722_v47  ;;  %6215 = vmatpush3.bf16.msra.mxu1 %v6723_v50 }
 0x20d   : > { %v1057_v6 = vpop.f32.mrb[68].mxu0  ;;  %5648 = vmatprep.subr.bf16.mxu0 %v6724_v11  ;;  %5087 = vmatmul.mubr.msk.bf16.gmra.mrb[152].mxu1 %vm7430_vm5, %v5086_v20 }
 0x20e   : > { %v1059_v13 = vpop.f32.mrb[69].mxu0 }
 0x20f   : > { %v1060_v10 = vpop.f32.mrb[70].mxu0  ;;  %v1966_v16 = vpop.f32.mrb[84].mxu1 }
 0x210   : > { %v1062_v53 = vpop.f32.mrb[71].mxu0  ;;  %v1968_v24 = vpop.f32.mrb[85].mxu1  ;;  %5649 = vmatpush3.bf16.msra.mxu0 %v6725_v7 }
 0x211   : > { %v1969_v39 = vpop.f32.mrb[86].mxu1  ;;  %5650 = vmatprep.subr.bf16.mxu0 %v6726_v4 }
 0x212   : > { %v1971_v54 = vpop.f32.mrb[87].mxu1 }
 0x214   : > { %5651 = vmatpush3.bf16.msra.mxu0 %v6727_v8 }
 0x215   : > { %v1419_v29 = vpop.f32.mrb[72].mxu0 }
 0x216   : > { %v1421_v49 = vpop.f32.mrb[73].mxu0 }
 0x217   : > { %v1422_v15 = vpop.f32.mrb[74].mxu0  ;;  %v8297_v18 = vpop.f32.mrb[88].mxu1 }
 0x218   : > { %v1424_v9 = vpop.f32.mrb[75].mxu0  ;;  %v1976_v62 = vpop.f32.mrb[89].mxu1 }
 0x219   : > { %v8299_v58 = vpop.f32.mrb[90].mxu1  ;;  %v6728_v9 = vld [vmem:[#allocation7 + $0x40] sm:$0xff]  }
 0x21a   : > { %v1979_v1 = vpop.f32.mrb[91].mxu1  ;;  %5772 = vmatprep.subr.bf16.mxu1 %v6728_v9 }
 0x21d   : > { %v1427_v27 = vpop.f32.mrb[76].mxu0 }
 0x21e   : > { %v1428_v42 = vadd.f32 %v1427_v27, %v8053_v40  ;;  %v1429_v19 = vpop.f32.mrb[77].mxu0 }
 0x21f   : > { %v1430_v22 = vpop.f32.mrb[78].mxu0  ;;  %v8305_v10 = vpop.f32.mrb[92].mxu1 }
 0x220   : > { %v1431_v6 = vadd.f32 %v1430_v22, %v8060_v0  ;;  %v1432_v13 = vpop.f32.mrb[79].mxu0  ;;  %v1984_v14 = vpop.f32.mrb[93].mxu1 }
 0x221   : > { %v8307_v53 = vpop.f32.mrb[94].mxu1 }
 0x222   : > { %v1987_v47 = vpop.f32.mrb[95].mxu1 }
 0x225   : > { %v1435_v16 = vpop.f32.mrb[80].mxu0 }
 0x226   : > { %v1436_v24 = vadd.f32 %v1435_v16, %v8077_v61  ;;  %v1437_v39 = vpop.f32.mrb[81].mxu0  ;;  %v9688_v16 = vld [vmem:[#allocation12_spill] sm:$0xff] }
 0x227   : > { %v1438_v11 = vpop.f32.mrb[82].mxu0  ;;  %v8311_v7 = vpop.f32.mrb[96].mxu1 }
 0x228   : > { %v1439_v54 = vadd.f32 %v1438_v11, %v8084_v35  ;;  %v1440_v40 = vpop.f32.mrb[83].mxu0  ;;  %v1992_v29 = vpop.f32.mrb[97].mxu1 }
 0x229   : > { %v8313_v49 = vpop.f32.mrb[98].mxu1  ;;  %v9689_v29 = vld [vmem:[#allocation13_spill] sm:$0xff] }
 0x22a   : > { %v1995_v0 = vpop.f32.mrb[99].mxu1 }
 0x22d   : > { %v1443_v36 = vpop.f32.mrb[84].mxu0 }
 0x22e   : > { %v1444_v56 = vadd.f32 %v1443_v36, %v8104_v3  ;;  %v1445_v15 = vpop.f32.mrb[85].mxu0 }
 0x22f   : > { %v1446_v4 = vpop.f32.mrb[86].mxu0  ;;  %v8317_v32 = vpop.f32.mrb[100].mxu1 }
 0x230   : > { %v1447_v8 = vadd.f32 %v1446_v4, %v8108_v12  ;;  %v1448_v61 = vpop.f32.mrb[87].mxu0  ;;  %v2000_v35 = vpop.f32.mrb[101].mxu1 }
 0x231   : > { %v8319_v45 = vpop.f32.mrb[102].mxu1 }
 0x232   : > { %v2003_v20 = vpop.f32.mrb[103].mxu1 }
 0x235   : > { %v1451_v62 = vpop.f32.mrb[88].mxu0 }
 0x236   : > { %v1452_v50 = vadd.f32 %v1451_v62, %v8128_v48  ;;  %v1453_v1 = vpop.f32.mrb[89].mxu0 }
 0x237   : > { %v1454_v27 = vpop.f32.mrb[90].mxu0  ;;  %v8323_v22 = vpop.f32.mrb[104].mxu1 }
 0x238   : > { %v1455_v3 = vadd.f32 %v1454_v27, %v8132_v63  ;;  %v1456_v19 = vpop.f32.mrb[91].mxu0  ;;  %v2008_v13 = vpop.f32.mrb[105].mxu1 }
 0x239   : > { %v8325_v12 = vpop.f32.mrb[106].mxu1 }
 0x23a   : > { %v2011_v14 = vpop.f32.mrb[107].mxu1 }
 0x23d   : > { %v1459_v47 = vpop.f32.mrb[92].mxu0 }
 0x23e   : > { %v1460_v39 = vadd.f32 %v1459_v47, %v9688_v16  ;;  %v1461_v11 = vpop.f32.mrb[93].mxu0 }
 0x23f   : > { %v1462_v40 = vpop.f32.mrb[94].mxu0  ;;  %v8329_v48 = vpop.f32.mrb[108].mxu1 }
 0x240   : > { %v1463_v0 = vadd.f32 %v1462_v40, %v9689_v29  ;;  %v1464_v36 = vpop.f32.mrb[95].mxu0  ;;  %v2016_v15 = vpop.f32.mrb[109].mxu1 }
 0x241   : > { %v8331_v4 = vpop.f32.mrb[110].mxu1 }
 0x242   : > { %v2019_v63 = vpop.f32.mrb[111].mxu1 }
 0x245   : > { %v6114_v9 = vpop.f32.mrb[96].mxu0 }
 0x246   : > { %v8333_v61 = vadd.f32 %v6114_v9, %v1428_v42  ;;  %v1596_v35 = vpop.f32.mrb[97].mxu0 }
 0x247   : > { %v6115_v20 = vpop.f32.mrb[98].mxu0  ;;  %v8337_v27 = vpop.f32.mrb[112].mxu1 }
 0x248   : > { %v8335_v62 = vadd.f32 %v6115_v20, %v1431_v6  ;;  %v1599_v1 = vpop.f32.mrb[99].mxu0  ;;  %v2024_v19 = vpop.f32.mrb[113].mxu1 }
 0x249   : > { %v8339_v13 = vpop.f32.mrb[114].mxu1 }
 0x24a   : > { %v2027_v14 = vpop.f32.mrb[115].mxu1 }
 0x24d   : > { %v6118_v47 = vpop.f32.mrb[100].mxu0 }
 0x24e   : > { %v8341_v16 = vadd.f32 %v6118_v47, %v1444_v56  ;;  %v1612_v11 = vpop.f32.mrb[101].mxu0 }
 0x24f   : > { %v8343_v40 = vadd.f32 %v1612_v11, %v1436_v24  ;;  %v6119_v29 = vpop.f32.mrb[102].mxu0  ;;  %v8349_v6 = vpop.f32.mrb[116].mxu1 }
 0x250   : > { %v8345_v42 = vadd.f32 %v6119_v29, %v1447_v8  ;;  %v1615_v36 = vpop.f32.mrb[103].mxu0  ;;  %v2032_v63 = vpop.f32.mrb[117].mxu1 }
 0x251   : > { %v8347_v15 = vadd.f32 %v1615_v36, %v1439_v54  ;;  %v8351_v9 = vpop.f32.mrb[118].mxu1 }
 0x252   : > { %9690 = vst [vmem:[#allocation14_spill] sm:$0xff] %v8351_v9  ;;  %v2035_v35 = vpop.f32.mrb[119].mxu1 }
 0x255   : > { %v6122_v20 = vpop.f32.mrb[104].mxu0 }
 0x256   : > { %v8353_v1 = vadd.f32 %v6122_v20, %v1460_v39  ;;  %v1628_v56 = vpop.f32.mrb[105].mxu0 }
 0x257   : > { %v8355_v19 = vadd.f32 %v1628_v56, %v1452_v50  ;;  %v6123_v24 = vpop.f32.mrb[106].mxu0  ;;  %v8361_v54 = vpop.f32.mrb[120].mxu1 }
 0x258   : > { %v8357_v14 = vadd.f32 %v6123_v24, %v1463_v0  ;;  %v1631_v8 = vpop.f32.mrb[107].mxu0  ;;  %v2040_v11 = vpop.f32.mrb[121].mxu1  ;;  %v6744_v0 = vld [vmem:[#allocation7 + $0x1c0] sm:$0xff]  }
 0x259   : > { %v8359_v47 = vadd.f32 %v1631_v8, %v1455_v3  ;;  %v8363_v29 = vpop.f32.mrb[122].mxu1  ;;  %5908 = vmatprep.subr.bf16.mxu0 %v6744_v0 }
 0x25a   : > { %v2043_v36 = vpop.f32.mrb[123].mxu1 }
 0x25d   : > { %v6126_v63 = vpop.f32.mrb[108].mxu0 }
 0x25e   : > { %v8366_v35 = vadd.f32 %v6126_v63, %v8180_v34  ;;  %v1644_v39 = vpop.f32.mrb[109].mxu0 }
 0x25f   : > { %v8369_v50 = vadd.f32 %v1644_v39, %v8165_v26  ;;  %v6127_v20 = vpop.f32.mrb[110].mxu0  ;;  %v8377_v8 = vpop.f32.mrb[124].mxu1 }
 0x260   : > { %v8372_v56 = vadd.f32 %v6127_v20, %v8183_v59  ;;  %v1647_v3 = vpop.f32.mrb[111].mxu0  ;;  %9691 = vst [vmem:[#allocation15_spill] sm:$0xff] %v8377_v8  ;;  %v2048_v11 = vpop.f32.mrb[125].mxu1 }
 0x261   : > { %v8375_v24 = vadd.f32 %v1647_v3, %v8168_v51  ;;  %v8379_v36 = vpop.f32.mrb[126].mxu1 }
 0x262   : > { %9692 = vst [vmem:[#allocation16_spill] sm:$0xff] %v8379_v36  ;;  %v2051_v34 = vpop.f32.mrb[127].mxu1 }
 0x265   : > { %v6130_v63 = vpop.f32.mrb[112].mxu0 }
 0x266   : > { %v8382_v26 = vadd.f32 %v6130_v63, %v8204_v52  ;;  %v1660_v39 = vpop.f32.mrb[113].mxu0 }
 0x267   : > { %v8385_v9 = vadd.f32 %v1660_v39, %v8192_v41  ;;  %v6131_v59 = vpop.f32.mrb[114].mxu0  ;;  %v8393_v0 = vpop.f32.mrb[128].mxu1 }
 0x268   : > { %v8388_v20 = vadd.f32 %v6131_v59, %v8207_v44  ;;  %v1663_v51 = vpop.f32.mrb[115].mxu0  ;;  %v2056_v11 = vpop.f32.mrb[129].mxu1 }
 0x269   : > { %v8391_v3 = vadd.f32 %v1663_v51, %v8195_v57  ;;  %v8395_v34 = vpop.f32.mrb[130].mxu1 }
 0x26a   : > { %9693 = vst [vmem:[#allocation17_spill] sm:$0xff] %v8395_v34  ;;  %v2059_v36 = vpop.f32.mrb[131].mxu1 }
 0x26d   : > { %v6134_v52 = vpop.f32.mrb[116].mxu0 }
 0x26e   : > { %v8398_v63 = vadd.f32 %v6134_v52, %v8229_v25  ;;  %v1676_v41 = vpop.f32.mrb[117].mxu0 }
 0x26f   : > { %v8401_v39 = vadd.f32 %v1676_v41, %v8217_v60  ;;  %v6135_v44 = vpop.f32.mrb[118].mxu0  ;;  %v8409_v11 = vpop.f32.mrb[132].mxu1 }
 0x270   : > { %v8404_v59 = vadd.f32 %v6135_v44, %v8231_v43  ;;  %v1679_v57 = vpop.f32.mrb[119].mxu0  ;;  %9694 = vst [vmem:[#allocation18_spill] sm:$0xff] %v8409_v11  ;;  %v2064_v34 = vpop.f32.mrb[133].mxu1 }
 0x271   : > { %v8407_v51 = vadd.f32 %v1679_v57, %v8219_v5  ;;  %v8411_v36 = vpop.f32.mrb[134].mxu1 }
 0x272   : > { %9695 = vst [vmem:[#allocation19_spill] sm:$0xff] %v8411_v36  ;;  %v2067_v8 = vpop.f32.mrb[135].mxu1 }
 0x275   : > { %v6138_v25 = vpop.f32.mrb[120].mxu0 }
 0x276   : > { %v8414_v52 = vadd.f32 %v6138_v25, %v8261_v33  ;;  %v1692_v60 = vpop.f32.mrb[121].mxu0 }
 0x277   : > { %v8417_v41 = vadd.f32 %v1692_v60, %v8241_v30  ;;  %v6139_v43 = vpop.f32.mrb[122].mxu0  ;;  %v8425_v34 = vpop.f32.mrb[136].mxu1 }
 0x278   : > { %v8420_v44 = vadd.f32 %v6139_v43, %v8263_v28  ;;  %v1695_v5 = vpop.f32.mrb[123].mxu0  ;;  %v2072_v36 = vpop.f32.mrb[137].mxu1 }
 0x279   : > { %v8423_v57 = vadd.f32 %v1695_v5, %v8243_v21  ;;  %v8427_v8 = vpop.f32.mrb[138].mxu1 }
 0x27a   : > { %9696 = vst [vmem:[#allocation20_spill] sm:$0xff] %v8420_v44  ;;  %v2075_v11 = vpop.f32.mrb[139].mxu1 }
 0x27b   : > { %9697 = vst [vmem:[#allocation21_spill] sm:$0xff] %v8423_v57 }
 0x27d   : > { %v6142_v33 = vpop.f32.mrb[124].mxu0 }
 0x27e   : > { %v8430_v25 = vadd.f32 %v6142_v33, %v8282_v55  ;;  %v1708_v30 = vpop.f32.mrb[125].mxu0 }
 0x27f   : > { %v8433_v60 = vadd.f32 %v1708_v30, %v8274_v23  ;;  %v6143_v28 = vpop.f32.mrb[126].mxu0  ;;  %v8441_v36 = vpop.f32.mrb[140].mxu1 }
 0x280   : > { %9698 = vst [vmem:[#allocation22_spill] sm:$0xff] %v8430_v25  ;;  %v8436_v43 = vadd.f32 %v6143_v28, %v8284_v38  ;;  %v1711_v21 = vpop.f32.mrb[127].mxu0  ;;  %v2080_v57 = vpop.f32.mrb[141].mxu1 }
 0x281   : > { %9699 = vst [vmem:[#allocation23_spill] sm:$0xff] %v8433_v60  ;;  %v8439_v5 = vadd.f32 %v1711_v21, %v8276_v31  ;;  %v8443_v11 = vpop.f32.mrb[142].mxu1 }
 0x282   : > { %9700 = vst [vmem:[#allocation24_spill] sm:$0xff] %v8436_v43  ;;  %9702 = vst [vmem:[#allocation12_spill] sm:$0xff] %v8443_v11  ;;  %v2083_v44 = vpop.f32.mrb[143].mxu1 }
 0x283   : > { %9701 = vst [vmem:[#allocation25_spill] sm:$0xff] %v8439_v5 }
 0x285   : > { %v6146_v55 = vpop.f32.mrb[128].mxu0 }
 0x286   : > { %v1724_v33 = vpop.f32.mrb[129].mxu0 }
 0x287   : > { %v8446_v25 = vadd.f32 %v1724_v33, %v8288_v46  ;;  %v6147_v23 = vpop.f32.mrb[130].mxu0  ;;  %v8451_v28 = vpop.f32.mrb[144].mxu1  ;;  %v8459_v46 = vld [vmem:[%s9591_s3] ss:$0 sm:$0xff] }
 0x288   : > { %v1727_v30 = vpop.f32.mrb[131].mxu0  ;;  %v2088_v31 = vpop.f32.mrb[145].mxu1 }
 0x289   : > { %9703 = vst [vmem:[#allocation13_spill] sm:$0xff] %v8446_v25  ;;  %v8449_v38 = vadd.f32 %v1727_v30, %v8290_v37  ;;  %v8453_v21 = vpop.f32.mrb[146].mxu1 }
 0x28a   : > { %v2091_v5 = vpop.f32.mrb[147].mxu1 }
 0x28b   : > { %9704 = vst [vmem:[#allocation26_spill] sm:$0xff] %v8449_v38 }
 0x28d   : > { %v6166_v57 = vpop.f32.mrb[132].mxu0 }
 0x28e   : > { %v2152_v43 = vadd.f32 %v6166_v57, %v8297_v18  ;;  %v2143_v44 = vpop.f32.mrb[133].mxu0 }
 0x28f   : > { %v6167_v55 = vpop.f32.mrb[134].mxu0  ;;  %v8463_v30 = vpop.f32.mrb[148].mxu1 }
 0x290   : > { %v2288_v33 = vadd.f32 %v2152_v43, %v8333_v61  ;;  %v2155_v37 = vadd.f32 %v6167_v55, %v8299_v58  ;;  %v2146_v23 = vpop.f32.mrb[135].mxu0  ;;  %9705 = vst [vmem:[#allocation27_spill] sm:$0xff] %v8463_v30  ;;  %v2096_v38 = vpop.f32.mrb[149].mxu1 }
 0x291   : > { %v8467_v18 = vpop.f32.mrb[150].mxu1 }
 0x292   : > { %v2329_v31 = vadd.f32 %v8459_v46, %v2288_v33  ;;  %v2289_v5 = vadd.f32 %v2155_v37, %v8335_v62  ;;  %v2099_v25 = vpop.f32.mrb[151].mxu1 }
 0x294   : > { %v2365_v57 = vmax.f32 %v2329_v31, 0.0  ;;  %v2330_v44 = vadd.f32 %v8459_v46, %v2289_v5 }
 0x295   : > { %v6170_v11 = vpop.f32.mrb[136].mxu0 }
 0x296   : > { %v2366_v60 = vmax.f32 %v2330_v44, 0.0  ;;  %v2168_v61 = vadd.f32 %v6170_v11, %v8311_v7  ;;  %v2159_v43 = vpop.f32.mrb[137].mxu0  ;;  %v2583_v58 = vrot.slane %v2365_v57, 7  ;;  %v2691_v31 = vrot.slane %v2365_v57, 1 }
 0x297   : > { %v2160_v55 = vadd.f32 %v2159_v43, %v8305_v10  ;;  %v6171_v23 = vpop.f32.mrb[138].mxu0  ;;  %v6747_v43 = vld [vmem:[#allocation7 + $0x1c8] sm:$0xff]  }
 0x298   : > { %v2584_v30 = vrot.slane %v2366_v60, 7  ;;  %v2292_v33 = vadd.f32 %v2168_v61, %v8341_v16  ;;  %v2171_v62 = vadd.f32 %v6171_v23, %v8313_v49  ;;  %v2162_v38 = vpop.f32.mrb[139].mxu0  ;;  %v8474_v37 = vpack.c.bf16 %v2366_v60, %v2365_v57  ;;  %v6745_v16 = vld [vmem:[#allocation7 + $0x180] sm:$0xff]  }
 0x299   : > { %v2290_v25 = vadd.f32 %v2160_v55, %v8343_v40  ;;  %v2163_v5 = vadd.f32 %v2162_v38, %v8307_v53  ;;  %v2692_v44 = vrot.slane %v2366_v60, 1 }
 0x29a   : > { %v2585_v7 = vsel %vm344_vm3, %v2583_v58, %v2584_v30  ;;  %v2333_v11 = vadd.f32 %v8459_v46, %v2292_v33  ;;  %v2293_v10 = vadd.f32 %v2171_v62, %v8345_v42  ;;  %3123 = vmatprep.mubr.bf16.mxu0 %v8474_v37 }
 0x29b   : > { %v8482_v61 = vpack.c.bf16 %v2585_v7, %v2583_v58  ;;  %v2331_v49 = vadd.f32 %v8459_v46, %v2290_v25  ;;  %v2291_v57 = vadd.f32 %v2163_v5, %v8347_v15  ;;  %v2693_v40 = vsel %vm465_vm0, %v2691_v31, %v2692_v44  ;;  %v6748_v31 = vld [vmem:[#allocation7 + $0x188] sm:$0xff]  }
 0x29c   : > { %v8487_v53 = vmax.f32 %v2333_v11, 0.0  ;;  %v2334_v60 = vadd.f32 %v8459_v46, %v2293_v10  ;;  %v8490_v30 = vpack.c.bf16 %v2692_v44, %v2693_v40  ;;  %v6750_v10 = vld [vmem:[#allocation7 + $0x1d0] sm:$0xff]  }
 0x29d   : > { %9706 = vst [vmem:[#allocation28_spill] sm:$0xff] %v8482_v61  ;;  %v2367_v55 = vmax.f32 %v2331_v49, 0.0  ;;  %v2332_v42 = vadd.f32 %v8459_v46, %v2291_v57  ;;  %v6174_v23 = vpop.f32.mrb[140].mxu0  ;;  %5170 = vmatmul.mubr.msk.bf16.vlgmr.msra.gmra.mrb[168].mxu0 %vm7430_vm5, %v8482_v61 }
 0x29e   : > { %9707 = vst [vmem:[#allocation29_spill] sm:$0xff] %v8490_v30  ;;  %v2697_v58 = vrot.slane %v8487_v53, 1  ;;  %v2370_v15 = vmax.f32 %v2334_v60, 0.0  ;;  %v2184_v33 = vadd.f32 %v6174_v23, %v8323_v22  ;;  %6216 = vmatprep.mubr.msk.bf16.mxu1 %vm7237_vm2, %v8490_v30  ;;  %v2175_v62 = vpop.f32.mrb[141].mxu0  ;;  %v2589_v38 = vrot.slane %v8487_v53, 7  ;;  %5909 = vmatpush3.bf16.msra.mxu0 %v6745_v16 }
 0x29f   : > { %v2694_v25 = vrot.slane %v2367_v55, 1  ;;  %v2368_v5 = vmax.f32 %v2332_v42, 0.0  ;;  %v2176_v44 = vadd.f32 %v2175_v62, %v8317_v32  ;;  %v6175_v7 = vpop.f32.mrb[142].mxu0  ;;  %v2586_v11 = vrot.slane %v2367_v55, 7  ;;  %5910 = vmatprep.subr.bf16.mxu0 %v6747_v43 }
 0x2a0   : > { %v2590_v49 = vrot.slane %v2370_v15, 7  ;;  %v2296_v22 = vadd.f32 %v2184_v33, %v8353_v1  ;;  %v2187_v57 = vadd.f32 %v6175_v7, %v8325_v12  ;;  %v2178_v40 = vpop.f32.mrb[143].mxu0  ;;  %v8506_v60 = vpack.c.bf16 %v2370_v15, %v8487_v53  ;;  %v6729_v7 = vld [vmem:[#allocation7] sm:$0xff]  }
 0x2a1   : > { %v2587_v23 = vrot.slane %v2368_v5, 7  ;;  %v2695_v16 = vrot.slane %v2368_v5, 1  ;;  %v2294_v30 = vadd.f32 %v2176_v44, %v8355_v19  ;;  %v2179_v42 = vadd.f32 %v2178_v40, %v8319_v45  ;;  %v6751_v44 = vld [vmem:[#allocation7 + $0x190] sm:$0xff]  }
 0x2a2   : > { %v2337_v32 = vadd.f32 %v8459_v46, %v2296_v22  ;;  %v2297_v43 = vadd.f32 %v2187_v57, %v8357_v14  ;;  %v8512_v62 = vpack.c.bf16 %v2368_v5, %v2367_v55  ;;  %v2698_v61 = vrot.slane %v2370_v15, 1  ;;  %5911 = vmatpush3.bf16.msra.mxu0 %v6748_v31  ;;  %v6730_v15 = vld [vmem:[#allocation7 + $0x48] sm:$0xff]  }
 0x2a3   : > { %v2696_v12 = vsel %vm465_vm0, %v2694_v25, %v2695_v16  ;;  %v2335_v1 = vadd.f32 %v8459_v46, %v2294_v30  ;;  %v2295_v53 = vadd.f32 %v2179_v42, %v8359_v47  ;;  %v2588_v33 = vsel %vm344_vm3, %v2586_v11, %v2587_v23  ;;  %5912 = vmatprep.subr.bf16.mxu0 %v6750_v10 }
 0x2a4   : > { %v8518_v19 = vpack.c.bf16 %v2695_v16, %v2696_v12  ;;  %v8520_v45 = vmax.f32 %v2337_v32, 0.0  ;;  %v2338_v14 = vadd.f32 %v8459_v46, %v2297_v43  ;;  %3131 = vmatprep.mubr.bf16.mxu0 %v8512_v62  ;;  %v8524_v55 = vpack.c.bf16 %v2588_v33, %v2586_v11  ;;  %v6731_v32 = vld [vmem:[#allocation7 + $0x8] sm:$0xff]  }
 0x2a5   : > { %v8526_v31 = vmax.f32 %v2335_v1, 0.0  ;;  %v2336_v30 = vadd.f32 %v8459_v46, %v2295_v53  ;;  %v6178_v47 = vpop.f32.mrb[144].mxu0  ;;  %v2699_v25 = vsel %vm465_vm0, %v2697_v58, %v2698_v61  ;;  %v2591_v5 = vsel %vm344_vm3, %v2589_v38, %v2590_v49  ;;  %v6753_v58 = vld [vmem:[#allocation7 + $0x1d8] sm:$0xff]   ;;  %v6732_v53 = vld [vmem:[#allocation7 + $0x50] sm:$0xff]  }
 0x2a6   : > { %v2703_v10 = vrot.slane %v8520_v45, 1  ;;  %v8532_v22 = vmax.f32 %v2338_v14, 0.0  ;;  %v2200_v57 = vadd.f32 %v6178_v47, %v8337_v27  ;;  %v2191_v40 = vpop.f32.mrb[145].mxu0  ;;  %5174 = vmatmul.mubr.msk.bf16.gmra.mrb[172].mxu0 %vm7430_vm5, %v8524_v55  ;;  %6217 = vmatmul.mubr.msk.bf16.vlgmr.msra.gmra.mrb[156].mxu1 %vm7237_vm2, %v8518_v19  ;;  %v8541_v11 = vpack.c.bf16 %v2698_v61, %v2699_v25 }
 0x2a7   : > { %v2700_v49 = vrot.slane %v8526_v31, 1  ;;  %v2372_v23 = vmax.f32 %v2336_v30, 0.0  ;;  %v2192_v16 = vadd.f32 %v2191_v40, %v8329_v48  ;;  %v6179_v42 = vpop.f32.mrb[146].mxu0  ;;  %3139 = vmatprep.mubr.bf16.mxu0 %v8506_v60  ;;  %5773 = vmatpush3.bf16.msra.mxu1 %v6729_v7  ;;  %v8546_v27 = vpack.c.bf16 %v2591_v5, %v2589_v38  ;;  %v6754_v30 = vld [vmem:[#allocation7 + $0x198] sm:$0xff]  }
 0x2a8   : > { %v2596_v43 = vrot.slane %v8532_v22, 7  ;;  %v2300_v12 = vadd.f32 %v2200_v57, %v8366_v35  ;;  %v2203_v61 = vadd.f32 %v6179_v42, %v8339_v13  ;;  %6220 = vmatprep.mubr.msk.bf16.mxu1 %vm7237_vm2, %v8541_v11  ;;  %v2194_v1 = vpop.f32.mrb[147].mxu0  ;;  %5774 = vmatprep.subr.bf16.mxu1 %v6730_v15  ;;  %v2704_v48 = vrot.slane %v8532_v22, 1 }
 0x2a9   : > { %v2593_v33 = vrot.slane %v2372_v23, 7  ;;  %v2298_v38 = vadd.f32 %v2192_v16, %v8369_v50  ;;  %v2195_v7 = vadd.f32 %v2194_v1, %v8331_v4  ;;  %v2701_v14 = vrot.slane %v2372_v23, 1  ;;  %5913 = vmatpush3.bf16.msra.mxu0 %v6751_v44 }
 0x2aa   : > { %v2341_v35 = vadd.f32 %v8459_v46, %v2300_v12  ;;  %v2301_v13 = vadd.f32 %v2203_v61, %v8372_v56  ;;  %v8560_v47 = vpack.c.bf16 %v2372_v23, %v8526_v31  ;;  %v2705_v15 = vsel %vm465_vm0, %v2703_v10, %v2704_v48  ;;  %5914 = vmatprep.subr.bf16.mxu0 %v6753_v58  ;;  %v6733_v10 = vld [vmem:[#allocation7 + $0x10] sm:$0xff]   ;;  %v6755_v58 = vld [vmem:[#allocation7 + $0x1e0] sm:$0xff]  }
 0x2ab   : > { %v2339_v25 = vadd.f32 %v8459_v46, %v2298_v38  ;;  %v2299_v5 = vadd.f32 %v2195_v7, %v8375_v24  ;;  %v2702_v50 = vsel %vm465_vm0, %v2700_v49, %v2701_v14  ;;  %v8566_v4 = vpack.c.bf16 %v2704_v48, %v2705_v15  ;;  %5775 = vmatpush3.bf16.msra.mxu1 %v6731_v32  ;;  %v6734_v32 = vld [vmem:[#allocation7 + $0x58] sm:$0xff]   ;;  %v6756_v12 = vld [vmem:[#allocation7 + $0x1a0] sm:$0xff]  }
 0x2ac   : > { %v8568_v44 = vmax.f32 %v2341_v35, 0.0  ;;  %v2342_v57 = vadd.f32 %v8459_v46, %v2301_v13  ;;  %v8571_v56 = vpack.c.bf16 %v2701_v14, %v2702_v50  ;;  %v2592_v40 = vrot.slane %v8526_v31, 7  ;;  %5776 = vmatprep.subr.bf16.mxu1 %v6732_v53  ;;  %v6757_v53 = vld [vmem:[#allocation7 + $0x1e8] sm:$0xff]  }
 0x2ad   : > { %v8574_v23 = vmax.f32 %v2339_v25, 0.0  ;;  %v2340_v24 = vadd.f32 %v8459_v46, %v2299_v5  ;;  %v6182_v16 = vpop.f32.mrb[148].mxu0  ;;  %v8579_v49 = vpack.c.bf16 %v8532_v22, %v8520_v45  ;;  %v2595_v42 = vrot.slane %v8520_v45, 7  ;;  %5915 = vmatpush3.bf16.msra.mxu0 %v6754_v30  ;;  %v6737_v22 = vld [vmem:[#allocation7 + $0x20] sm:$0xff]  }
 0x2ae   : > { %v2709_v61 = vrot.slane %v8568_v44, 1  ;;  %v8583_v31 = vmax.f32 %v2342_v57, 0.0  ;;  %v2216_v1 = vadd.f32 %v6182_v16, %v8361_v54  ;;  %v2207_v48 = vpop.f32.mrb[149].mxu0  ;;  %5178 = vmatmul.mubr.msk.bf16.gmra.mrb[176].mxu0 %vm7430_vm5, %v8546_v27  ;;  %6221 = vmatmul.mubr.msk.bf16.gmra.mrb[160].mxu1 %vm7237_vm2, %v8571_v56  ;;  %v2594_v45 = vsel %vm344_vm3, %v2592_v40, %v2593_v33  ;;  %v9708_v57 = vld [vmem:[#allocation14_spill] sm:$0xff]  ;;  %v6736_v16 = vld [vmem:[#allocation7 + $0x60] sm:$0xff]  }
 0x2af   : > { %v2706_v38 = vrot.slane %v8574_v23, 1  ;;  %v8594_v7 = vmax.f32 %v2340_v24, 0.0  ;;  %v2208_v14 = vadd.f32 %v2207_v48, %v8349_v6  ;;  %v6183_v30 = vpop.f32.mrb[150].mxu0  ;;  %3147 = vmatprep.mubr.bf16.mxu0 %v8560_v47  ;;  %6224 = vmatprep.mubr.msk.bf16.mxu1 %vm7237_vm2, %v8566_v4  ;;  %v8601_v54 = vpack.c.bf16 %v2594_v45, %v2592_v40  ;;  %v6735_v6 = vld [vmem:[#allocation7 + $0x18] sm:$0xff]  }
 0x2b0   : > { %v2602_v35 = vrot.slane %v8583_v31, 7  ;;  %v2304_v33 = vadd.f32 %v2216_v1, %v8382_v26  ;;  %v2219_v13 = vadd.f32 %v6183_v30, %v8363_v29  ;;  %v2210_v15 = vpop.f32.mrb[151].mxu0  ;;  %v2710_v25 = vrot.slane %v8583_v31, 1  ;;  %5777 = vmatpush3.bf16.msra.mxu1 %v6733_v10  ;;  %5916 = vmatprep.subr.bf16.mxu0 %v6755_v58  ;;  %v6758_v26 = vld [vmem:[#allocation7 + $0x1a8] sm:$0xff]  }
 0x2b1   : > { %v2599_v5 = vrot.slane %v8594_v7, 7  ;;  %v2302_v50 = vadd.f32 %v2208_v14, %v8385_v9  ;;  %v2211_v24 = vadd.f32 %v2210_v15, %v9708_v57  ;;  %v2707_v40 = vrot.slane %v8594_v7, 1  ;;  %5778 = vmatprep.subr.bf16.mxu1 %v6734_v32  ;;  %5917 = vmatpush3.bf16.msra.mxu0 %v6756_v12  ;;  %v6761_v15 = vld [vmem:[#allocation7 + $0x1b0] sm:$0xff]  }
 0x2b2   : > { %v2345_v29 = vadd.f32 %v8459_v46, %v2304_v33  ;;  %v2305_v1 = vadd.f32 %v2219_v13, %v8388_v20  ;;  %v2711_v10 = vsel %vm465_vm0, %v2709_v61, %v2710_v25  ;;  %v2597_v58 = vsel %vm344_vm3, %v2595_v42, %v2596_v43  ;;  %5918 = vmatprep.subr.bf16.mxu0 %v6757_v53  ;;  %v6760_v43 = vld [vmem:[#allocation7 + $0x1f0] sm:$0xff]   ;;  %v6738_v13 = vld [vmem:[#allocation7 + $0x68] sm:$0xff]  }
 0x2b3   : > { %v2343_v9 = vadd.f32 %v8459_v46, %v2302_v50  ;;  %v2303_v48 = vadd.f32 %v2211_v24, %v8391_v3  ;;  %v2708_v32 = vsel %vm465_vm0, %v2706_v38, %v2707_v40  ;;  %v8620_v45 = vpack.c.bf16 %v2710_v25, %v2711_v10  ;;  %v9710_v10 = vld [vmem:[#allocation17_spill] sm:$0xff] }
 0x2b4   : > { %v8622_v12 = vmax.f32 %v2345_v29, 0.0  ;;  %v2346_v14 = vadd.f32 %v8459_v46, %v2305_v1  ;;  %v8625_v20 = vpack.c.bf16 %v2707_v40, %v2708_v32  ;;  %v8627_v61 = vpack.c.bf16 %v2597_v58, %v2595_v42  ;;  %5779 = vmatpush3.bf16.msra.mxu1 %v6735_v6  ;;  %v9709_v40 = vld [vmem:[#allocation15_spill] sm:$0xff]  ;;  %v6739_v32 = vld [vmem:[#allocation7 + $0x28] sm:$0xff]  }
 0x2b5   : > { %v8629_v53 = vmax.f32 %v2343_v9, 0.0  ;;  %v2344_v30 = vadd.f32 %v8459_v46, %v2303_v48  ;;  %v6186_v3 = vpop.f32.mrb[152].mxu0  ;;  %v8634_v38 = vpack.c.bf16 %v8594_v7, %v8574_v23  ;;  %v2598_v33 = vrot.slane %v8574_v23, 7  ;;  %5780 = vmatprep.subr.bf16.mxu1 %v6736_v16  ;;  %5919 = vmatpush3.bf16.msra.mxu0 %v6758_v26  ;;  %v6762_v7 = vld [vmem:[#allocation7 + $0x1f8] sm:$0xff]  }
 0x2b6   : > { %v2715_v42 = vrot.slane %v8622_v12, 1  ;;  %v8638_v25 = vmax.f32 %v2346_v14, 0.0  ;;  %v2232_v6 = vadd.f32 %v6186_v3, %v8393_v0  ;;  %v2223_v50 = vpop.f32.mrb[153].mxu0  ;;  %5182 = vmatmul.mubr.msk.bf16.gmra.mrb[180].mxu0 %vm7430_vm5, %v8601_v54  ;;  %6225 = vmatmul.mubr.msk.bf16.gmra.mrb[164].mxu1 %vm7237_vm2, %v8625_v20  ;;  %v8649_v23 = vpack.c.bf16 %v8583_v31, %v8568_v44  ;;  %v9711_v3 = vld [vmem:[#allocation16_spill] sm:$0xff] }
 0x2b7   : > { %v2712_v57 = vrot.slane %v8629_v53, 1  ;;  %v8652_v24 = vmax.f32 %v2344_v30, 0.0  ;;  %v2224_v0 = vadd.f32 %v2223_v50, %v9709_v40  ;;  %v6187_v16 = vpop.f32.mrb[154].mxu0  ;;  %3155 = vmatprep.mubr.bf16.mxu0 %v8579_v49  ;;  %6228 = vmatprep.mubr.msk.bf16.mxu1 %vm7237_vm2, %v8620_v45  ;;  %v2600_v26 = vsel %vm344_vm3, %v2598_v33, %v2599_v5  ;;  %v6740_v40 = vld [vmem:[#allocation7 + $0x70] sm:$0xff]  }
 0x2b8   : > { %v2608_v29 = vrot.slane %v8638_v25, 7  ;;  %v2308_v1 = vadd.f32 %v2232_v6, %v8398_v63  ;;  %v2235_v58 = vadd.f32 %v6187_v16, %v9710_v10  ;;  %v2226_v9 = vpop.f32.mrb[155].mxu0  ;;  %v2716_v48 = vrot.slane %v8638_v25, 1  ;;  %5781 = vmatpush3.bf16.msra.mxu1 %v6737_v22  ;;  %5920 = vmatprep.subr.bf16.mxu0 %v6760_v43  ;;  %v6763_v63 = vld [vmem:[#allocation7 + $0x1b8] sm:$0xff]  }
 0x2b9   : > { %v2605_v14 = vrot.slane %v8652_v24, 7  ;;  %v2306_v30 = vadd.f32 %v2224_v0, %v8401_v39  ;;  %v2227_v50 = vadd.f32 %v2226_v9, %v9711_v3  ;;  %v2713_v5 = vrot.slane %v8652_v24, 1  ;;  %5782 = vmatprep.subr.bf16.mxu1 %v6738_v13  ;;  %5921 = vmatpush3.bf16.msra.mxu0 %v6761_v15 }
 0x2ba   : > { %v2349_v6 = vadd.f32 %v8459_v46, %v2308_v1  ;;  %v2309_v16 = vadd.f32 %v2235_v58, %v8404_v59  ;;  %v2717_v22 = vsel %vm465_vm0, %v2715_v42, %v2716_v48  ;;  %v8671_v10 = vpack.c.bf16 %v2600_v26, %v2598_v33  ;;  %5922 = vmatprep.subr.bf16.mxu0 %v6762_v7  ;;  %v6741_v33 = vld [vmem:[#allocation7 + $0x30] sm:$0xff]   ;;  %v6742_v58 = vld [vmem:[#allocation7 + $0x78] sm:$0xff]  }
 0x2bb   : > { %v2347_v43 = vadd.f32 %v8459_v46, %v2306_v30  ;;  %v2307_v39 = vadd.f32 %v2227_v50, %v8407_v51  ;;  %v2714_v0 = vsel %vm465_vm0, %v2712_v57, %v2713_v5  ;;  %v8676_v9 = vpack.c.bf16 %v2716_v48, %v2717_v22  ;;  %v9712_v50 = vld [vmem:[#allocation18_spill] sm:$0xff]  ;;  %v6743_v22 = vld [vmem:[#allocation7 + $0x38] sm:$0xff]  }
 0x2bc   : > { %v8678_v13 = vmax.f32 %v2349_v6, 0.0  ;;  %v2350_v15 = vadd.f32 %v8459_v46, %v2309_v16  ;;  %v8681_v1 = vpack.c.bf16 %v2713_v5, %v2714_v0  ;;  %v2601_v59 = vrot.slane %v8568_v44, 7  ;;  %5783 = vmatpush3.bf16.msra.mxu1 %v6739_v32  ;;  %v9713_v0 = vld [vmem:[#allocation19_spill] sm:$0xff] }
 0x2bd   : > { %v8684_v42 = vmax.f32 %v2347_v43, 0.0  ;;  %v2348_v7 = vadd.f32 %v8459_v46, %v2307_v39  ;;  %v6190_v26 = vpop.f32.mrb[156].mxu0  ;;  %v8689_v51 = vpack.c.bf16 %v8652_v24, %v8629_v53  ;;  %v2604_v57 = vrot.slane %v8629_v53, 7  ;;  %5784 = vmatprep.subr.bf16.mxu1 %v6740_v40  ;;  %5923 = vmatpush3.bf16.msra.mxu0 %v6763_v63 }
 0x2be   : > { %v2721_v48 = vrot.slane %v8678_v13, 1  ;;  %v8693_v30 = vmax.f32 %v2350_v15, 0.0  ;;  %v2248_v44 = vadd.f32 %v6190_v26, %v8425_v34  ;;  %v2239_v32 = vpop.f32.mrb[157].mxu0  ;;  %5186 = vmatmul.mubr.msk.bf16.gmra.mrb[184].mxu0 %vm7430_vm5, %v8627_v61  ;;  %6229 = vmatmul.mubr.msk.bf16.gmra.mrb[168].mxu1 %vm7237_vm2, %v8681_v1  ;;  %v2603_v53 = vsel %vm344_vm3, %v2601_v59, %v2602_v35  ;;  %v9714_v26 = vld [vmem:[#allocation20_spill] sm:$0xff] }
 0x2bf   : > { %v2718_v24 = vrot.slane %v8684_v42, 1  ;;  %v8706_v3 = vmax.f32 %v2348_v7, 0.0  ;;  %v2240_v5 = vadd.f32 %v2239_v32, %v9712_v50  ;;  %v6191_v34 = vpop.f32.mrb[158].mxu0  ;;  %3163 = vmatprep.mubr.bf16.mxu0 %v8634_v38  ;;  %6232 = vmatprep.mubr.msk.bf16.mxu1 %vm7237_vm2, %v8676_v9  ;;  %v8713_v40 = vpack.c.bf16 %v2603_v53, %v2601_v59  ;;  %v8723_v7 = vld [vmem:[#allocation7 + $0x80] sm:$0xff]   ;;  %v9715_v53 = vld [vmem:[#allocation21_spill] sm:$0xff] }
 0x2c0   : > { %v2312_v31 = vadd.f32 %v2248_v44, %v8414_v52  ;;  %v2251_v35 = vadd.f32 %v6191_v34, %v8427_v8  ;;  %v2242_v6 = vpop.f32.mrb[159].mxu0  ;;  %v2722_v16 = vrot.slane %v8693_v30, 1  ;;  %5785 = vmatpush3.bf16.msra.mxu1 %v6741_v33  ;;  %v2606_v33 = vsel %vm344_vm3, %v2604_v57, %v2605_v14 }
 0x2c1   : > { %v2310_v39 = vadd.f32 %v2240_v5, %v8417_v41  ;;  %v2243_v15 = vadd.f32 %v2242_v6, %v9713_v0  ;;  %v2719_v59 = vrot.slane %v8706_v3, 1  ;;  %5786 = vmatprep.subr.bf16.mxu1 %v6742_v58 }
 0x2c2   : > { %v2353_v52 = vadd.f32 %v8459_v46, %v2312_v31  ;;  %v2313_v8 = vadd.f32 %v2251_v35, %v9714_v26  ;;  %v2723_v44 = vsel %vm465_vm0, %v2721_v48, %v2722_v16  ;;  %v8739_v31 = vpack.c.bf16 %v2606_v33, %v2604_v57 }
 0x2c3   : > { %v2351_v32 = vadd.f32 %v8459_v46, %v2310_v39  ;;  %v2311_v50 = vadd.f32 %v2243_v15, %v9715_v53  ;;  %v2720_v41 = vsel %vm465_vm0, %v2718_v24, %v2719_v59  ;;  %v8732_v5 = vpack.c.bf16 %v2722_v16, %v2723_v44  ;;  %v9717_v44 = vld [vmem:[#allocation22_spill] sm:$0xff] }
 0x2c4   : > { %v8734_v34 = vmax.f32 %v2353_v52, 0.0  ;;  %v2354_v58 = vadd.f32 %v8459_v46, %v2313_v8  ;;  %v8737_v6 = vpack.c.bf16 %v2719_v59, %v2720_v41  ;;  %5787 = vmatpush3.bf16.msra.mxu1 %v6743_v22  ;;  %v8746_v39 = vpack.c.bf16 %v8638_v25, %v8622_v12  ;;  %v9718_v41 = vld [vmem:[#allocation23_spill] sm:$0xff]  ;;  %v9720_v25 = vld [vmem:[#allocation24_spill] sm:$0xff] }
 0x2c5   : > { %9716 = vst [vmem:[#allocation14_spill] sm:$0xff] %v8732_v5  ;;  %v8741_v48 = vmax.f32 %v2351_v32, 0.0  ;;  %v2352_v14 = vadd.f32 %v8459_v46, %v2311_v50  ;;  %v6194_v35 = vpop.f32.mrb[160].mxu0  ;;  %v2607_v24 = vrot.slane %v8622_v12, 7  ;;  %6248 = vmatprep.subr.bf16.mxu1 %v8723_v7  ;;  %v8762_v12 = vpack.c.bf16 %v8706_v3, %v8684_v42 }
 0x2c6   : > { %v2727_v16 = vrot.slane %v8734_v34, 1  ;;  %v8751_v0 = vmax.f32 %v2354_v58, 0.0  ;;  %v2264_v57 = vadd.f32 %v6194_v35, %v8451_v28  ;;  %v2255_v22 = vpop.f32.mrb[161].mxu0  ;;  %5190 = vmatmul.mubr.msk.bf16.gmra.mrb[188].mxu0 %vm7430_vm5, %v8671_v10  ;;  %6233 = vmatmul.mubr.msk.bf16.gmra.mrb[172].mxu1 %vm7237_vm2, %v8737_v6 }
 0x2c7   : > { %v2724_v15 = vrot.slane %v8741_v48, 1  ;;  %v2388_v59 = vmax.f32 %v2352_v14, 0.0  ;;  %v2256_v52 = vadd.f32 %v2255_v22, %v8441_v36  ;;  %v6195_v26 = vpop.f32.mrb[162].mxu0  ;;  %3171 = vmatprep.mubr.bf16.mxu0 %v8649_v23  ;;  %6236 = vmatprep.mubr.msk.bf16.mxu1 %vm7237_vm2, %v8732_v5  ;;  %v2609_v28 = vsel %vm344_vm3, %v2607_v24, %v2608_v29  ;;  %v9719_v14 = vld [vmem:[#allocation12_spill] sm:$0xff] }
 0x2c8   : > { %v2316_v33 = vadd.f32 %v2264_v57, %v9717_v44  ;;  %v2267_v32 = vadd.f32 %v6195_v26, %v8453_v21  ;;  %v2258_v53 = vpop.f32.mrb[163].mxu0  ;;  %v2728_v36 = vrot.slane %v8751_v0, 1  ;;  %v8782_v8 = vpack.c.bf16 %v2609_v28, %v2607_v24  ;;  %v9721_v21 = vld [vmem:[#allocation25_spill] sm:$0xff] }
 0x2c9   : > { %v2617_v50 = vrot.slane %v2388_v59, 7  ;;  %v2314_v58 = vadd.f32 %v2256_v52, %v9718_v41  ;;  %v2259_v35 = vadd.f32 %v2258_v53, %v9719_v14  ;;  %v2725_v22 = vrot.slane %v2388_v59, 1 }
 0x2ca   : > { %v2357_v63 = vadd.f32 %v8459_v46, %v2316_v33  ;;  %v2317_v43 = vadd.f32 %v2267_v32, %v9720_v25  ;;  %v2729_v29 = vsel %vm465_vm0, %v2727_v16, %v2728_v36  ;;  %v2610_v33 = vrot.slane %v8684_v42, 7 }
 0x2cb   : > { %v2355_v57 = vadd.f32 %v8459_v46, %v2314_v58  ;;  %v2315_v26 = vadd.f32 %v2259_v35, %v9721_v21  ;;  %v2726_v44 = vsel %vm465_vm0, %v2724_v15, %v2725_v22  ;;  %v8787_v5 = vpack.c.bf16 %v2728_v36, %v2729_v29 }
 0x2cc   : > { %v8789_v52 = vmax.f32 %v2357_v63, 0.0  ;;  %v2358_v53 = vadd.f32 %v8459_v46, %v2317_v43  ;;  %v8792_v41 = vpack.c.bf16 %v2725_v22, %v2726_v44  ;;  %v8798_v28 = vpack.c.bf16 %v8693_v30, %v8678_v13  ;;  %v9725_v22 = vld [vmem:[#allocation27_spill] sm:$0xff] }
 0x2cd   : > { %9722 = vst [vmem:[#allocation15_spill] sm:$0xff] %v8787_v5  ;;  %v2391_v32 = vmax.f32 %v2355_v57, 0.0  ;;  %v2356_v24 = vadd.f32 %v8459_v46, %v2315_v26  ;;  %v6198_v16 = vpop.f32.mrb[164].mxu0  ;;  %v2613_v15 = vrot.slane %v8678_v13, 7  ;;  %v9724_v42 = vrot.slane %v8706_v3, 7 }
 0x2ce   : > { %9723 = vst [vmem:[#allocation17_spill] sm:$0xff] %v8792_v41  ;;  %v2733_v36 = vrot.slane %v8789_v52, 1  ;;  %v2394_v63 = vmax.f32 %v2358_v53, 0.0  ;;  %v2271_v58 = vpop.f32.mrb[165].mxu0  ;;  %5194 = vmatmul.mubr.msk.bf16.gmra.mrb[192].mxu0 %vm7430_vm5, %v8713_v40  ;;  %6237 = vmatmul.mubr.msk.bf16.gmra.mrb[176].mxu1 %vm7237_vm2, %v8792_v41  ;;  %v8812_v14 = vpack.c.bf16 %v2388_v59, %v8741_v48  ;;  %v9726_v44 = vrot.slane %v8693_v30, 7  ;;  %v9727_v16 = vld [vmem:[#allocation13_spill] sm:$0xff] }
 0x2cf   : > { %v2612_v43 = vsel %vm344_vm3, %v2610_v33, %v9724_v42  ;;  %v2730_v13 = vrot.slane %v2391_v32, 1  ;;  %v2392_v35 = vmax.f32 %v2356_v24, 0.0  ;;  %v2272_v25 = vadd.f32 %v2271_v58, %v9725_v22  ;;  %v6199_v29 = vpop.f32.mrb[166].mxu0  ;;  %3179 = vmatprep.mubr.bf16.mxu0 %v8689_v51  ;;  %6240 = vmatprep.mubr.msk.bf16.mxu1 %vm7237_vm2, %v8787_v5 }
 0x2d0   : > { %v8819_v57 = vpack.c.bf16 %v2612_v43, %v2610_v33  ;;  %v2626_v21 = vrot.slane %v2394_v63, 7  ;;  %v2274_v3 = vpop.f32.mrb[167].mxu0  ;;  %v2734_v26 = vrot.slane %v2394_v63, 1  ;;  %v2615_v59 = vsel %vm344_vm3, %v2613_v15, %v9726_v44  ;;  %v9728_v44 = vld [vmem:[#allocation26_spill] sm:$0xff] }
 0x2d1   : > { %v2616_v53 = vrot.slane %v8741_v48, 7  ;;  %v2623_v24 = vrot.slane %v2392_v35, 7  ;;  %v2318_v58 = vadd.f32 %v2272_v25, %v9727_v16  ;;  %v2275_v42 = vadd.f32 %v2274_v3, %v8467_v18 }
 0x2d2   : > { %v2731_v22 = vrot.slane %v2392_v35, 1  ;;  %v2735_v29 = vsel %vm465_vm0, %v2733_v36, %v2734_v26  ;;  %v8828_v5 = vpack.c.bf16 %v2615_v59, %v2613_v15  ;;  %v8833_v43 = vpack.c.bf16 %v8751_v0, %v8734_v34 }
 0x2d3   : > { %v2618_v33 = vsel %vm344_vm3, %v2616_v53, %v2617_v50  ;;  %v2359_v30 = vadd.f32 %v8459_v46, %v2318_v58  ;;  %v2319_v48 = vadd.f32 %v2275_v42, %v9728_v44  ;;  %v8838_v25 = vpack.c.bf16 %v2734_v26, %v2735_v29 }
 0x2d4   : > { %v2732_v41 = vsel %vm465_vm0, %v2730_v13, %v2731_v22  ;;  %v8842_v3 = vpack.c.bf16 %v2618_v33, %v2616_v53  ;;  %v2619_v15 = vrot.slane %v8734_v34, 7  ;;  %v8845_v36 = vpack.c.bf16 %v2392_v35, %v2391_v32 }
 0x2d5   : > { %v8840_v18 = vpack.c.bf16 %v2731_v22, %v2732_v41  ;;  %v2395_v50 = vmax.f32 %v2359_v30, 0.0  ;;  %v2360_v59 = vadd.f32 %v8459_v46, %v2319_v48  ;;  %v2622_v16 = vrot.slane %v2391_v32, 7 }
 0x2d6   : > { %v8849_v58 = vpack.c.bf16 %v2394_v63, %v8789_v52  ;;  %5198 = vmatmul.mubr.msk.bf16.gmra.mrb[196].mxu0 %vm7430_vm5, %v8739_v31  ;;  %v9729_v41 = vrot.slane %v8751_v0, 7  ;;  %v2625_v13 = vrot.slane %v8789_v52, 7 }
 0x2d7   : > { %6241 = vmatmul.mubr.msk.bf16.gmra.mrb[180].mxu1 %vm7237_vm2, %v8840_v18  ;;  %v2396_v35 = vmax.f32 %v2360_v59, 0.0  ;;  %3187 = vmatprep.mubr.bf16.mxu0 %v8746_v39  ;;  %v2624_v32 = vsel %vm344_vm3, %v2622_v16, %v2623_v24  ;;  %v2736_v63 = vrot.slane %v2395_v50, 1  ;;  %v2628_v53 = vrot.slane %v2395_v50, 7  ;;  %v6749_v59 = vld [vmem:[#allocation7 + $0x88] sm:$0xff]  }
 0x2d8   : > { %v2621_v34 = vsel %vm344_vm3, %v2619_v15, %v9729_v41  ;;  %6244 = vmatprep.mubr.msk.bf16.mxu1 %vm7237_vm2, %v8838_v25  ;;  %v8868_v26 = vpack.c.bf16 %v2624_v32, %v2622_v16  ;;  %v2627_v0 = vsel %vm344_vm3, %v2625_v13, %v2626_v21  ;;  %v6991_v21 = vmov 0.0   ;;  %v6752_v16 = vld [vmem:[#allocation7 + $0x90] sm:$0xff]   ;;  %v6759_v41 = vld [vmem:[#allocation7 + $0x98] sm:$0xff]  }
 0x2d9   : > { %v8865_v46 = vpack.c.bf16 %v2621_v34, %v2619_v15  ;;  %v2629_v42 = vrot.slane %v2396_v35, 7  ;;  %v2737_v22 = vrot.slane %v2396_v35, 1  ;;  %v8871_v52 = vpack.c.bf16 %v2627_v0, %v2625_v13  ;;  %v9730_v34 = vld [vmem:[#allocation28_spill] sm:$0xff]  ;;  %v6766_v0 = vld [vmem:[#allocation7 + $0xb0] sm:$0xff]  }
 0x2da   : > { %v8873_v29 = vpack.c.bf16 %v2396_v35, %v2395_v50  ;;  %v2580_v24 = vrot.slane %v6991_v21, 7  ;;  %v6992_v15 = vmov 0.0|0.0   ;;  %v6764_v35 = vld [vmem:[#allocation7 + $0xa0] sm:$0xff]  }
 0x2db   : > { %v2738_v33 = vsel %vm465_vm0, %v2736_v63, %v2737_v22  ;;  %v2630_v30 = vsel %vm344_vm3, %v2628_v53, %v2629_v42  ;;  %v6765_v63 = vld [vmem:[#allocation7 + $0xa8] sm:$0xff]   ;;  %v6768_v42 = vld [vmem:[#allocation7 + $0x200] sm:$0xff]  }
 0x2dc   : > { %v8877_v44 = vpack.c.bf16 %v2737_v22, %v2738_v33  ;;  %v8879_v48 = vpack.c.bf16 %v2630_v30, %v2628_v53  ;;  %v8890_v50 = vpack.c.bf16 %v2580_v24, %v2580_v24  ;;  %v6767_v53 = vld [vmem:[#allocation7 + $0xb8] sm:$0xff]  }
 0x2de   : > { %5202 = vmatmul.mubr.msk.bf16.gmra.mrb[200].mxu0 %vm7430_vm5, %v8782_v8 }
 0x2df   : > { %6245 = vmatmul.mubr.msk.bf16.gmra.mrb[184].mxu1 %vm7237_vm2, %v8877_v44  ;;  %3195 = vmatprep.mubr.bf16.mxu0 %v8762_v12 }
 0x2e0   : > { %3589 = vmatprep.mubr.bf16.mxu1 %v6992_v15  ;;  %v2102_v13 = vpop.f32.mrb[152].mxu1 }
 0x2e6   : > { %5206 = vmatmul.mubr.msk.bf16.gmra.mrb[204].mxu0 %vm7430_vm5, %v8819_v57 }
 0x2e7   : > { %5306 = vmatmul.mubr.msk.bf16.vlgmr.msra.gmra.mrb[188].mxu1 %vm7430_vm5, %v8890_v50  ;;  %3203 = vmatprep.mubr.bf16.mxu0 %v8798_v28 }
 0x2e8   : > { %3597 = vmatprep.mubr.bf16.mxu1 %v8474_v37  ;;  %6249 = vmatpush3.bf16.msra.mxu1 %v8723_v7  ;;  %v2104_v37 = vpop.f32.mrb[153].mxu1 }
 0x2e9   : > { %6250 = vmatprep.subr.bf16.mxu1 %v6749_v59  ;;  %v2105_v7 = vpop.f32.mrb[154].mxu1 }
 0x2ea   : > { %v2107_v32 = vpop.f32.mrb[155].mxu1 }
 0x2eb   : > { %v9734_v32 = vld [vmem:[#allocation15_spill] sm:$0xff] }
 0x2ec   : > { %6251 = vmatpush3.bf16.msra.mxu1 %v6749_v59 }
 0x2ed   : > { %6252 = vmatprep.subr.bf16.mxu1 %v6752_v16 }
 0x2ee   : > { %5210 = vmatmul.mubr.msk.bf16.gmra.mrb[208].mxu0 %vm7430_vm5, %v8828_v5 }
 0x2ef   : > { %5310 = vmatmul.mubr.msk.bf16.gmra.mrb[192].mxu1 %vm7430_vm5, %v9730_v34  ;;  %3211 = vmatprep.mubr.bf16.mxu0 %v8812_v14 }
 0x2f0   : > { %3605 = vmatprep.mubr.bf16.mxu1 %v8512_v62  ;;  %6253 = vmatpush3.bf16.msra.mxu1 %v6752_v16 }
 0x2f1   : > { %6254 = vmatprep.subr.bf16.mxu1 %v6759_v41 }
 0x2f4   : > { %6255 = vmatpush3.bf16.msra.mxu1 %v6759_v41  ;;  %v9732_v41 = vld [vmem:[#allocation14_spill] sm:$0xff] }
 0x2f5   : > { %6256 = vmatprep.subr.bf16.mxu1 %v6764_v35 }
 0x2f6   : > { %5214 = vmatmul.mubr.msk.bf16.gmra.mrb[212].mxu0 %vm7430_vm5, %v8842_v3 }
 0x2f7   : > { %5314 = vmatmul.mubr.msk.bf16.gmra.mrb[196].mxu1 %vm7430_vm5, %v8524_v55  ;;  %3219 = vmatprep.mubr.bf16.mxu0 %v8833_v43 }
 0x2f8   : > { %3613 = vmatprep.mubr.bf16.mxu1 %v8506_v60  ;;  %6257 = vmatpush3.bf16.msra.mxu1 %v6764_v35 }
 0x2f9   : > { %6258 = vmatprep.subr.bf16.mxu1 %v6765_v63 }
 0x2fc   : > { %6259 = vmatpush3.bf16.msra.mxu1 %v6765_v63 }
 0x2fd   : > { %6260 = vmatprep.subr.bf16.mxu1 %v6766_v0 }
 0x2fe   : > { %5218 = vmatmul.mubr.msk.bf16.gmra.mrb[216].mxu0 %vm7430_vm5, %v8865_v46 }
 0x2ff   : > { %5318 = vmatmul.mubr.msk.bf16.gmra.mrb[200].mxu1 %vm7430_vm5, %v8546_v27  ;;  %3227 = vmatprep.mubr.bf16.mxu0 %v8845_v36 }
 0x300   : > { %3621 = vmatprep.mubr.bf16.mxu1 %v8560_v47  ;;  %6261 = vmatpush3.bf16.msra.mxu1 %v6766_v0 }
 0x301   : > { %6262 = vmatprep.subr.bf16.mxu1 %v6767_v53 }
 0x304   : > { %6263 = vmatpush3.bf16.msra.mxu1 %v6767_v53 }
 0x305   : > { %6296 = vmatprep.subr.bf16.mxu1 %v6768_v42 }
 0x306   : > { %5222 = vmatmul.mubr.msk.bf16.gmra.mrb[220].mxu0 %vm7430_vm5, %v8868_v26 }
 0x307   : > { %5322 = vmatmul.mubr.msk.bf16.gmra.mrb[204].mxu1 %vm7430_vm5, %v8601_v54  ;;  %3235 = vmatprep.mubr.bf16.mxu0 %v8849_v58 }
 0x308   : > { %3629 = vmatprep.mubr.bf16.mxu1 %v8579_v49 }
 0x30e   : > { %5226 = vmatmul.mubr.msk.bf16.gmra.mrb[224].mxu0 %vm7430_vm5, %v8871_v52 }
 0x30f   : > { %5326 = vmatmul.mubr.msk.bf16.gmra.mrb[208].mxu1 %vm7430_vm5, %v8627_v61  ;;  %3243 = vmatprep.mubr.bf16.mxu0 %v8873_v29 }
 0x310   : > { %3637 = vmatprep.mubr.bf16.mxu1 %v8634_v38 }
 0x316   : > { %5230 = vmatmul.mubr.msk.bf16.gmra.mrb[228].mxu0 %vm7430_vm5, %v8879_v48 }
 0x317   : > { %5330 = vmatmul.mubr.msk.bf16.gmra.mrb[212].mxu1 %vm7430_vm5, %v8671_v10  ;;  %4104 = vmatprep.mubr.bf16.mxu0 %v8512_v62 }
 0x318   : > { %3645 = vmatprep.mubr.bf16.mxu1 %v8649_v23 }
 0x31e   : > { %5442 = vmatmul.mubr.msk.bf16.vlgmr.msra.gmra.mrb[232].mxu0 %vm7430_vm5, %v8524_v55  ;;  %v6769_v55 = vld [vmem:[#allocation7 + $0x208] sm:$0xff]  }
 0x31f   : > { %5334 = vmatmul.mubr.msk.bf16.gmra.mrb[216].mxu1 %vm7430_vm5, %v8713_v40  ;;  %4112 = vmatprep.mubr.bf16.mxu0 %v8506_v60  ;;  %v2688_v60 = vrot.slane %v6991_v21, 1 }
 0x320   : > { %3653 = vmatprep.mubr.bf16.mxu1 %v8689_v51 }
 0x321   : > { %v9014_v62 = vpack.c.bf16 %v2688_v60, %v2688_v60 }
 0x326   : > { %5446 = vmatmul.mubr.msk.bf16.gmra.mrb[236].mxu0 %vm7430_vm5, %v8546_v27  ;;  %v9731_v27 = vld [vmem:[#allocation29_spill] sm:$0xff] }
 0x327   : > { %5338 = vmatmul.mubr.msk.bf16.gmra.mrb[220].mxu1 %vm7430_vm5, %v8739_v31  ;;  %4120 = vmatprep.mubr.bf16.mxu0 %v8560_v47  ;;  %v6770_v47 = vld [vmem:[#allocation7 + $0x210] sm:$0xff]  }
 0x328   : > { %3661 = vmatprep.mubr.bf16.mxu1 %v8746_v39 }
 0x32e   : > { %5450 = vmatmul.mubr.msk.bf16.gmra.mrb[240].mxu0 %vm7430_vm5, %v8601_v54 }
 0x32f   : > { %5342 = vmatmul.mubr.msk.bf16.gmra.mrb[224].mxu1 %vm7430_vm5, %v8782_v8  ;;  %4128 = vmatprep.mubr.bf16.mxu0 %v8579_v49  ;;  %v6771_v49 = vld [vmem:[#allocation7 + $0x218] sm:$0xff]  }
 0x330   : > { %3669 = vmatprep.mubr.bf16.mxu1 %v8762_v12 }
 0x336   : > { %5454 = vmatmul.mubr.msk.bf16.gmra.mrb[244].mxu0 %vm7430_vm5, %v8627_v61 }
 0x337   : > { %5346 = vmatmul.mubr.msk.bf16.gmra.mrb[228].mxu1 %vm7430_vm5, %v8819_v57  ;;  %4136 = vmatprep.mubr.bf16.mxu0 %v8634_v38  ;;  %v6772_v38 = vld [vmem:[#allocation7 + $0x220] sm:$0xff]  }
 0x338   : > { %3677 = vmatprep.mubr.bf16.mxu1 %v8798_v28 }
 0x33e   : > { %5458 = vmatmul.mubr.msk.bf16.gmra.mrb[248].mxu0 %vm7430_vm5, %v8671_v10 }
 0x33f   : > { %5350 = vmatmul.mubr.msk.bf16.gmra.mrb[232].mxu1 %vm7430_vm5, %v8828_v5  ;;  %4144 = vmatprep.mubr.bf16.mxu0 %v8649_v23 }
 0x340   : > { %3685 = vmatprep.mubr.bf16.mxu1 %v8812_v14 }
 0x346   : > { %5462 = vmatmul.mubr.msk.bf16.gmra.mrb[252].mxu0 %vm7430_vm5, %v8713_v40 }
 0x347   : > { %5354 = vmatmul.mubr.msk.bf16.gmra.mrb[236].mxu1 %vm7430_vm5, %v8842_v3  ;;  %4152 = vmatprep.mubr.bf16.mxu0 %v8689_v51 }
 0x348   : > { %3693 = vmatprep.mubr.bf16.mxu1 %v8833_v43 }
 0x34e   : > { %5466 = vmatmul.mubr.msk.bf16.gmra.mrb[0].mxu0 %vm7430_vm5, %v8739_v31 }
 0x34f   : > { %5358 = vmatmul.mubr.msk.bf16.gmra.mrb[240].mxu1 %vm7430_vm5, %v8865_v46  ;;  %4160 = vmatprep.mubr.bf16.mxu0 %v8746_v39  ;;  %v6774_v39 = vld [vmem:[#allocation7 + $0x230] sm:$0xff]  }
 0x350   : > { %3701 = vmatprep.mubr.bf16.mxu1 %v8845_v36 }
 0x356   : > { %5470 = vmatmul.mubr.msk.bf16.gmra.mrb[4].mxu0 %vm7430_vm5, %v8782_v8 }
 0x357   : > { %5362 = vmatmul.mubr.msk.bf16.gmra.mrb[244].mxu1 %vm7430_vm5, %v8868_v26  ;;  %4168 = vmatprep.mubr.bf16.mxu0 %v8762_v12 }
 0x358   : > { %3709 = vmatprep.mubr.bf16.mxu1 %v8849_v58 }
 0x35e   : > { %5474 = vmatmul.mubr.msk.bf16.gmra.mrb[8].mxu0 %vm7430_vm5, %v8819_v57 }
 0x35f   : > { %5366 = vmatmul.mubr.msk.bf16.gmra.mrb[248].mxu1 %vm7430_vm5, %v8871_v52  ;;  %4176 = vmatprep.mubr.bf16.mxu0 %v8798_v28 }
 0x360   : > { %6264 = vmatprep.mubr.msk.bf16.mxu1 %vm7237_vm2, %v9014_v62 }
 0x366   : > { %5478 = vmatmul.mubr.msk.bf16.gmra.mrb[12].mxu0 %vm7430_vm5, %v8828_v5  ;;  %v6773_v5 = vld [vmem:[#allocation7 + $0x228] sm:$0xff]  }
 0x367   : > { %6265 = vmatmul.mubr.msk.bf16.vlgmr.msra.gmra.mrb[156].mxu1 %vm7237_vm2, %v9731_v27  ;;  %4184 = vmatprep.mubr.bf16.mxu0 %v8812_v14 }
 0x368   : > { %6268 = vmatprep.mubr.msk.bf16.mxu1 %vm7237_vm2, %v8518_v19  ;;  %6297 = vmatpush3.bf16.msra.mxu1 %v6768_v42 }
 0x369   : > { %6298 = vmatprep.subr.bf16.mxu1 %v6769_v55 }
 0x36c   : > { %6299 = vmatpush3.bf16.msra.mxu1 %v6769_v55 }
 0x36d   : > { %6300 = vmatprep.subr.bf16.mxu1 %v6770_v47 }
 0x36e   : > { %5482 = vmatmul.mubr.msk.bf16.gmra.mrb[16].mxu0 %vm7430_vm5, %v8842_v3 }
 0x36f   : > { %6269 = vmatmul.mubr.msk.bf16.gmra.mrb[160].mxu1 %vm7237_vm2, %v8541_v11  ;;  %4192 = vmatprep.mubr.bf16.mxu0 %v8833_v43  ;;  %v6775_v43 = vld [vmem:[#allocation7 + $0x238] sm:$0xff]  }
 0x370   : > { %6272 = vmatprep.mubr.msk.bf16.mxu1 %vm7237_vm2, %v8571_v56  ;;  %v5652_v54 = vpop.f32.mrb[168].mxu0  ;;  %6301 = vmatpush3.bf16.msra.mxu1 %v6770_v47 }
 0x371   : > { %v5653_v61 = vpop.f32.mrb[169].mxu0  ;;  %6302 = vmatprep.subr.bf16.mxu1 %v6771_v49 }
 0x372   : > { %v9046_v23 = vadd.f32 %v5653_v61, %v5652_v54  ;;  %v5655_v10 = vpop.f32.mrb[170].mxu0 }
 0x373   : > { %v5656_v51 = vpop.f32.mrb[171].mxu0 }
 0x374   : > { %v9048_v40 = vadd.f32 %v5656_v51, %v5655_v10  ;;  %6303 = vmatpush3.bf16.msra.mxu1 %v6771_v49 }
 0x375   : > { %6304 = vmatprep.subr.bf16.mxu1 %v6772_v38 }
 0x376   : > { %5486 = vmatmul.mubr.msk.bf16.gmra.mrb[20].mxu0 %vm7430_vm5, %v8865_v46 }
 0x377   : > { %6273 = vmatmul.mubr.msk.bf16.gmra.mrb[164].mxu1 %vm7237_vm2, %v8566_v4  ;;  %4200 = vmatprep.mubr.bf16.mxu0 %v8845_v36 }
 0x378   : > { %6276 = vmatprep.mubr.msk.bf16.mxu1 %vm7237_vm2, %v8625_v20  ;;  %6305 = vmatpush3.bf16.msra.mxu1 %v6772_v38 }
 0x379   : > { %v5658_v31 = vpop.f32.mrb[172].mxu0  ;;  %6306 = vmatprep.subr.bf16.mxu1 %v6773_v5 }
 0x37a   : > { %v5659_v12 = vpop.f32.mrb[173].mxu0 }
 0x37b   : > { %v9060_v8 = vadd.f32 %v5659_v12, %v5658_v31  ;;  %v5661_v28 = vpop.f32.mrb[174].mxu0 }
 0x37c   : > { %v5662_v14 = vpop.f32.mrb[175].mxu0  ;;  %6307 = vmatpush3.bf16.msra.mxu1 %v6773_v5 }
 0x37d   : > { %v9062_v57 = vadd.f32 %v5662_v14, %v5661_v28  ;;  %6308 = vmatprep.subr.bf16.mxu1 %v6774_v39 }
 0x37e   : > { %5490 = vmatmul.mubr.msk.bf16.gmra.mrb[24].mxu0 %vm7430_vm5, %v8868_v26 }
 0x37f   : > { %6277 = vmatmul.mubr.msk.bf16.gmra.mrb[168].mxu1 %vm7237_vm2, %v8620_v45  ;;  %4208 = vmatprep.mubr.bf16.mxu0 %v8849_v58 }
 0x380   : > { %6280 = vmatprep.mubr.msk.bf16.mxu1 %vm7237_vm2, %v8681_v1  ;;  %6309 = vmatpush3.bf16.msra.mxu1 %v6774_v39 }
 0x381   : > { %v5664_v3 = vpop.f32.mrb[176].mxu0  ;;  %6310 = vmatprep.subr.bf16.mxu1 %v6775_v43 }
 0x382   : > { %v5665_v36 = vpop.f32.mrb[177].mxu0 }
 0x383   : > { %v9074_v46 = vadd.f32 %v5665_v36, %v5664_v3  ;;  %v5667_v22 = vpop.f32.mrb[178].mxu0 }
 0x384   : > { %v5668_v33 = vpop.f32.mrb[179].mxu0  ;;  %6311 = vmatpush3.bf16.msra.mxu1 %v6775_v43 }
 0x385   : > { %v9076_v30 = vadd.f32 %v5668_v33, %v5667_v22 }
 0x386   : > { %5494 = vmatmul.mubr.msk.bf16.gmra.mrb[28].mxu0 %vm7430_vm5, %v8871_v52  ;;  %v9733_v52 = vld [vmem:[#allocation17_spill] sm:$0xff] }
 0x387   : > { %6281 = vmatmul.mubr.msk.bf16.gmra.mrb[172].mxu1 %vm7237_vm2, %v8676_v9  ;;  %4216 = vmatprep.mubr.bf16.mxu0 %v8873_v29 }
 0x388   : > { %6284 = vmatprep.mubr.msk.bf16.mxu1 %vm7237_vm2, %v8737_v6 }
 0x389   : > { %v5670_v58 = vpop.f32.mrb[180].mxu0 }
 0x38a   : > { %v5671_v26 = vpop.f32.mrb[181].mxu0 }
 0x38b   : > { %v9088_v21 = vadd.f32 %v5671_v26, %v5670_v58  ;;  %v5673_v24 = vpop.f32.mrb[182].mxu0 }
 0x38c   : > { %v5674_v59 = vpop.f32.mrb[183].mxu0 }
 0x38d   : > { %v9090_v16 = vadd.f32 %v5674_v59, %v5673_v24 }
 0x38e   : > { %5498 = vmatmul.mubr.msk.bf16.gmra.mrb[32].mxu0 %vm7430_vm5, %v8879_v48 }
 0x38f   : > { %6285 = vmatmul.mubr.msk.bf16.gmra.mrb[176].mxu1 %vm7237_vm2, %v9732_v41  ;;  %4224 = vmatprep.mubr.bf16.mxu0 %v6992_v15 }
 0x390   : > { %6288 = vmatprep.mubr.msk.bf16.mxu1 %vm7237_vm2, %v9733_v52 }
 0x391   : > { %v5676_v29 = vpop.f32.mrb[184].mxu0 }
 0x392   : > { %v5677_v34 = vpop.f32.mrb[185].mxu0 }
 0x393   : > { %v9102_v13 = vadd.f32 %v5677_v34, %v5676_v29  ;;  %v5679_v37 = vpop.f32.mrb[186].mxu0 }
 0x394   : > { %v5680_v7 = vpop.f32.mrb[187].mxu0 }
 0x395   : > { %v9104_v35 = vadd.f32 %v5680_v7, %v5679_v37 }
 0x396   : > { %5502 = vmatmul.mubr.msk.bf16.gmra.mrb[36].mxu0 %vm7430_vm5, %v8890_v50 }
 0x397   : > { %6289 = vmatmul.mubr.msk.bf16.gmra.mrb[180].mxu1 %vm7237_vm2, %v9734_v32 }
 0x398   : > { %6292 = vmatprep.mubr.msk.bf16.mxu1 %vm7237_vm2, %v8840_v18 }
 0x399   : > { %v5682_v48 = vpop.f32.mrb[188].mxu0 }
 0x39a   : > { %v5683_v15 = vpop.f32.mrb[189].mxu0 }
 0x39b   : > { %v9115_v63 = vadd.f32 %v5683_v15, %v5682_v48  ;;  %v5685_v0 = vpop.f32.mrb[190].mxu0 }
 0x39c   : > { %v5686_v53 = vpop.f32.mrb[191].mxu0 }
 0x39d   : > { %v9117_v42 = vadd.f32 %v5686_v53, %v5685_v0 }
 0x39f   : > { %6293 = vmatmul.mubr.msk.bf16.gmra.mrb[184].mxu1 %vm7237_vm2, %v8838_v25 }
 0x3a0   : > { %6312 = vmatprep.mubr.msk.bf16.mxu1 %vm7237_vm2, %v8518_v19 }
 0x3a1   : > { %v5688_v2 = vpop.f32.mrb[192].mxu0 }
 0x3a2   : > { %v5689_v50 = vpop.f32.mrb[193].mxu0 }
 0x3a3   : > { %v9125_v60 = vadd.f32 %v5689_v50, %v5688_v2  ;;  %v5691_v55 = vpop.f32.mrb[194].mxu0 }
 0x3a4   : > { %v5692_v27 = vpop.f32.mrb[195].mxu0 }
 0x3a5   : > { %v9127_v47 = vadd.f32 %v5692_v27, %v5691_v55 }
 0x3a7   : > { %6313 = vmatmul.mubr.msk.bf16.vlgmr.msra.gmra.mrb[156].mxu1 %vm7237_vm2, %v8541_v11 }
 0x3a8   : > { %6316 = vmatprep.mubr.msk.bf16.mxu1 %vm7237_vm2, %v8571_v56 }
 0x3a9   : > { %v5694_v49 = vpop.f32.mrb[196].mxu0 }
 0x3aa   : > { %v5695_v54 = vpop.f32.mrb[197].mxu0 }
 0x3ab   : > { %v9135_v61 = vadd.f32 %v5695_v54, %v5694_v49  ;;  %v5697_v19 = vpop.f32.mrb[198].mxu0 }
 0x3ac   : > { %v5698_v38 = vpop.f32.mrb[199].mxu0 }
 0x3ad   : > { %v9137_v10 = vadd.f32 %v5698_v38, %v5697_v19 }
 0x3af   : > { %6317 = vmatmul.mubr.msk.bf16.gmra.mrb[160].mxu1 %vm7237_vm2, %v8566_v4 }
 0x3b0   : > { %6320 = vmatprep.mubr.msk.bf16.mxu1 %vm7237_vm2, %v8625_v20 }
 0x3b1   : > { %v5700_v11 = vpop.f32.mrb[200].mxu0 }
 0x3b2   : > { %v5701_v51 = vpop.f32.mrb[201].mxu0 }
 0x3b3   : > { %v9145_v5 = vadd.f32 %v5701_v51, %v5700_v11  ;;  %v5703_v56 = vpop.f32.mrb[202].mxu0 }
 0x3b4   : > { %v5704_v31 = vpop.f32.mrb[203].mxu0 }
 0x3b5   : > { %v9147_v39 = vadd.f32 %v5704_v31, %v5703_v56 }
 0x3b7   : > { %6321 = vmatmul.mubr.msk.bf16.gmra.mrb[164].mxu1 %vm7237_vm2, %v8620_v45 }
 0x3b8   : > { %6324 = vmatprep.mubr.msk.bf16.mxu1 %vm7237_vm2, %v8681_v1 }
 0x3b9   : > { %v5706_v4 = vpop.f32.mrb[204].mxu0 }
 0x3ba   : > { %v5788_v12 = vpop.f32.mrb[188].mxu1  ;;  %v5707_v28 = vpop.f32.mrb[205].mxu0 }
 0x3bb   : > { %v5789_v20 = vpop.f32.mrb[189].mxu1  ;;  %v9155_v14 = vadd.f32 %v5707_v28, %v5706_v4  ;;  %v5709_v3 = vpop.f32.mrb[206].mxu0 }
 0x3bc   : > { %v5790_v43 = vadd.f32 %v5789_v20, %v5788_v12  ;;  %v5791_v36 = vpop.f32.mrb[190].mxu1  ;;  %v5710_v22 = vpop.f32.mrb[207].mxu0 }
 0x3bd   : > { %v5792_v33 = vpop.f32.mrb[191].mxu1  ;;  %v9160_v26 = vadd.f32 %v5710_v22, %v5709_v3 }
 0x3be   : > { %v9158_v58 = vadd.f32 %v5790_v43, %v9046_v23  ;;  %v5793_v45 = vadd.f32 %v5792_v33, %v5791_v36 }
 0x3bf   : > { %6325 = vmatmul.mubr.msk.bf16.gmra.mrb[168].mxu1 %vm7237_vm2, %v8676_v9 }
 0x3c0   : > { %v9166_v1 = vadd.f32 %v5793_v45, %v9048_v40  ;;  %6328 = vmatprep.mubr.msk.bf16.mxu1 %vm7237_vm2, %v8737_v6 }
 0x3c1   : > { %v5712_v24 = vpop.f32.mrb[208].mxu0 }
 0x3c2   : > { %v5794_v59 = vpop.f32.mrb[192].mxu1  ;;  %v5713_v29 = vpop.f32.mrb[209].mxu0 }
 0x3c3   : > { %v5795_v34 = vpop.f32.mrb[193].mxu1  ;;  %v9171_v23 = vadd.f32 %v5713_v29, %v5712_v24  ;;  %v5715_v7 = vpop.f32.mrb[210].mxu0 }
 0x3c4   : > { %v5796_v37 = vadd.f32 %v5795_v34, %v5794_v59  ;;  %v5797_v48 = vpop.f32.mrb[194].mxu1  ;;  %v5716_v15 = vpop.f32.mrb[211].mxu0 }
 0x3c5   : > { %v5798_v0 = vpop.f32.mrb[195].mxu1  ;;  %v9176_v40 = vadd.f32 %v5716_v15, %v5715_v7 }
 0x3c6   : > { %v9174_v9 = vadd.f32 %v5796_v37, %v9060_v8  ;;  %v5799_v53 = vadd.f32 %v5798_v0, %v5797_v48 }
 0x3c7   : > { %6329 = vmatmul.mubr.msk.bf16.gmra.mrb[172].mxu1 %vm7237_vm2, %v9732_v41 }
 0x3c8   : > { %v9182_v6 = vadd.f32 %v5799_v53, %v9062_v57  ;;  %6332 = vmatprep.mubr.msk.bf16.mxu1 %vm7237_vm2, %v9733_v52 }
 0x3c9   : > { %v5718_v2 = vpop.f32.mrb[212].mxu0 }
 0x3ca   : > { %v5800_v50 = vpop.f32.mrb[196].mxu1  ;;  %v5719_v55 = vpop.f32.mrb[213].mxu0 }
 0x3cb   : > { %v5801_v27 = vpop.f32.mrb[197].mxu1  ;;  %v9187_v8 = vadd.f32 %v5719_v55, %v5718_v2  ;;  %v5721_v54 = vpop.f32.mrb[214].mxu0 }
 0x3cc   : > { %v5802_v49 = vadd.f32 %v5801_v27, %v5800_v50  ;;  %v5803_v19 = vpop.f32.mrb[198].mxu1  ;;  %v5722_v38 = vpop.f32.mrb[215].mxu0 }
 0x3cd   : > { %v5804_v11 = vpop.f32.mrb[199].mxu1  ;;  %v9192_v57 = vadd.f32 %v5722_v38, %v5721_v54 }
 0x3ce   : > { %v9190_v41 = vadd.f32 %v5802_v49, %v9074_v46  ;;  %v5805_v51 = vadd.f32 %v5804_v11, %v5803_v19 }
 0x3cf   : > { %6333 = vmatmul.mubr.msk.bf16.gmra.mrb[176].mxu1 %vm7237_vm2, %v9734_v32 }
 0x3d0   : > { %v9198_v52 = vadd.f32 %v5805_v51, %v9076_v30  ;;  %6336 = vmatprep.mubr.msk.bf16.mxu1 %vm7237_vm2, %v8840_v18 }
 0x3d1   : > { %v5724_v56 = vpop.f32.mrb[216].mxu0 }
 0x3d2   : > { %v5806_v31 = vpop.f32.mrb[200].mxu1  ;;  %v5725_v4 = vpop.f32.mrb[217].mxu0 }
 0x3d3   : > { %v5807_v12 = vpop.f32.mrb[201].mxu1  ;;  %v9203_v46 = vadd.f32 %v5725_v4, %v5724_v56  ;;  %v5727_v20 = vpop.f32.mrb[218].mxu0 }
 0x3d4   : > { %v5808_v28 = vadd.f32 %v5807_v12, %v5806_v31  ;;  %v5809_v43 = vpop.f32.mrb[202].mxu1  ;;  %v5728_v3 = vpop.f32.mrb[219].mxu0 }
 0x3d5   : > { %v5810_v36 = vpop.f32.mrb[203].mxu1  ;;  %v9208_v30 = vadd.f32 %v5728_v3, %v5727_v20 }
 0x3d6   : > { %v9206_v32 = vadd.f32 %v5808_v28, %v9088_v21  ;;  %v5811_v22 = vadd.f32 %v5810_v36, %v5809_v43 }
 0x3d7   : > { %6337 = vmatmul.mubr.msk.bf16.gmra.mrb[180].mxu1 %vm7237_vm2, %v8838_v25 }
 0x3d8   : > { %v9214_v18 = vadd.f32 %v5811_v22, %v9090_v16  ;;  %6340 = vmatprep.mubr.msk.bf16.mxu1 %vm7237_vm2, %v8877_v44 }
 0x3d9   : > { %v5730_v33 = vpop.f32.mrb[220].mxu0 }
 0x3da   : > { %v5812_v45 = vpop.f32.mrb[204].mxu1  ;;  %v5731_v24 = vpop.f32.mrb[221].mxu0 }
 0x3db   : > { %v5813_v59 = vpop.f32.mrb[205].mxu1  ;;  %v9219_v21 = vadd.f32 %v5731_v24, %v5730_v33  ;;  %v5733_v34 = vpop.f32.mrb[222].mxu0 }
 0x3dc   : > { %v5814_v29 = vadd.f32 %v5813_v59, %v5812_v45  ;;  %v5815_v37 = vpop.f32.mrb[206].mxu1  ;;  %v5734_v7 = vpop.f32.mrb[223].mxu0 }
 0x3dd   : > { %v5816_v48 = vpop.f32.mrb[207].mxu1  ;;  %v9224_v16 = vadd.f32 %v5734_v7, %v5733_v34 }
 0x3de   : > { %v9222_v25 = vadd.f32 %v5814_v29, %v9102_v13  ;;  %v5817_v15 = vadd.f32 %v5816_v48, %v5815_v37 }
 0x3df   : > { %6341 = vmatmul.mubr.msk.bf16.gmra.mrb[184].mxu1 %vm7237_vm2, %v9014_v62 }
 0x3e0   : > { %v9230_v44 = vadd.f32 %v5817_v15, %v9104_v35 }
 0x3e1   : > { %v5736_v0 = vpop.f32.mrb[224].mxu0 }
 0x3e2   : > { %v5818_v53 = vpop.f32.mrb[208].mxu1  ;;  %v5737_v2 = vpop.f32.mrb[225].mxu0 }
 0x3e3   : > { %v5819_v50 = vpop.f32.mrb[209].mxu1  ;;  %v9232_v55 = vadd.f32 %v5737_v2, %v5736_v0  ;;  %v5739_v49 = vpop.f32.mrb[226].mxu0 }
 0x3e4   : > { %v5820_v27 = vadd.f32 %v5819_v50, %v5818_v53  ;;  %v5821_v13 = vpop.f32.mrb[210].mxu1  ;;  %v5740_v54 = vpop.f32.mrb[227].mxu0 }
 0x3e5   : > { %v5822_v19 = vpop.f32.mrb[211].mxu1  ;;  %v9237_v11 = vadd.f32 %v5740_v54, %v5739_v49 }
 0x3e6   : > { %v9235_v38 = vadd.f32 %v5820_v27, %v9115_v63  ;;  %v5823_v17 = vadd.f32 %v5822_v19, %v5821_v13 }
 0x3e8   : > { %v9240_v62 = vadd.f32 %v5823_v17, %v9117_v42 }
 0x3e9   : > { %v5742_v35 = vpop.f32.mrb[228].mxu0 }
 0x3ea   : > { %v5824_v51 = vpop.f32.mrb[212].mxu1  ;;  %v5743_v56 = vpop.f32.mrb[229].mxu0 }
 0x3eb   : > { %v5825_v31 = vpop.f32.mrb[213].mxu1  ;;  %v9242_v4 = vadd.f32 %v5743_v56, %v5742_v35  ;;  %v5745_v28 = vpop.f32.mrb[230].mxu0 }
 0x3ec   : > { %v5826_v12 = vadd.f32 %v5825_v31, %v5824_v51  ;;  %v5827_v20 = vpop.f32.mrb[214].mxu1  ;;  %v5746_v43 = vpop.f32.mrb[231].mxu0 }
 0x3ed   : > { %v5828_v3 = vpop.f32.mrb[215].mxu1  ;;  %v9247_v36 = vadd.f32 %v5746_v43, %v5745_v28 }
 0x3ee   : > { %v9245_v63 = vadd.f32 %v5826_v12, %v9125_v60  ;;  %v5829_v22 = vadd.f32 %v5828_v3, %v5827_v20 }
 0x3f0   : > { %v9250_v42 = vadd.f32 %v5829_v22, %v9127_v47 }
 0x3f1   : > { %v5924_v45 = vpop.f32.mrb[232].mxu0 }
 0x3f2   : > { %v5830_v33 = vpop.f32.mrb[216].mxu1  ;;  %v5925_v59 = vpop.f32.mrb[233].mxu0 }
 0x3f3   : > { %v5831_v24 = vpop.f32.mrb[217].mxu1  ;;  %v5926_v34 = vadd.f32 %v5925_v59, %v5924_v45  ;;  %v5927_v7 = vpop.f32.mrb[234].mxu0 }
 0x3f4   : > { %v5832_v29 = vadd.f32 %v5831_v24, %v5830_v33  ;;  %v5833_v37 = vpop.f32.mrb[218].mxu1  ;;  %v5928_v15 = vpop.f32.mrb[235].mxu0 }
 0x3f5   : > { %v5834_v48 = vpop.f32.mrb[219].mxu1  ;;  %v5929_v53 = vadd.f32 %v5928_v15, %v5927_v7  ;;  %v9256_v2 = vadd.f32 %v9158_v58, %v5926_v34 }
 0x3f6   : > { %v9253_v0 = vadd.f32 %v5832_v29, %v9135_v61  ;;  %v5835_v60 = vadd.f32 %v5834_v48, %v5833_v37 }
 0x3f7   : > { %v9262_v50 = vadd.f32 %v9166_v1, %v5929_v53 }
 0x3f8   : > { %v9259_v47 = vadd.f32 %v5835_v60, %v9137_v10 }
 0x3f9   : > { %v5930_v49 = vpop.f32.mrb[236].mxu0 }
 0x3fa   : > { %v5836_v27 = vpop.f32.mrb[220].mxu1  ;;  %v5931_v54 = vpop.f32.mrb[237].mxu0 }
 0x3fb   : > { %v5837_v13 = vpop.f32.mrb[221].mxu1  ;;  %v5932_v17 = vadd.f32 %v5931_v54, %v5930_v49  ;;  %v5933_v61 = vpop.f32.mrb[238].mxu0 }
 0x3fc   : > { %v5838_v19 = vadd.f32 %v5837_v13, %v5836_v27  ;;  %v5839_v35 = vpop.f32.mrb[222].mxu1  ;;  %v5934_v56 = vpop.f32.mrb[239].mxu0 }
 0x3fd   : > { %v5840_v51 = vpop.f32.mrb[223].mxu1  ;;  %v5935_v12 = vadd.f32 %v5934_v56, %v5933_v61  ;;  %v9268_v10 = vadd.f32 %v9174_v9, %v5932_v17 }
 0x3fe   : > { %v9265_v31 = vadd.f32 %v5838_v19, %v9145_v5  ;;  %v5841_v58 = vadd.f32 %v5840_v51, %v5839_v35 }
 0x3ff   : > { %v9274_v28 = vadd.f32 %v9182_v6, %v5935_v12 }
 0x400   : > { %v9271_v1 = vadd.f32 %v5841_v58, %v9147_v39 }
 0x401   : > { %v5936_v43 = vpop.f32.mrb[240].mxu0 }
 0x402   : > { %v5842_v20 = vpop.f32.mrb[224].mxu1  ;;  %v5937_v22 = vpop.f32.mrb[241].mxu0 }
 0x403   : > { %v5843_v3 = vpop.f32.mrb[225].mxu1  ;;  %v5938_v45 = vadd.f32 %v5937_v22, %v5936_v43  ;;  %v5939_v5 = vpop.f32.mrb[242].mxu0 }
 0x404   : > { %v5844_v33 = vadd.f32 %v5843_v3, %v5842_v20  ;;  %v5845_v24 = vpop.f32.mrb[226].mxu1  ;;  %v5940_v29 = vpop.f32.mrb[243].mxu0 }
 0x405   : > { %v5846_v59 = vpop.f32.mrb[227].mxu1  ;;  %v5941_v37 = vadd.f32 %v5940_v29, %v5939_v5  ;;  %v9280_v39 = vadd.f32 %v9190_v41, %v5938_v45 }
 0x406   : > { %v9277_v34 = vadd.f32 %v5844_v33, %v9155_v14  ;;  %v5847_v9 = vadd.f32 %v5846_v59, %v5845_v24 }
 0x407   : > { %v9286_v7 = vadd.f32 %v9198_v52, %v5941_v37 }
 0x408   : > { %v9283_v6 = vadd.f32 %v5847_v9, %v9160_v26 }
 0x409   : > { %v5942_v15 = vpop.f32.mrb[244].mxu0 }
 0x40a   : > { %v5848_v48 = vpop.f32.mrb[228].mxu1  ;;  %v5943_v53 = vpop.f32.mrb[245].mxu0 }
 0x40b   : > { %v5849_v60 = vpop.f32.mrb[229].mxu1  ;;  %v5944_v49 = vadd.f32 %v5943_v53, %v5942_v15  ;;  %v5945_v14 = vpop.f32.mrb[246].mxu0 }
 0x40c   : > { %v5850_v27 = vadd.f32 %v5849_v60, %v5848_v48  ;;  %v5851_v13 = vpop.f32.mrb[230].mxu1  ;;  %v5946_v19 = vpop.f32.mrb[247].mxu0 }
 0x40d   : > { %v5852_v54 = vpop.f32.mrb[231].mxu1  ;;  %v5947_v35 = vadd.f32 %v5946_v19, %v5945_v14  ;;  %v9292_v26 = vadd.f32 %v9206_v32, %v5944_v49 }
 0x40e   : > { %v9289_v17 = vadd.f32 %v5850_v27, %v9171_v23  ;;  %v5853_v41 = vadd.f32 %v5852_v54, %v5851_v13 }
 0x40f   : > { %v9298_v61 = vadd.f32 %v9214_v18, %v5947_v35 }
 0x410   : > { %v9295_v52 = vadd.f32 %v5853_v41, %v9176_v40 }
 0x411   : > { %v5948_v56 = vpop.f32.mrb[248].mxu0 }
 0x412   : > { %v5854_v51 = vpop.f32.mrb[232].mxu1  ;;  %v5949_v12 = vpop.f32.mrb[249].mxu0 }
 0x413   : > { %v5855_v58 = vpop.f32.mrb[233].mxu1  ;;  %v5950_v43 = vadd.f32 %v5949_v12, %v5948_v56  ;;  %v5951_v23 = vpop.f32.mrb[250].mxu0 }
 0x414   : > { %v5856_v20 = vadd.f32 %v5855_v58, %v5854_v51  ;;  %v5857_v3 = vpop.f32.mrb[234].mxu1  ;;  %v5952_v33 = vpop.f32.mrb[251].mxu0 }
 0x415   : > { %v5858_v22 = vpop.f32.mrb[235].mxu1  ;;  %v5953_v24 = vadd.f32 %v5952_v33, %v5951_v23  ;;  %v9304_v40 = vadd.f32 %v9222_v25, %v5950_v43 }
 0x416   : > { %v9301_v45 = vadd.f32 %v5856_v20, %v9187_v8  ;;  %v5859_v32 = vadd.f32 %v5858_v22, %v5857_v3 }
 0x417   : > { %v9310_v5 = vadd.f32 %v9230_v44, %v5953_v24 }
 0x418   : > { %v9307_v18 = vadd.f32 %v5859_v32, %v9192_v57 }
 0x419   : > { %v5954_v29 = vpop.f32.mrb[252].mxu0 }
 0x41a   : > { %v5860_v59 = vpop.f32.mrb[236].mxu1  ;;  %v5955_v37 = vpop.f32.mrb[253].mxu0 }
 0x41b   : > { %v5861_v9 = vpop.f32.mrb[237].mxu1  ;;  %v5956_v15 = vadd.f32 %v5955_v37, %v5954_v29  ;;  %v5957_v8 = vpop.f32.mrb[254].mxu0 }
 0x41c   : > { %v5862_v48 = vadd.f32 %v5861_v9, %v5860_v59  ;;  %v5863_v60 = vpop.f32.mrb[238].mxu1  ;;  %v5958_v27 = vpop.f32.mrb[255].mxu0 }
 0x41d   : > { %v5864_v53 = vpop.f32.mrb[239].mxu1  ;;  %v5959_v13 = vadd.f32 %v5958_v27, %v5957_v8  ;;  %v9316_v57 = vadd.f32 %v9235_v38, %v5956_v15 }
 0x41e   : > { %v9313_v49 = vadd.f32 %v5862_v48, %v9203_v46  ;;  %v5865_v25 = vadd.f32 %v5864_v53, %v5863_v60 }
 0x41f   : > { %v9322_v14 = vadd.f32 %v9240_v62, %v5959_v13 }
 0x420   : > { %v9319_v44 = vadd.f32 %v5865_v25, %v9208_v30 }
 0x421   : > { %v5960_v19 = vpop.f32.mrb[0].mxu0 }
 0x422   : > { %v5866_v54 = vpop.f32.mrb[240].mxu1  ;;  %v5961_v35 = vpop.f32.mrb[1].mxu0 }
 0x423   : > { %v5867_v41 = vpop.f32.mrb[241].mxu1  ;;  %v5962_v56 = vadd.f32 %v5961_v35, %v5960_v19  ;;  %v5963_v46 = vpop.f32.mrb[2].mxu0 }
 0x424   : > { %v5868_v51 = vadd.f32 %v5867_v41, %v5866_v54  ;;  %v5869_v58 = vpop.f32.mrb[242].mxu1  ;;  %v5964_v20 = vpop.f32.mrb[3].mxu0 }
 0x425   : > { %v5870_v12 = vpop.f32.mrb[243].mxu1  ;;  %v5965_v3 = vadd.f32 %v5964_v20, %v5963_v46  ;;  %v9328_v30 = vadd.f32 %v9245_v63, %v5962_v56 }
 0x426   : > { %v9325_v43 = vadd.f32 %v5868_v51, %v9219_v21  ;;  %v5871_v38 = vadd.f32 %v5870_v12, %v5869_v58 }
 0x427   : > { %v9334_v23 = vadd.f32 %v9250_v42, %v5965_v3 }
 0x428   : > { %v9331_v62 = vadd.f32 %v5871_v38, %v9224_v16 }
 0x429   : > { %v5966_v33 = vpop.f32.mrb[4].mxu0 }
 0x42a   : > { %v5872_v22 = vpop.f32.mrb[244].mxu1  ;;  %v5967_v24 = vpop.f32.mrb[5].mxu0 }
 0x42b   : > { %v5873_v32 = vpop.f32.mrb[245].mxu1  ;;  %v5968_v29 = vadd.f32 %v5967_v24, %v5966_v33  ;;  %v5969_v21 = vpop.f32.mrb[6].mxu0 }
 0x42c   : > { %v5874_v59 = vadd.f32 %v5873_v32, %v5872_v22  ;;  %v5875_v9 = vpop.f32.mrb[246].mxu1  ;;  %v5970_v48 = vpop.f32.mrb[7].mxu0 }
 0x42d   : > { %v5876_v37 = vpop.f32.mrb[247].mxu1  ;;  %v5971_v60 = vadd.f32 %v5970_v48, %v5969_v21  ;;  %v9340_v16 = vadd.f32 %v9253_v0, %v5968_v29 }
 0x42e   : > { %v9337_v15 = vadd.f32 %v5874_v59, %v9232_v55  ;;  %v5877_v63 = vadd.f32 %v5876_v37, %v5875_v9 }
 0x42f   : > { %v9346_v8 = vadd.f32 %v9259_v47, %v5971_v60 }
 0x430   : > { %v9343_v42 = vadd.f32 %v5877_v63, %v9237_v11 }
 0x431   : > { %v5972_v27 = vpop.f32.mrb[8].mxu0 }
 0x432   : > { %v5878_v53 = vpop.f32.mrb[248].mxu1  ;;  %v5973_v13 = vpop.f32.mrb[9].mxu0 }
 0x433   : > { %v5879_v25 = vpop.f32.mrb[249].mxu1  ;;  %v5974_v19 = vadd.f32 %v5973_v13, %v5972_v27  ;;  %v5975_v55 = vpop.f32.mrb[10].mxu0 }
 0x434   : > { %v5880_v54 = vadd.f32 %v5879_v25, %v5878_v53  ;;  %v5881_v41 = vpop.f32.mrb[250].mxu1  ;;  %v5976_v51 = vpop.f32.mrb[11].mxu0 }
 0x435   : > { %v5882_v35 = vpop.f32.mrb[251].mxu1  ;;  %v5977_v58 = vadd.f32 %v5976_v51, %v5975_v55  ;;  %v9350_v11 = vadd.f32 %v9265_v31, %v5974_v19 }
 0x436   : > { %v6460_v56 = vadd.f32 %v5880_v54, %v9242_v4  ;;  %v5883_v0 = vadd.f32 %v5882_v35, %v5881_v41 }
 0x437   : > { %v9354_v46 = vadd.f32 %v9271_v1, %v5977_v58 }
 0x438   : > { %v6466_v47 = vadd.f32 %v5883_v0, %v9247_v36 }
 0x439   : > { %v5978_v12 = vpop.f32.mrb[12].mxu0 }
 0x43a   : > { %v5979_v20 = vpop.f32.mrb[13].mxu0 }
 0x43b   : > { %v5980_v38 = vadd.f32 %v5979_v20, %v5978_v12  ;;  %v5981_v3 = vpop.f32.mrb[14].mxu0 }
 0x43c   : > { %v5982_v22 = vpop.f32.mrb[15].mxu0 }
 0x43d   : > { %v5983_v33 = vadd.f32 %v5982_v22, %v5981_v3  ;;  %v9357_v32 = vadd.f32 %v9277_v34, %v5980_v38 }
 0x43f   : > { %v9360_v4 = vadd.f32 %v9283_v6, %v5983_v33 }
 0x441   : > { %v5984_v24 = vpop.f32.mrb[16].mxu0 }
 0x442   : > { %v5985_v31 = vpop.f32.mrb[17].mxu0 }
 0x443   : > { %v5986_v59 = vadd.f32 %v5985_v31, %v5984_v24  ;;  %v5987_v29 = vpop.f32.mrb[18].mxu0 }
 0x444   : > { %v5988_v36 = vpop.f32.mrb[19].mxu0 }
 0x445   : > { %v5989_v9 = vadd.f32 %v5988_v36, %v5987_v29  ;;  %v9363_v1 = vadd.f32 %v9289_v17, %v5986_v59 }
 0x447   : > { %v9366_v21 = vadd.f32 %v9295_v52, %v5989_v9 }
 0x449   : > { %v5990_v37 = vpop.f32.mrb[20].mxu0 }
 0x44a   : > { %v5991_v48 = vpop.f32.mrb[21].mxu0 }
 0x44b   : > { %v5992_v63 = vadd.f32 %v5991_v48, %v5990_v37  ;;  %v5993_v34 = vpop.f32.mrb[22].mxu0 }
 0x44c   : > { %v5994_v60 = vpop.f32.mrb[23].mxu0 }
 0x44d   : > { %v5995_v53 = vadd.f32 %v5994_v60, %v5993_v34  ;;  %v9369_v6 = vadd.f32 %v9301_v45, %v5992_v63 }
 0x44f   : > { %v9372_v27 = vadd.f32 %v9307_v18, %v5995_v53 }
 0x451   : > { %v5996_v25 = vpop.f32.mrb[24].mxu0 }
 0x452   : > { %v5997_v13 = vpop.f32.mrb[25].mxu0 }
 0x453   : > { %v5998_v54 = vadd.f32 %v5997_v13, %v5996_v25  ;;  %v5999_v17 = vpop.f32.mrb[26].mxu0 }
 0x454   : > { %v6000_v19 = vpop.f32.mrb[27].mxu0 }
 0x455   : > { %v6001_v41 = vadd.f32 %v6000_v19, %v5999_v17  ;;  %v9375_v52 = vadd.f32 %v9313_v49, %v5998_v54  ;;  %v6776_v17 = vld [vmem:[%s7211_s9 + $0x30] sm:$0xff] }
 0x457   : > { %v9378_v55 = vadd.f32 %v9319_v44, %v6001_v41  ;;  %v6777_v41 = vld [vmem:[%s7211_s9 + $0x20] sm:$0xff] }
 0x459   : > { %v6002_v35 = vpop.f32.mrb[28].mxu0 }
 0x45a   : > { %v6003_v51 = vpop.f32.mrb[29].mxu0 }
 0x45b   : > { %v6004_v0 = vadd.f32 %v6003_v51, %v6002_v35  ;;  %v6005_v45 = vpop.f32.mrb[30].mxu0 }
 0x45c   : > { %v6006_v58 = vpop.f32.mrb[31].mxu0 }
 0x45d   : > { %v6007_v12 = vadd.f32 %v6006_v58, %v6005_v45  ;;  %v9381_v18 = vadd.f32 %v9325_v43, %v6004_v0  ;;  %v6778_v0 = vld [vmem:[%s7211_s9 + $0x38] sm:$0xff] }
 0x45f   : > { %v9384_v20 = vadd.f32 %v9331_v62, %v6007_v12  ;;  %v6779_v12 = vld [vmem:[%s7211_s9 + $0x28] sm:$0xff] }
 0x461   : > { %v6008_v38 = vpop.f32.mrb[32].mxu0 }
 0x462   : > { %v6009_v3 = vpop.f32.mrb[33].mxu0 }
 0x463   : > { %v6010_v22 = vadd.f32 %v6009_v3, %v6008_v38  ;;  %v6011_v49 = vpop.f32.mrb[34].mxu0 }
 0x464   : > { %v6012_v33 = vpop.f32.mrb[35].mxu0 }
 0x465   : > { %v6013_v24 = vadd.f32 %v6012_v33, %v6011_v49  ;;  %v9387_v44 = vadd.f32 %v9337_v15, %v6010_v22  ;;  %v9399_v15 = vld [vmem:[%s9591_s3 + $0x1] ss:$0 sm:$0xff] }
 0x467   : > { %v9390_v31 = vadd.f32 %v9343_v42, %v6013_v24 }
 0x469   : > { %v6014_v59 = vpop.f32.mrb[36].mxu0 }
 0x46a   : > { %v6015_v29 = vpop.f32.mrb[37].mxu0 }
 0x46b   : > { %v6016_v43 = vadd.f32 %v6015_v29, %v6014_v59  ;;  %v6017_v36 = vpop.f32.mrb[38].mxu0 }
 0x46c   : > { %v6018_v9 = vpop.f32.mrb[39].mxu0 }
 0x46d   : > { %v6019_v62 = vadd.f32 %v6018_v9, %v6017_v36  ;;  %v9392_v37 = vadd.f32 %v6460_v56, %v6016_v43  ;;  %v6780_v9 = vld [vmem:[%s7211_s9 + $0x50] sm:$0xff] }
 0x46f   : > { %v9394_v48 = vadd.f32 %v6466_v47, %v6019_v62 }
 0x47a   : > { %v6314_v63 = vpop.f32.mrb[156].mxu1 }
 0x47b   : > { %v6378_v42 = vadd.f32 %v9268_v10, %v6314_v63  ;;  %v4267_v34 = vpop.f32.mrb[157].mxu1  ;;  %v6781_v63 = vld [vmem:[%s7211_s9 + $0x40] sm:$0xff] }
 0x47c   : > { %v6381_v60 = vadd.f32 %v9256_v2, %v4267_v34  ;;  %v6315_v53 = vpop.f32.mrb[158].mxu1 }
 0x47d   : > { %v4433_v56 = vadd.f32 %v6378_v42, %v9399_v15  ;;  %v6384_v47 = vadd.f32 %v9274_v28, %v6315_v53  ;;  %v4270_v25 = vpop.f32.mrb[159].mxu1  ;;  %v6782_v53 = vld [vmem:[%s7211_s9 + $0x58] sm:$0xff] }
 0x47e   : > { %v4431_v13 = vadd.f32 %v6381_v60, %v9399_v15  ;;  %v6387_v54 = vadd.f32 %v9262_v50, %v4270_v25 }
 0x47f   : > { %v4465_v19 = vadd.f32 %v6776_v17, %v4433_v56  ;;  %v4434_v10 = vadd.f32 %v6384_v47, %v9399_v15  ;;  %v6783_v47 = vld [vmem:[%s7211_s9 + $0x48] sm:$0xff] }
 0x480   : > { %v4463_v35 = vadd.f32 %v6777_v41, %v4431_v13  ;;  %v4432_v2 = vadd.f32 %v6387_v54, %v9399_v15 }
 0x481   : > { %v4497_v51 = vmax.f32 %v4465_v19, 0.0  ;;  %v4466_v45 = vadd.f32 %v6778_v0, %v4434_v10 }
 0x482   : > { %v4495_v58 = vmax.f32 %v4463_v35, 0.0  ;;  %v4464_v38 = vadd.f32 %v6779_v12, %v4432_v2  ;;  %v6318_v28 = vpop.f32.mrb[160].mxu1  ;;  %v6785_v12 = vld [vmem:[%s7211_s9 + $0x60] sm:$0xff] }
 0x483   : > { %4529 = vst [vmem:[%s9414_s29 + $0x10] sm:$0xff] %v4497_v51  ;;  %v4498_v50 = vmax.f32 %v4466_v45, 0.0  ;;  %v6390_v3 = vadd.f32 %v9292_v26, %v6318_v28  ;;  %v4283_v22 = vpop.f32.mrb[161].mxu1  ;;  %v6784_v45 = vld [vmem:[%s7211_s9 + $0x70] sm:$0xff] }
 0x484   : > { %4527 = vst [vmem:[%s9414_s29] sm:$0xff] %v4495_v58  ;;  %v4496_v49 = vmax.f32 %v4464_v38, 0.0  ;;  %v6393_v33 = vadd.f32 %v9280_v39, %v4283_v22  ;;  %v6319_v24 = vpop.f32.mrb[162].mxu1 }
 0x485   : > { %4530 = vst [vmem:[%s9414_s29 + $0x18] sm:$0xff] %v4498_v50  ;;  %v4437_v59 = vadd.f32 %v6390_v3, %v9399_v15  ;;  %v6396_v29 = vadd.f32 %v9298_v61, %v6319_v24  ;;  %v4286_v43 = vpop.f32.mrb[163].mxu1  ;;  %v6786_v3 = vld [vmem:[%s7211_s9 + $0x78] sm:$0xff] }
 0x486   : > { %4528 = vst [vmem:[%s9414_s29 + $0x8] sm:$0xff] %v4496_v49  ;;  %v4435_v36 = vadd.f32 %v6393_v33, %v9399_v15  ;;  %v6399_v26 = vadd.f32 %v9286_v7, %v4286_v43  ;;  %v6787_v49 = vld [vmem:[%s7211_s9 + $0x68] sm:$0xff] }
 0x487   : > { %v4469_v62 = vadd.f32 %v6780_v9, %v4437_v59  ;;  %v4438_v39 = vadd.f32 %v6396_v29, %v9399_v15 }
 0x488   : > { %v4467_v42 = vadd.f32 %v6781_v63, %v4435_v36  ;;  %v4436_v34 = vadd.f32 %v6399_v26, %v9399_v15 }
 0x489   : > { %v4501_v60 = vmax.f32 %v4469_v62, 0.0  ;;  %v4470_v61 = vadd.f32 %v6782_v53, %v4438_v39 }
 0x48a   : > { %v4499_v56 = vmax.f32 %v4467_v42, 0.0  ;;  %v4468_v25 = vadd.f32 %v6783_v47, %v4436_v34  ;;  %v6322_v13 = vpop.f32.mrb[164].mxu1  ;;  %v6788_v42 = vld [vmem:[%s7211_s9 + $0x90] sm:$0xff]  ;;  %v6790_v47 = vld [vmem:[%s7211_s9 + $0x98] sm:$0xff] }
 0x48b   : > { %4533 = vst [vmem:[%s9414_s29 + $0x30] sm:$0xff] %v4501_v60  ;;  %v4502_v7 = vmax.f32 %v4470_v61, 0.0  ;;  %v6402_v54 = vadd.f32 %v9316_v57, %v6322_v13  ;;  %v4299_v17 = vpop.f32.mrb[165].mxu1  ;;  %v6789_v60 = vld [vmem:[%s7211_s9 + $0x80] sm:$0xff]  ;;  %v6791_v13 = vld [vmem:[%s7211_s9 + $0x88] sm:$0xff] }
 0x48c   : > { %4531 = vst [vmem:[%s9414_s29 + $0x20] sm:$0xff] %v4499_v56  ;;  %v4500_v19 = vmax.f32 %v4468_v25, 0.0  ;;  %v6405_v10 = vadd.f32 %v9304_v40, %v4299_v17  ;;  %v6323_v41 = vpop.f32.mrb[166].mxu1 }
 0x48d   : > { %4534 = vst [vmem:[%s9414_s29 + $0x38] sm:$0xff] %v4502_v7  ;;  %v4441_v35 = vadd.f32 %v6402_v54, %v9399_v15  ;;  %v6408_v2 = vadd.f32 %v9322_v14, %v6323_v41  ;;  %v4302_v51 = vpop.f32.mrb[167].mxu1 }
 0x48e   : > { %4532 = vst [vmem:[%s9414_s29 + $0x28] sm:$0xff] %v4500_v19  ;;  %v4439_v0 = vadd.f32 %v6405_v10, %v9399_v15  ;;  %v6411_v57 = vadd.f32 %v9310_v5, %v4302_v51 }
 0x48f   : > { %v4473_v58 = vadd.f32 %v6784_v45, %v4441_v35  ;;  %v4442_v40 = vadd.f32 %v6408_v2, %v9399_v15  ;;  %v6792_v45 = vld [vmem:[%s7211_s9 + $0xb0] sm:$0xff] }
 0x490   : > { %v4471_v38 = vadd.f32 %v6785_v12, %v4439_v0  ;;  %v4440_v28 = vadd.f32 %v6411_v57, %v9399_v15 }
 0x491   : > { %v4505_v50 = vmax.f32 %v4473_v58, 0.0  ;;  %v4474_v14 = vadd.f32 %v6786_v3, %v4442_v40  ;;  %v6793_v40 = vld [vmem:[%s7211_s9 + $0xa0] sm:$0xff] }
 0x492   : > { %v4503_v22 = vmax.f32 %v4471_v38, 0.0  ;;  %v4472_v33 = vadd.f32 %v6787_v49, %v4440_v28  ;;  %v6326_v24 = vpop.f32.mrb[168].mxu1 }
 0x493   : > { %4537 = vst [vmem:[%s9414_s29 + $0x50] sm:$0xff] %v4505_v50  ;;  %v4506_v5 = vmax.f32 %v4474_v14, 0.0  ;;  %v6414_v59 = vadd.f32 %v9340_v16, %v6326_v24  ;;  %v4315_v29 = vpop.f32.mrb[169].mxu1  ;;  %v6794_v50 = vld [vmem:[%s7211_s9 + $0xb8] sm:$0xff]  ;;  %v6795_v14 = vld [vmem:[%s7211_s9 + $0xa8] sm:$0xff] }
 0x494   : > { %4535 = vst [vmem:[%s9414_s29 + $0x40] sm:$0xff] %v4503_v22  ;;  %v4504_v43 = vmax.f32 %v4472_v33, 0.0  ;;  %v6417_v36 = vadd.f32 %v9328_v30, %v4315_v29  ;;  %v6327_v26 = vpop.f32.mrb[170].mxu1 }
 0x495   : > { %4538 = vst [vmem:[%s9414_s29 + $0x58] sm:$0xff] %v4506_v5  ;;  %v4445_v9 = vadd.f32 %v6414_v59, %v9399_v15  ;;  %v6420_v62 = vadd.f32 %v9346_v8, %v6327_v26  ;;  %v4318_v39 = vpop.f32.mrb[171].mxu1 }
 0x496   : > { %4536 = vst [vmem:[%s9414_s29 + $0x48] sm:$0xff] %v4504_v43  ;;  %v4443_v63 = vadd.f32 %v6417_v36, %v9399_v15  ;;  %v6423_v16 = vadd.f32 %v9334_v23, %v4318_v39 }
 0x497   : > { %v4477_v34 = vadd.f32 %v6788_v42, %v4445_v9  ;;  %v4446_v30 = vadd.f32 %v6420_v62, %v9399_v15  ;;  %v6796_v62 = vld [vmem:[%s7211_s9 + $0xd0] sm:$0xff] }
 0x498   : > { %v4475_v53 = vadd.f32 %v6789_v60, %v4443_v63  ;;  %v4444_v61 = vadd.f32 %v6423_v16, %v9399_v15  ;;  %v6797_v63 = vld [vmem:[%s7211_s9 + $0xc0] sm:$0xff] }
 0x499   : > { %v4509_v56 = vmax.f32 %v4477_v34, 0.0  ;;  %v4478_v8 = vadd.f32 %v6790_v47, %v4446_v30  ;;  %v6798_v30 = vld [vmem:[%s7211_s9 + $0xd8] sm:$0xff] }
 0x49a   : > { %v4507_v25 = vmax.f32 %v4475_v53, 0.0  ;;  %v4476_v7 = vadd.f32 %v6791_v13, %v4444_v61  ;;  %v6330_v54 = vpop.f32.mrb[172].mxu1  ;;  %v6799_v53 = vld [vmem:[%s7211_s9 + $0xc8] sm:$0xff] }
 0x49b   : > { %4541 = vst [vmem:[%s9414_s29 + $0x70] sm:$0xff] %v4509_v56  ;;  %v4510_v23 = vmax.f32 %v4478_v8, 0.0  ;;  %v6426_v17 = vadd.f32 %v9357_v32, %v6330_v54  ;;  %v4331_v19 = vpop.f32.mrb[173].mxu1 }
 0x49c   : > { %4539 = vst [vmem:[%s9414_s29 + $0x60] sm:$0xff] %v4507_v25  ;;  %v4508_v10 = vmax.f32 %v4476_v7, 0.0  ;;  %v6429_v41 = vadd.f32 %v9350_v11, %v4331_v19  ;;  %v6331_v35 = vpop.f32.mrb[174].mxu1 }
 0x49d   : > { %4542 = vst [vmem:[%s9414_s29 + $0x78] sm:$0xff] %v4510_v23  ;;  %v4449_v2 = vadd.f32 %v6426_v17, %v9399_v15  ;;  %v6432_v51 = vadd.f32 %v9360_v4, %v6331_v35  ;;  %v4334_v0 = vpop.f32.mrb[175].mxu1  ;;  %v6801_v35 = vld [vmem:[%s7211_s9 + $0xe0] sm:$0xff] }
 0x49e   : > { %4540 = vst [vmem:[%s9414_s29 + $0x68] sm:$0xff] %v4508_v10  ;;  %v4447_v57 = vadd.f32 %v6429_v41, %v9399_v15  ;;  %v6435_v32 = vadd.f32 %v9354_v46, %v4334_v0  ;;  %v6800_v10 = vld [vmem:[%s7211_s9 + $0xf0] sm:$0xff] }
 0x49f   : > { %v4481_v58 = vadd.f32 %v6792_v45, %v4449_v2  ;;  %v4450_v11 = vadd.f32 %v6432_v51, %v9399_v15  ;;  %v6803_v45 = vld [vmem:[%s7211_s9 + $0xe8] sm:$0xff] }
 0x4a0   : > { %v4479_v12 = vadd.f32 %v6793_v40, %v4447_v57  ;;  %v4448_v38 = vadd.f32 %v6435_v32, %v9399_v15  ;;  %v6802_v57 = vld [vmem:[%s7211_s9 + $0xf8] sm:$0xff] }
 0x4a1   : > { %v4513_v28 = vmax.f32 %v4481_v58, 0.0  ;;  %v4482_v4 = vadd.f32 %v6794_v50, %v4450_v11 }
 0x4a2   : > { %v4511_v3 = vmax.f32 %v4479_v12, 0.0  ;;  %v4480_v22 = vadd.f32 %v6795_v14, %v4448_v38  ;;  %v6334_v49 = vpop.f32.mrb[176].mxu1 }
 0x4a3   : > { %4545 = vst [vmem:[%s9414_s29 + $0x90] sm:$0xff] %v4513_v28  ;;  %v4514_v46 = vmax.f32 %v4482_v4, 0.0  ;;  %v6438_v33 = vadd.f32 %v9369_v6, %v6334_v49  ;;  %v4347_v24 = vpop.f32.mrb[177].mxu1  ;;  %v6804_v49 = vld [vmem:[%s7211_s9 + $0x110] sm:$0xff] }
 0x4a4   : > { %4543 = vst [vmem:[%s9414_s29 + $0x80] sm:$0xff] %v4511_v3  ;;  %v4512_v5 = vmax.f32 %v4480_v22, 0.0  ;;  %v6441_v59 = vadd.f32 %v9363_v1, %v4347_v24  ;;  %v6335_v29 = vpop.f32.mrb[178].mxu1 }
 0x4a5   : > { %4546 = vst [vmem:[%s9414_s29 + $0x98] sm:$0xff] %v4514_v46  ;;  %v4453_v43 = vadd.f32 %v6438_v33, %v9399_v15  ;;  %v6444_v36 = vadd.f32 %v9372_v27, %v6335_v29  ;;  %v4350_v26 = vpop.f32.mrb[179].mxu1  ;;  %v6805_v33 = vld [vmem:[%s7211_s9 + $0x100] sm:$0xff] }
 0x4a6   : > { %4544 = vst [vmem:[%s9414_s29 + $0x88] sm:$0xff] %v4512_v5  ;;  %v4451_v9 = vadd.f32 %v6441_v59, %v9399_v15  ;;  %v6447_v6 = vadd.f32 %v9366_v21, %v4350_v26  ;;  %v6806_v59 = vld [vmem:[%s7211_s9 + $0x118] sm:$0xff] }
 0x4a7   : > { %v4485_v39 = vadd.f32 %v6796_v62, %v4453_v43  ;;  %v4454_v1 = vadd.f32 %v6444_v36, %v9399_v15 }
 0x4a8   : > { %v4483_v16 = vadd.f32 %v6797_v63, %v4451_v9  ;;  %v4452_v42 = vadd.f32 %v6447_v6, %v9399_v15 }
 0x4a9   : > { %v4517_v34 = vmax.f32 %v4485_v39, 0.0  ;;  %v4486_v27 = vadd.f32 %v6798_v30, %v4454_v1 }
 0x4aa   : > { %v4515_v60 = vmax.f32 %v4483_v16, 0.0  ;;  %v4484_v61 = vadd.f32 %v6799_v53, %v4452_v42  ;;  %v6338_v56 = vpop.f32.mrb[180].mxu1 }
 0x4ab   : > { %4549 = vst [vmem:[%s9414_s29 + $0xb0] sm:$0xff] %v4517_v34  ;;  %v4518_v21 = vmax.f32 %v4486_v27, 0.0  ;;  %v6450_v47 = vadd.f32 %v9381_v18, %v6338_v56  ;;  %v4363_v8 = vpop.f32.mrb[181].mxu1 }
 0x4ac   : > { %4547 = vst [vmem:[%s9414_s29 + $0xa0] sm:$0xff] %v4515_v60  ;;  %v4516_v25 = vmax.f32 %v4484_v61, 0.0  ;;  %v6453_v13 = vadd.f32 %v9375_v52, %v4363_v8  ;;  %v6339_v7 = vpop.f32.mrb[182].mxu1 }
 0x4ad   : > { %4550 = vst [vmem:[%s9414_s29 + $0xb8] sm:$0xff] %v4518_v21  ;;  %v4457_v54 = vadd.f32 %v6450_v47, %v9399_v15  ;;  %v6456_v23 = vadd.f32 %v9384_v20, %v6339_v7  ;;  %v4366_v17 = vpop.f32.mrb[183].mxu1 }
 0x4ae   : > { %4548 = vst [vmem:[%s9414_s29 + $0xa8] sm:$0xff] %v4516_v25  ;;  %v4455_v19 = vadd.f32 %v6453_v13, %v9399_v15  ;;  %v6459_v18 = vadd.f32 %v9378_v55, %v4366_v17 }
 0x4af   : > { %v4489_v41 = vadd.f32 %v6800_v10, %v4457_v54  ;;  %v4458_v52 = vadd.f32 %v6456_v23, %v9399_v15 }
 0x4b0   : > { %v4487_v2 = vadd.f32 %v6801_v35, %v4455_v19  ;;  %v4456_v51 = vadd.f32 %v6459_v18, %v9399_v15 }
 0x4b1   : > { %v4521_v0 = vmax.f32 %v4489_v41, 0.0  ;;  %v4490_v20 = vadd.f32 %v6802_v57, %v4458_v52 }
 0x4b2   : > { %v4519_v32 = vmax.f32 %v4487_v2, 0.0  ;;  %v4488_v58 = vadd.f32 %v6803_v45, %v4456_v51  ;;  %v6342_v11 = vpop.f32.mrb[184].mxu1 }
 0x4b3   : > { %4553 = vst [vmem:[%s9414_s29 + $0xd0] sm:$0xff] %v4521_v0  ;;  %v4522_v55 = vmax.f32 %v4490_v20, 0.0  ;;  %v6462_v40 = vadd.f32 %v9392_v37, %v6342_v11  ;;  %v4379_v12 = vpop.f32.mrb[185].mxu1 }
 0x4b4   : > { %4551 = vst [vmem:[%s9414_s29 + $0xc0] sm:$0xff] %v4519_v32  ;;  %v4520_v38 = vmax.f32 %v4488_v58, 0.0  ;;  %v6465_v28 = vadd.f32 %v9387_v44, %v4379_v12  ;;  %v6343_v50 = vpop.f32.mrb[186].mxu1 }
 0x4b5   : > { %4554 = vst [vmem:[%s9414_s29 + $0xd8] sm:$0xff] %v4522_v55  ;;  %v4461_v4 = vadd.f32 %v6462_v40, %v9399_v15  ;;  %v6468_v3 = vadd.f32 %v9394_v48, %v6343_v50  ;;  %v4382_v14 = vpop.f32.mrb[187].mxu1 }
 0x4b6   : > { %4552 = vst [vmem:[%s9414_s29 + $0xc8] sm:$0xff] %v4520_v38  ;;  %v4459_v37 = vadd.f32 %v6465_v28, %v9399_v15  ;;  %v6471_v22 = vadd.f32 %v9390_v31, %v4382_v14  ;;  %v6807_v31 = vld [vmem:[%s7211_s9 + $0x108] sm:$0xff]  ;;  %s6900_s9 = scalar_lea.vmem %s6899_s11, 8192 }
 0x4b7   : > { %v4493_v46 = vadd.f32 %v6804_v49, %v4461_v4  ;;  %v4462_v44 = vadd.f32 %v6468_v3, %v9399_v15  ;;  %p6902_p5 = scmp.lt.s32.totalorder %s6900_s9, %s6894_s8 }
 0x4b8   : > { %v4491_v24 = vadd.f32 %v6805_v33, %v4459_v37  ;;  %v4460_v5 = vadd.f32 %v6471_v22, %v9399_v15 }
 0x4b9   : > { %v4525_v48 = vmax.f32 %v4493_v46, 0.0  ;;  %v4494_v29 = vadd.f32 %v6806_v59, %v4462_v44  ;;  %p6903_p9 = por %p6902_p5, %p6901_p3 }
 0x4ba   : > { %v4523_v43 = vmax.f32 %v4491_v24, 0.0  ;;  %v4492_v36 = vadd.f32 %v6807_v31, %v4460_v5 }
 0x4bb   : > { %4557 = vst [vmem:[%s9414_s29 + $0xf0] sm:$0xff] %v4525_v48  ;;  %v4526_v26 = vmax.f32 %v4494_v29, 0.0  ;;  %p6904_p2 = pnand %p6903_p9, %p6897_p10 }
 0x4bc   : > { %4555 = vst [vmem:[%s9414_s29 + $0xe0] sm:$0xff] %v4523_v43  ;;  %v4524_v15 = vmax.f32 %v4492_v36, 0.0 }
 0x4bd   : > { %4558 = vst [vmem:[%s9414_s29 + $0xf8] sm:$0xff] %v4526_v26 }
 0x4be   : > { %4556 = vst [vmem:[%s9414_s29 + $0xe8] sm:$0xff] %v4524_v15 }
 0x4bf   : > { %6907 = shalt.err (!%p6904_p2)
}
 0x4c0   : > { %s6908_s23 = scalar_lea.hbm %s9534_s28, 4096  ;;  %s6912_s21 = scalar_lea.hbm %s9592_s4, 8192 }
 0x4c1   : > { %p6909_p0 = scmp.ne.s32.totalorder %s9534_s28, %s6908_s23  ;;  %p6913_p6 = scmp.lt.u32.totalorder %s9534_s28, %s9592_s4 }
 0x4c2   : > { %p6914_p7 = scmp.lt.u32.totalorder %s6912_s21, %s6908_s23  ;;  %p6916_p8 = scmp.lt.u32.totalorder %s6908_s23, %s9534_s28 }
 0x4c3   : > { %p6910_p4 = pnand %p6909_p0, %p9735_p12 }
 0x4c4   : > { %p6915_p11 = por %p6914_p7, %p6913_p6 }
 0x4c5   : > { %p6911_p13 = pneg %p6910_p4 }
 0x4c6   : > { %p6917_p1 = por %p6916_p8, %p6915_p11 }
 0x4c8   : > { %p6918_p10 = pnand %p6917_p1, %p6911_p13 }
 0x4ca   : > { %6921 = shalt.err (!%p6918_p10)
}
 0x4cb   : > { %s6994_s14 = smov 128   ;;  %s6995_s13 = smov 8  }
 0x4cc   : > { %6549 = dma.vmem_to_hbm [thread:$0]  (%p9735_p12), %s9536_s24, 4096, %s9534_s28, %s4560_s18, %s6994_s14, %s6994_s14, %s6995_s13  }
 0x4cd PF: > { %s4591_s7 = sand.u32 1, %s6960_s15   ;;  %p9736_p3 = scmp.ne.s32.totalorder %s9637_s26, 0 }
 0x4ce   : > { %p9737_p5 = scmp.ge.s32.totalorder %s6980_s20, 2  ;;  %s4592_s8 = scalar_lea.sflag [#allocation4], %s4591_s7 }
 0x4d0   : > { %p6563_p9 = pnand %p9737_p5, %p9736_p3 }
 0x4d2   : > { %6955 = dma.done.wait (!%p6563_p9), %s4592_s8, 4096  }
 0x4d3   : > { %6957 = vsyncadd (!%p6563_p9), %s4592_s8, 4294963200  ;;  %s21_s20 = sadd.s32 1, %s6980_s20   ;;  %s9738_s15 = smov %s6964_s16 }
 0x4d4   : > { %p18_p2 = scmp.ge.s32.totalorder %s21_s20, 4   ;;  %s9739_s16 = smov %s6968_s17 }
 0x4d5   : > { %s9740_s17 = smov %s7166_s22  ;;  %s9741_s18 = smov %s6976_s19 }
 0x4d6   : > { %s9742_s19 = smov %s9744_s5  ;;  %20 = sbr.rel (!%p18_p2) target bundleno = 7 (0x7), region = 94 }
 0x4dd   :  { %4597 = vsyncpa [#allocation3], 1 }
 0x4de   :  { %4599 = vsyncpa [#allocation3 + $0x1], 1 }
 0x4df   :  { %4600 = vsyncpa [#allocation6], 1 }
 0x4e0   :  { %4601 = vsyncpa [#allocation4], 1 }
 0x4e1   :  { %4603 = vsyncpa [#allocation4 + $0x1], 1 }

</bundles_post_ra>
